<compile_context>
chip_gen: v5e
topology: v5e:2x2
jax: 0.10.0
libtpu: 0.0.40
codegen_flags: <defaults>
</compile_context>

<pallas_src>
import functools

import jax
import jax.numpy as jnp
import numpy as np
from jax import lax
from jax.experimental import pallas as pl
from jax.experimental.pallas import tpu as pltpu

H = 16
W = 16

C1 = 32          # conv1 out channels
C2 = 64          # conv2 out channels
C3 = 64          # conv3 out channels
FC_OUT = 128


def _audio_stream_kernel(bt,
                         xp_ref, w1_ref, b1_ref, w2_ref, b2_ref, w3_ref, b3_ref,
                         wf_ref, bf_ref, o_ref,
                         p2, im2, c2, m2, p3, im3):
    f32 = jnp.float32
    m1 = bt * 64                    # pool-1 windows == conv2 output rows

    # ---- conv1 (1->32, k3, pad 1) + bias + ReLU + 2x2 maxpool as ONE matmul:
    #      rows = pool windows, lanes = 4 window positions x 32 channels.
    a1 = jnp.dot(xp_ref[...], w1_ref[...], preferred_element_type=f32)  # (m1,128)
    a1 = jnp.maximum(a1 + b1_ref[...], 0.0)
    pooled1 = jnp.maximum(
        jnp.maximum(a1[:, 0:C1], a1[:, C1:2 * C1]),
        jnp.maximum(a1[:, 2 * C1:3 * C1], a1[:, 3 * C1:4 * C1]))        # (m1, 32)

    # ---- scatter into the zero-padded conv2 grid.  The pad ring supplies the
    #      conv zero padding; it is re-zeroed every step so each grid step is
    #      fully self-contained under "parallel" semantics (v7x dual-core).
    p2[...] = jnp.zeros(p2.shape, f32)
    p2[:, 1:9, 1:9, :] = pooled1.reshape(bt, 8, 8, C1)

    # ---- conv2 (32->64, k3, pad 1): fused im2col -> one (m1,288)@(288,64).
    for t in range(9):
        dy, dx = t // 3, t % 3
        im2[:, :, :, t * C1:(t + 1) * C1] = p2[:, dy:dy + 8, dx:dx + 8, :]
    a2 = jnp.dot(im2[...].reshape(m1, 9 * C1), w2_ref[...],
                 preferred_element_type=f32)
    a2 = jnp.maximum(a2 + b2_ref[...], 0.0)                             # (m1, 64)

    # ---- maxpool2 (2x2 / 2): whole-slab strided maxima, no per-image loops.
    c2[...] = a2.reshape(bt, 8, 8, C2)
    m2[...] = jnp.maximum(c2[:, pl.ds(0, 4, stride=2), :, :],
                          c2[:, pl.ds(1, 4, stride=2), :, :])           # (bt,4,8,64)
    pooled2 = jnp.maximum(m2[:, :, pl.ds(0, 4, stride=2), :],
                          m2[:, :, pl.ds(1, 4, stride=2), :])           # (bt,4,4,64)

    p3[...] = jnp.zeros(p3.shape, f32)
    p3[:, 1:5, 1:5, :] = pooled2

    # ---- conv3 (64->64, k3, pad 1): fused im2col -> one (bt*32,576)@(576,64).
    #      The x axis is padded to 8 rows so every reshape stays (8,128)-tile
    #      aligned; rows with x >= 4 are garbage and masked out below.
    for t in range(9):
        dy, dx = t // 3, t % 3
        im3[:, :, 0:4, t * C2:(t + 1) * C2] = p3[:, dy:dy + 4, dx:dx + 4, :]
    a3 = jnp.dot(im3[...].reshape(bt * 32, 9 * C2), w3_ref[...],
                 preferred_element_type=f32)
    a3 = jnp.maximum(a3 + b3_ref[...], 0.0)                             # (bt*32,64)

    # ---- global (adaptive 1x1) max pool: one masked reduction.  Masking the
    #      garbage x-rows to 0 is safe because the valid values are post-ReLU.
    v3 = a3.reshape(bt, 32, C3)
    xcol = lax.broadcasted_iota(jnp.int32, (bt, 32, C3), 1) % 8
    feat = jnp.max(jnp.where(xcol < 4, v3, 0.0), axis=1)                # (bt, 64)

    # ---- fc1 (64 -> 128): lane-dense output block.
    o_ref[...] = (jnp.dot(feat, wf_ref[...], preferred_element_type=f32)
                  + bf_ref[...])


def _full_spec(shape):
    return pl.BlockSpec(shape, lambda i, _n=len(shape): (0,) * _n)


def _im2col_pool_windows(x_img):
    """(N, 16, 16) -> (N*64, 16): the 4x4 input patch of every 2x2 pool window."""
    xpad = jnp.pad(x_img, ((0, 0), (1, 1), (1, 1)))
    cols = [xpad[:, py:py + 15:2, px:px + 15:2]
            for py in range(4) for px in range(4)]                      # (N,8,8) each
    n = x_img.shape[0]
    return jnp.stack(cols, axis=-1).reshape(n * 64, 16)


def _prep_weights(params):
    """Host-side (wrapper) weight re-layouts for the fused matmuls."""
    w1, b1, w2, b2, w3, b3, wf, bf = params
    # (16, 4*32) conv1-over-pool-window weight: W1p[py*4+px, q*32+c] =
    # w1[py-qy, px-qx, 0, c] for window position q=(qy,qx), zero otherwise.
    sel = np.zeros((16, 4, 9), np.float32)
    for qy in range(2):
        for qx in range(2):
            for dy in range(3):
                for dx in range(3):
                    sel[(qy + dy) * 4 + (qx + dx), qy * 2 + qx, dy * 3 + dx] = 1.0
    w1p = jnp.einsum("pqt,tc->pqc", jnp.asarray(sel),
                     w1.reshape(9, C1)).reshape(16, 4 * C1)
    b1p = jnp.tile(b1, (1, 4))                                          # (1, 128)
    w2r = w2.reshape(9 * C1, C2)                                        # (288, 64)
    w3r = w3.reshape(9 * C2, C3)                                        # (576, 64)
    return w1p, b1p, w2r, b2, w3r, b3, wf, bf


@functools.partial(jax.jit, static_argnames=("block_batch",))
def audio_stream_forward(x_nchw, params, block_batch=16):
    """x_nchw: (B, 1, 16, 16) float32 -> (B, 128) float32."""
    B = x_nchw.shape[0]
    x = x_nchw.reshape(B, H, W).astype(jnp.float32)

    if B <= block_batch:
        bt = B
    else:
        bt = max(8, (block_batch // 8) * 8)      # keep blocks (8,128)-friendly
    n_blocks = (B + bt - 1) // bt
    b_pad = n_blocks * bt
    if b_pad != B:
        x = jnp.pad(x, ((0, b_pad - B), (0, 0), (0, 0)))

    xp = _im2col_pool_windows(x)                                        # (b_pad*64, 16)
    w1p, b1p, w2r, b2, w3r, b3, wf, bf = _prep_weights(params)

    kernel = functools.partial(_audio_stream_kernel, bt)
    out = pl.pallas_call(
        kernel,
        out_shape=jax.ShapeDtypeStruct((b_pad, FC_OUT), jnp.float32),
        grid_spec=pltpu.PrefetchScalarGridSpec(
            num_scalar_prefetch=0,
            grid=(n_blocks,),
            in_specs=[
                pl.BlockSpec((bt * 64, 16), lambda i: (i, 0)),
                _full_spec(w1p.shape), _full_spec(b1p.shape),
                _full_spec(w2r.shape), _full_spec(b2.shape),
                _full_spec(w3r.shape), _full_spec(b3.shape),
                _full_spec(wf.shape), _full_spec(bf.shape),
            ],
            out_specs=pl.BlockSpec((bt, FC_OUT), lambda i: (i, 0)),
            scratch_shapes=[
                pltpu.VMEM((bt, 10, 10, C1), jnp.float32),    # p2 : padded conv2 grid
                pltpu.VMEM((bt, 8, 8, 9 * C1), jnp.float32),  # im2: conv2 im2col
                pltpu.VMEM((bt, 8, 8, C2), jnp.float32),      # c2 : conv2 output
                pltpu.VMEM((bt, 4, 8, C2), jnp.float32),      # m2 : pool2 row-max
                pltpu.VMEM((bt, 6, 6, C2), jnp.float32),      # p3 : padded conv3 grid
                pltpu.VMEM((bt, 4, 8, 9 * C2), jnp.float32),  # im3: conv3 im2col
            ],
        ),
        compiler_params=pltpu.CompilerParams(
            dimension_semantics=("parallel",)),
    )(xp, w1p, b1p, w2r, b2, w3r, b3, wf, bf)
    return out[:B]


def init_params(key):
    ks = jax.random.split(key, 8)

    def u(k, shape, fan_in):
        bound = 1.0 / np.sqrt(fan_in)
        return jax.random.uniform(k, shape, jnp.float32, -bound, bound)

    w1 = u(ks[0], (3, 3, 1, C1), 9 * 1)
    b1 = u(ks[1], (1, C1), 9 * 1)
    w2 = u(ks[2], (3, 3, C1, C2), 9 * C1)
    b2 = u(ks[3], (1, C2), 9 * C1)
    w3 = u(ks[4], (3, 3, C2, C3), 9 * C2)
    b3 = u(ks[5], (1, C3), 9 * C2)
    # TODO(synk): torch declares Linear(128, 128); see module header note.
    wf = u(ks[6], (C3, FC_OUT), C3)
    bf = u(ks[7], (1, FC_OUT), C3)
    return (w1, b1, w2, b2, w3, b3, wf, bf)


def reference_forward(x_nchw, params):
    """Pure-JAX reference (NHWC convs + reduce_window pools)."""
    w1, b1, w2, b2, w3, b3, wf, bf = params
    x = jnp.transpose(x_nchw, (0, 2, 3, 1)).astype(jnp.float32)

    def conv_relu(x, w, b):
        y = lax.conv_general_dilated(
            x, w, window_strides=(1, 1), padding="SAME",
            dimension_numbers=("NHWC", "HWIO", "NHWC"),
            precision=lax.Precision.HIGHEST)
        return jnp.maximum(y + b.reshape(1, 1, 1, -1), 0.0)

    def pool(x):
        return lax.reduce_window(x, -jnp.inf, lax.max,
                                 (1, 2, 2, 1), (1, 2, 2, 1), "VALID")

    y = pool(conv_relu(x, w1, b1))
    y = pool(conv_relu(y, w2, b2))
    y = conv_relu(y, w3, b3)
    y = jnp.max(y, axis=(1, 2))            # adaptive global max pool -> (B, 64)
    return jnp.dot(y, wf, precision=lax.Precision.HIGHEST) + bf


if __name__ == "__main__":
    key = jax.random.PRNGKey(0)
    kx, kp = jax.random.split(key)
    x = jax.random.normal(kx, (2, 1, H, W), dtype=jnp.float32)   # NCHW like PyTorch
    params = init_params(kp)

    out = jax.block_until_ready(audio_stream_forward(x, params))

    ref = reference_forward(x, params)
    np.testing.assert_allclose(np.asarray(out), np.asarray(ref),
                               rtol=2e-2, atol=2e-2)
    print("KERNEL_OK")
</pallas_src>

<mosaic_0001>
module attributes {stable_mosaic.version = 11 : i64} {
  func.func @_audio_stream_kernel(%arg0: i32, %arg1: memref<128x16xf32, #tpu.memory_space<vmem>>, %arg2: memref<16x128xf32, #tpu.memory_space<vmem>>, %arg3: memref<1x128xf32, #tpu.memory_space<vmem>>, %arg4: memref<288x64xf32, #tpu.memory_space<vmem>>, %arg5: memref<1x64xf32, #tpu.memory_space<vmem>>, %arg6: memref<576x64xf32, #tpu.memory_space<vmem>>, %arg7: memref<1x64xf32, #tpu.memory_space<vmem>>, %arg8: memref<64x128xf32, #tpu.memory_space<vmem>>, %arg9: memref<1x128xf32, #tpu.memory_space<vmem>>, %arg10: memref<2x128xf32, #tpu.memory_space<vmem>>, %arg11: memref<2x10x10x32xf32, #tpu.memory_space<vmem>>, %arg12: memref<2x8x8x288xf32, #tpu.memory_space<vmem>>, %arg13: memref<2x8x8x64xf32, #tpu.memory_space<vmem>>, %arg14: memref<2x4x8x64xf32, #tpu.memory_space<vmem>>, %arg15: memref<2x6x6x64xf32, #tpu.memory_space<vmem>>, %arg16: memref<2x4x8x576xf32, #tpu.memory_space<vmem>>) attributes {dimension_semantics = [#tpu.dimension_semantics<parallel>], iteration_bounds = array<i64: 1>, scalar_prefetch = 0 : i64, scratch_operands = 6 : i64, tpu.core_type = #tpu.core_type<tc>, window_params = [{transform_indices = @transform_0, window_bounds = array<i64: 128, 16>}, {pipeline_mode = #tpu.pipeline_mode<synchronous>, transform_indices = @transform_1, window_bounds = array<i64: 16, 128>}, {pipeline_mode = #tpu.pipeline_mode<synchronous>, transform_indices = @transform_2, window_bounds = array<i64: 1, 128>}, {pipeline_mode = #tpu.pipeline_mode<synchronous>, transform_indices = @transform_3, window_bounds = array<i64: 288, 64>}, {pipeline_mode = #tpu.pipeline_mode<synchronous>, transform_indices = @transform_4, window_bounds = array<i64: 1, 64>}, {pipeline_mode = #tpu.pipeline_mode<synchronous>, transform_indices = @transform_5, window_bounds = array<i64: 576, 64>}, {pipeline_mode = #tpu.pipeline_mode<synchronous>, transform_indices = @transform_6, window_bounds = array<i64: 1, 64>}, {pipeline_mode = #tpu.pipeline_mode<synchronous>, transform_indices = @transform_7, window_bounds = array<i64: 64, 128>}, {pipeline_mode = #tpu.pipeline_mode<synchronous>, transform_indices = @transform_8, window_bounds = array<i64: 1, 128>}, {transform_indices = @transform_9, window_bounds = array<i64: 2, 128>}]} {
    %c0 = arith.constant 0 : index
    %c0_0 = arith.constant 0 : index
    %0 = vector.load %arg1[%c0, %c0_0] : memref<128x16xf32, #tpu.memory_space<vmem>>, vector<128x16xf32>
    %c0_1 = arith.constant 0 : index
    %c0_2 = arith.constant 0 : index
    %1 = vector.load %arg2[%c0_1, %c0_2] : memref<16x128xf32, #tpu.memory_space<vmem>>, vector<16x128xf32>
    %cst = arith.constant dense<0.000000e+00> : vector<128x128xf32>
    %2 = tpu.matmul %0, %1, %cst {dimension_numbers = #tpu.dot_dimension_numbers<[1], [0], [0], [1], [0, 0, 1, 1], [], []>} : vector<128x16xf32>, vector<16x128xf32>, vector<128x128xf32> -> vector<128x128xf32>
    %c0_3 = arith.constant 0 : index
    %c0_4 = arith.constant 0 : index
    %3 = vector.load %arg3[%c0_3, %c0_4] : memref<1x128xf32, #tpu.memory_space<vmem>>, vector<1x128xf32>
    %4 = vector.broadcast %3 : vector<1x128xf32> to vector<128x128xf32>
    %5 = arith.addf %2, %4 : vector<128x128xf32>
    %cst_5 = arith.constant 0.000000e+00 : f32
    %6 = vector.broadcast %cst_5 : f32 to vector<128x128xf32>
    %7 = arith.maximumf %5, %6 : vector<128x128xf32>
    %8 = vector.extract_strided_slice %7 {offsets = [0, 0], sizes = [128, 32], strides = [1, 1]} : vector<128x128xf32> to vector<128x32xf32>
    %9 = vector.extract_strided_slice %7 {offsets = [0, 32], sizes = [128, 32], strides = [1, 1]} : vector<128x128xf32> to vector<128x32xf32>
    %10 = arith.maximumf %8, %9 : vector<128x32xf32>
    %11 = vector.extract_strided_slice %7 {offsets = [0, 64], sizes = [128, 32], strides = [1, 1]} : vector<128x128xf32> to vector<128x32xf32>
    %12 = vector.extract_strided_slice %7 {offsets = [0, 96], sizes = [128, 32], strides = [1, 1]} : vector<128x128xf32> to vector<128x32xf32>
    %13 = arith.maximumf %11, %12 : vector<128x32xf32>
    %14 = arith.maximumf %10, %13 : vector<128x32xf32>
    %cst_6 = arith.constant 0.000000e+00 : f32
    %15 = vector.broadcast %cst_6 : f32 to vector<2x10x10x32xf32>
    %c0_7 = arith.constant 0 : index
    %c0_8 = arith.constant 0 : index
    %c0_9 = arith.constant 0 : index
    %c0_10 = arith.constant 0 : index
    %16 = vector.load %arg11[%c0_7, %c0_8, %c0_9, %c0_10] : memref<2x10x10x32xf32, #tpu.memory_space<vmem>>, vector<2x10x10x32xf32>
    tpu.vector_store %arg11[%c0_7, %c0_8, %c0_9, %c0_10], %15 {strides = array<i32>} : memref<2x10x10x32xf32, #tpu.memory_space<vmem>>, vector<2x10x10x32xf32>,
    %17 = vector.shape_cast %14 : vector<128x32xf32> to vector<2x8x8x32xf32>
    %c0_11 = arith.constant 0 : index
    %c1 = arith.constant 1 : index
    %c1_12 = arith.constant 1 : index
    %c0_13 = arith.constant 0 : index
    %18 = vector.load %arg11[%c0_11, %c1, %c1_12, %c0_13] : memref<2x10x10x32xf32, #tpu.memory_space<vmem>>, vector<2x8x8x32xf32>
    tpu.vector_store %arg11[%c0_11, %c1, %c1_12, %c0_13], %17 {strides = array<i32>} : memref<2x10x10x32xf32, #tpu.memory_space<vmem>>, vector<2x8x8x32xf32>,
    %c0_14 = arith.constant 0 : index
    %c0_15 = arith.constant 0 : index
    %c0_16 = arith.constant 0 : index
    %c0_17 = arith.constant 0 : index
    %19 = vector.load %arg11[%c0_14, %c0_15, %c0_16, %c0_17] : memref<2x10x10x32xf32, #tpu.memory_space<vmem>>, vector<2x8x8x32xf32>
    %c0_18 = arith.constant 0 : index
    %c0_19 = arith.constant 0 : index
    %c0_20 = arith.constant 0 : index
    %c0_21 = arith.constant 0 : index
    %20 = vector.load %arg12[%c0_18, %c0_19, %c0_20, %c0_21] : memref<2x8x8x288xf32, #tpu.memory_space<vmem>>, vector<2x8x8x32xf32>
    tpu.vector_store %arg12[%c0_18, %c0_19, %c0_20, %c0_21], %19 {strides = array<i32>} : memref<2x8x8x288xf32, #tpu.memory_space<vmem>>, vector<2x8x8x32xf32>,
    %c0_22 = arith.constant 0 : index
    %c0_23 = arith.constant 0 : index
    %c1_24 = arith.constant 1 : index
    %c0_25 = arith.constant 0 : index
    %21 = vector.load %arg11[%c0_22, %c0_23, %c1_24, %c0_25] : memref<2x10x10x32xf32, #tpu.memory_space<vmem>>, vector<2x8x8x32xf32>
    %c0_26 = arith.constant 0 : index
    %c0_27 = arith.constant 0 : index
    %c0_28 = arith.constant 0 : index
    %c32 = arith.constant 32 : index
    %22 = vector.load %arg12[%c0_26, %c0_27, %c0_28, %c32] : memref<2x8x8x288xf32, #tpu.memory_space<vmem>>, vector<2x8x8x32xf32>
    tpu.vector_store %arg12[%c0_26, %c0_27, %c0_28, %c32], %21 {strides = array<i32>} : memref<2x8x8x288xf32, #tpu.memory_space<vmem>>, vector<2x8x8x32xf32>,
    %c0_29 = arith.constant 0 : index
    %c0_30 = arith.constant 0 : index
    %c2 = arith.constant 2 : index
    %c0_31 = arith.constant 0 : index
    %23 = vector.load %arg11[%c0_29, %c0_30, %c2, %c0_31] : memref<2x10x10x32xf32, #tpu.memory_space<vmem>>, vector<2x8x8x32xf32>
    %c0_32 = arith.constant 0 : index
    %c0_33 = arith.constant 0 : index
    %c0_34 = arith.constant 0 : index
    %c64 = arith.constant 64 : index
    %24 = vector.load %arg12[%c0_32, %c0_33, %c0_34, %c64] : memref<2x8x8x288xf32, #tpu.memory_space<vmem>>, vector<2x8x8x32xf32>
    tpu.vector_store %arg12[%c0_32, %c0_33, %c0_34, %c64], %23 {strides = array<i32>} : memref<2x8x8x288xf32, #tpu.memory_space<vmem>>, vector<2x8x8x32xf32>,
    %c0_35 = arith.constant 0 : index
    %c1_36 = arith.constant 1 : index
    %c0_37 = arith.constant 0 : index
    %c0_38 = arith.constant 0 : index
    %25 = vector.load %arg11[%c0_35, %c1_36, %c0_37, %c0_38] : memref<2x10x10x32xf32, #tpu.memory_space<vmem>>, vector<2x8x8x32xf32>
    %c0_39 = arith.constant 0 : index
    %c0_40 = arith.constant 0 : index
    %c0_41 = arith.constant 0 : index
    %c96 = arith.constant 96 : index
    %26 = vector.load %arg12[%c0_39, %c0_40, %c0_41, %c96] : memref<2x8x8x288xf32, #tpu.memory_space<vmem>>, vector<2x8x8x32xf32>
    tpu.vector_store %arg12[%c0_39, %c0_40, %c0_41, %c96], %25 {strides = array<i32>} : memref<2x8x8x288xf32, #tpu.memory_space<vmem>>, vector<2x8x8x32xf32>,
    %c0_42 = arith.constant 0 : index
    %c1_43 = arith.constant 1 : index
    %c1_44 = arith.constant 1 : index
    %c0_45 = arith.constant 0 : index
    %27 = vector.load %arg11[%c0_42, %c1_43, %c1_44, %c0_45] : memref<2x10x10x32xf32, #tpu.memory_space<vmem>>, vector<2x8x8x32xf32>
    %c0_46 = arith.constant 0 : index
    %c0_47 = arith.constant 0 : index
    %c0_48 = arith.constant 0 : index
    %c128 = arith.constant 128 : index
    %28 = vector.load %arg12[%c0_46, %c0_47, %c0_48, %c128] : memref<2x8x8x288xf32, #tpu.memory_space<vmem>>, vector<2x8x8x32xf32>
    tpu.vector_store %arg12[%c0_46, %c0_47, %c0_48, %c128], %27 {strides = array<i32>} : memref<2x8x8x288xf32, #tpu.memory_space<vmem>>, vector<2x8x8x32xf32>,
    %c0_49 = arith.constant 0 : index
    %c1_50 = arith.constant 1 : index
    %c2_51 = arith.constant 2 : index
    %c0_52 = arith.constant 0 : index
    %29 = vector.load %arg11[%c0_49, %c1_50, %c2_51, %c0_52] : memref<2x10x10x32xf32, #tpu.memory_space<vmem>>, vector<2x8x8x32xf32>
    %c0_53 = arith.constant 0 : index
    %c0_54 = arith.constant 0 : index
    %c0_55 = arith.constant 0 : index
    %c160 = arith.constant 160 : index
    %30 = vector.load %arg12[%c0_53, %c0_54, %c0_55, %c160] : memref<2x8x8x288xf32, #tpu.memory_space<vmem>>, vector<2x8x8x32xf32>
    tpu.vector_store %arg12[%c0_53, %c0_54, %c0_55, %c160], %29 {strides = array<i32>} : memref<2x8x8x288xf32, #tpu.memory_space<vmem>>, vector<2x8x8x32xf32>,
    %c0_56 = arith.constant 0 : index
    %c2_57 = arith.constant 2 : index
    %c0_58 = arith.constant 0 : index
    %c0_59 = arith.constant 0 : index
    %31 = vector.load %arg11[%c0_56, %c2_57, %c0_58, %c0_59] : memref<2x10x10x32xf32, #tpu.memory_space<vmem>>, vector<2x8x8x32xf32>
    %c0_60 = arith.constant 0 : index
    %c0_61 = arith.constant 0 : index
    %c0_62 = arith.constant 0 : index
    %c192 = arith.constant 192 : index
    %32 = vector.load %arg12[%c0_60, %c0_61, %c0_62, %c192] : memref<2x8x8x288xf32, #tpu.memory_space<vmem>>, vector<2x8x8x32xf32>
    tpu.vector_store %arg12[%c0_60, %c0_61, %c0_62, %c192], %31 {strides = array<i32>} : memref<2x8x8x288xf32, #tpu.memory_space<vmem>>, vector<2x8x8x32xf32>,
    %c0_63 = arith.constant 0 : index
    %c2_64 = arith.constant 2 : index
    %c1_65 = arith.constant 1 : index
    %c0_66 = arith.constant 0 : index
    %33 = vector.load %arg11[%c0_63, %c2_64, %c1_65, %c0_66] : memref<2x10x10x32xf32, #tpu.memory_space<vmem>>, vector<2x8x8x32xf32>
    %c0_67 = arith.constant 0 : index
    %c0_68 = arith.constant 0 : index
    %c0_69 = arith.constant 0 : index
    %c224 = arith.constant 224 : index
    %34 = vector.load %arg12[%c0_67, %c0_68, %c0_69, %c224] : memref<2x8x8x288xf32, #tpu.memory_space<vmem>>, vector<2x8x8x32xf32>
    tpu.vector_store %arg12[%c0_67, %c0_68, %c0_69, %c224], %33 {strides = array<i32>} : memref<2x8x8x288xf32, #tpu.memory_space<vmem>>, vector<2x8x8x32xf32>,
    %c0_70 = arith.constant 0 : index
    %c2_71 = arith.constant 2 : index
    %c2_72 = arith.constant 2 : index
    %c0_73 = arith.constant 0 : index
    %35 = vector.load %arg11[%c0_70, %c2_71, %c2_72, %c0_73] : memref<2x10x10x32xf32, #tpu.memory_space<vmem>>, vector<2x8x8x32xf32>
    %c0_74 = arith.constant 0 : index
    %c0_75 = arith.constant 0 : index
    %c0_76 = arith.constant 0 : index
    %c256 = arith.constant 256 : index
    %36 = vector.load %arg12[%c0_74, %c0_75, %c0_76, %c256] : memref<2x8x8x288xf32, #tpu.memory_space<vmem>>, vector<2x8x8x32xf32>
    tpu.vector_store %arg12[%c0_74, %c0_75, %c0_76, %c256], %35 {strides = array<i32>} : memref<2x8x8x288xf32, #tpu.memory_space<vmem>>, vector<2x8x8x32xf32>,
    %c0_77 = arith.constant 0 : index
    %c0_78 = arith.constant 0 : index
    %c0_79 = arith.constant 0 : index
    %c0_80 = arith.constant 0 : index
    %37 = vector.load %arg12[%c0_77, %c0_78, %c0_79, %c0_80] : memref<2x8x8x288xf32, #tpu.memory_space<vmem>>, vector<2x8x8x288xf32>
    %38 = vector.shape_cast %37 : vector<2x8x8x288xf32> to vector<128x288xf32>
    %c0_81 = arith.constant 0 : index
    %c0_82 = arith.constant 0 : index
    %39 = vector.load %arg4[%c0_81, %c0_82] : memref<288x64xf32, #tpu.memory_space<vmem>>, vector<288x64xf32>
    %cst_83 = arith.constant dense<0.000000e+00> : vector<128x64xf32>
    %40 = tpu.matmul %38, %39, %cst_83 {dimension_numbers = #tpu.dot_dimension_numbers<[1], [0], [0], [1], [0, 0, 1, 1], [], []>} : vector<128x288xf32>, vector<288x64xf32>, vector<128x64xf32> -> vector<128x64xf32>
    %c0_84 = arith.constant 0 : index
    %c0_85 = arith.constant 0 : index
    %41 = vector.load %arg5[%c0_84, %c0_85] : memref<1x64xf32, #tpu.memory_space<vmem>>, vector<1x64xf32>
    %42 = vector.broadcast %41 : vector<1x64xf32> to vector<128x64xf32>
    %43 = arith.addf %40, %42 : vector<128x64xf32>
    %cst_86 = arith.constant 0.000000e+00 : f32
    %44 = vector.broadcast %cst_86 : f32 to vector<128x64xf32>
    %45 = arith.maximumf %43, %44 : vector<128x64xf32>
    %46 = vector.shape_cast %45 : vector<128x64xf32> to vector<2x8x8x64xf32>
    %c0_87 = arith.constant 0 : index
    %c0_88 = arith.constant 0 : index
    %c0_89 = arith.constant 0 : index
    %c0_90 = arith.constant 0 : index
    %47 = vector.load %arg13[%c0_87, %c0_88, %c0_89, %c0_90] : memref<2x8x8x64xf32, #tpu.memory_space<vmem>>, vector<2x8x8x64xf32>
    tpu.vector_store %arg13[%c0_87, %c0_88, %c0_89, %c0_90], %46 {strides = array<i32>} : memref<2x8x8x64xf32, #tpu.memory_space<vmem>>, vector<2x8x8x64xf32>,
    %c0_91 = arith.constant 0 : index
    %c0_92 = arith.constant 0 : index
    %c0_93 = arith.constant 0 : index
    %c0_94 = arith.constant 0 : index
    %48 = tpu.strided_load %arg13[%c0_91, %c0_92, %c0_93, %c0_94] {strides = array<i32: 1, 2, 1, 1>} : memref<2x8x8x64xf32, #tpu.memory_space<vmem>>, vector<2x4x8x64xf32>
    %c0_95 = arith.constant 0 : index
    %c1_96 = arith.constant 1 : index
    %c0_97 = arith.constant 0 : index
    %c0_98 = arith.constant 0 : index
    %49 = tpu.strided_load %arg13[%c0_95, %c1_96, %c0_97, %c0_98] {strides = array<i32: 1, 2, 1, 1>} : memref<2x8x8x64xf32, #tpu.memory_space<vmem>>, vector<2x4x8x64xf32>
    %50 = arith.maximumf %48, %49 : vector<2x4x8x64xf32>
    %c0_99 = arith.constant 0 : index
    %c0_100 = arith.constant 0 : index
    %c0_101 = arith.constant 0 : index
    %c0_102 = arith.constant 0 : index
    %51 = vector.load %arg14[%c0_99, %c0_100, %c0_101, %c0_102] : memref<2x4x8x64xf32, #tpu.memory_space<vmem>>, vector<2x4x8x64xf32>
    tpu.vector_store %arg14[%c0_99, %c0_100, %c0_101, %c0_102], %50 {strides = array<i32>} : memref<2x4x8x64xf32, #tpu.memory_space<vmem>>, vector<2x4x8x64xf32>,
    %c0_103 = arith.constant 0 : index
    %c0_104 = arith.constant 0 : index
    %c0_105 = arith.constant 0 : index
    %c0_106 = arith.constant 0 : index
    %52 = tpu.strided_load %arg14[%c0_103, %c0_104, %c0_105, %c0_106] {strides = array<i32: 1, 1, 2, 1>} : memref<2x4x8x64xf32, #tpu.memory_space<vmem>>, vector<2x4x4x64xf32>
    %c0_107 = arith.constant 0 : index
    %c0_108 = arith.constant 0 : index
    %c1_109 = arith.constant 1 : index
    %c0_110 = arith.constant 0 : index
    %53 = tpu.strided_load %arg14[%c0_107, %c0_108, %c1_109, %c0_110] {strides = array<i32: 1, 1, 2, 1>} : memref<2x4x8x64xf32, #tpu.memory_space<vmem>>, vector<2x4x4x64xf32>
    %54 = arith.maximumf %52, %53 : vector<2x4x4x64xf32>
    %cst_111 = arith.constant 0.000000e+00 : f32
    %55 = vector.broadcast %cst_111 : f32 to vector<2x6x6x64xf32>
    %c0_112 = arith.constant 0 : index
    %c0_113 = arith.constant 0 : index
    %c0_114 = arith.constant 0 : index
    %c0_115 = arith.constant 0 : index
    %56 = vector.load %arg15[%c0_112, %c0_113, %c0_114, %c0_115] : memref<2x6x6x64xf32, #tpu.memory_space<vmem>>, vector<2x6x6x64xf32>
    tpu.vector_store %arg15[%c0_112, %c0_113, %c0_114, %c0_115], %55 {strides = array<i32>} : memref<2x6x6x64xf32, #tpu.memory_space<vmem>>, vector<2x6x6x64xf32>,
    %c0_116 = arith.constant 0 : index
    %c1_117 = arith.constant 1 : index
    %c1_118 = arith.constant 1 : index
    %c0_119 = arith.constant 0 : index
    %57 = vector.load %arg15[%c0_116, %c1_117, %c1_118, %c0_119] : memref<2x6x6x64xf32, #tpu.memory_space<vmem>>, vector<2x4x4x64xf32>
    tpu.vector_store %arg15[%c0_116, %c1_117, %c1_118, %c0_119], %54 {strides = array<i32>} : memref<2x6x6x64xf32, #tpu.memory_space<vmem>>, vector<2x4x4x64xf32>,
    %c0_120 = arith.constant 0 : index
    %c0_121 = arith.constant 0 : index
    %c0_122 = arith.constant 0 : index
    %c0_123 = arith.constant 0 : index
    %58 = vector.load %arg15[%c0_120, %c0_121, %c0_122, %c0_123] : memref<2x6x6x64xf32, #tpu.memory_space<vmem>>, vector<2x4x4x64xf32>
    %c0_124 = arith.constant 0 : index
    %c0_125 = arith.constant 0 : index
    %c0_126 = arith.constant 0 : index
    %c0_127 = arith.constant 0 : index
    %59 = vector.load %arg16[%c0_124, %c0_125, %c0_126, %c0_127] : memref<2x4x8x576xf32, #tpu.memory_space<vmem>>, vector<2x4x4x64xf32>
    tpu.vector_store %arg16[%c0_124, %c0_125, %c0_126, %c0_127], %58 {strides = array<i32>} : memref<2x4x8x576xf32, #tpu.memory_space<vmem>>, vector<2x4x4x64xf32>,
    %c0_128 = arith.constant 0 : index
    %c0_129 = arith.constant 0 : index
    %c1_130 = arith.constant 1 : index
    %c0_131 = arith.constant 0 : index
    %60 = vector.load %arg15[%c0_128, %c0_129, %c1_130, %c0_131] : memref<2x6x6x64xf32, #tpu.memory_space<vmem>>, vector<2x4x4x64xf32>
    %c0_132 = arith.constant 0 : index
    %c0_133 = arith.constant 0 : index
    %c0_134 = arith.constant 0 : index
    %c64_135 = arith.constant 64 : index
    %61 = vector.load %arg16[%c0_132, %c0_133, %c0_134, %c64_135] : memref<2x4x8x576xf32, #tpu.memory_space<vmem>>, vector<2x4x4x64xf32>
    tpu.vector_store %arg16[%c0_132, %c0_133, %c0_134, %c64_135], %60 {strides = array<i32>} : memref<2x4x8x576xf32, #tpu.memory_space<vmem>>, vector<2x4x4x64xf32>,
    %c0_136 = arith.constant 0 : index
    %c0_137 = arith.constant 0 : index
    %c2_138 = arith.constant 2 : index
    %c0_139 = arith.constant 0 : index
    %62 = vector.load %arg15[%c0_136, %c0_137, %c2_138, %c0_139] : memref<2x6x6x64xf32, #tpu.memory_space<vmem>>, vector<2x4x4x64xf32>
    %c0_140 = arith.constant 0 : index
    %c0_141 = arith.constant 0 : index
    %c0_142 = arith.constant 0 : index
    %c128_143 = arith.constant 128 : index
    %63 = vector.load %arg16[%c0_140, %c0_141, %c0_142, %c128_143] : memref<2x4x8x576xf32, #tpu.memory_space<vmem>>, vector<2x4x4x64xf32>
    tpu.vector_store %arg16[%c0_140, %c0_141, %c0_142, %c128_143], %62 {strides = array<i32>} : memref<2x4x8x576xf32, #tpu.memory_space<vmem>>, vector<2x4x4x64xf32>,
    %c0_144 = arith.constant 0 : index
    %c1_145 = arith.constant 1 : index
    %c0_146 = arith.constant 0 : index
    %c0_147 = arith.constant 0 : index
    %64 = vector.load %arg15[%c0_144, %c1_145, %c0_146, %c0_147] : memref<2x6x6x64xf32, #tpu.memory_space<vmem>>, vector<2x4x4x64xf32>
    %c0_148 = arith.constant 0 : index
    %c0_149 = arith.constant 0 : index
    %c0_150 = arith.constant 0 : index
    %c192_151 = arith.constant 192 : index
    %65 = vector.load %arg16[%c0_148, %c0_149, %c0_150, %c192_151] : memref<2x4x8x576xf32, #tpu.memory_space<vmem>>, vector<2x4x4x64xf32>
    tpu.vector_store %arg16[%c0_148, %c0_149, %c0_150, %c192_151], %64 {strides = array<i32>} : memref<2x4x8x576xf32, #tpu.memory_space<vmem>>, vector<2x4x4x64xf32>,
    %c0_152 = arith.constant 0 : index
    %c1_153 = arith.constant 1 : index
    %c1_154 = arith.constant 1 : index
    %c0_155 = arith.constant 0 : index
    %66 = vector.load %arg15[%c0_152, %c1_153, %c1_154, %c0_155] : memref<2x6x6x64xf32, #tpu.memory_space<vmem>>, vector<2x4x4x64xf32>
    %c0_156 = arith.constant 0 : index
    %c0_157 = arith.constant 0 : index
    %c0_158 = arith.constant 0 : index
    %c256_159 = arith.constant 256 : index
    %67 = vector.load %arg16[%c0_156, %c0_157, %c0_158, %c256_159] : memref<2x4x8x576xf32, #tpu.memory_space<vmem>>, vector<2x4x4x64xf32>
    tpu.vector_store %arg16[%c0_156, %c0_157, %c0_158, %c256_159], %66 {strides = array<i32>} : memref<2x4x8x576xf32, #tpu.memory_space<vmem>>, vector<2x4x4x64xf32>,
    %c0_160 = arith.constant 0 : index
    %c1_161 = arith.constant 1 : index
    %c2_162 = arith.constant 2 : index
    %c0_163 = arith.constant 0 : index
    %68 = vector.load %arg15[%c0_160, %c1_161, %c2_162, %c0_163] : memref<2x6x6x64xf32, #tpu.memory_space<vmem>>, vector<2x4x4x64xf32>
    %c0_164 = arith.constant 0 : index
    %c0_165 = arith.constant 0 : index
    %c0_166 = arith.constant 0 : index
    %c320 = arith.constant 320 : index
    %69 = vector.load %arg16[%c0_164, %c0_165, %c0_166, %c320] : memref<2x4x8x576xf32, #tpu.memory_space<vmem>>, vector<2x4x4x64xf32>
    tpu.vector_store %arg16[%c0_164, %c0_165, %c0_166, %c320], %68 {strides = array<i32>} : memref<2x4x8x576xf32, #tpu.memory_space<vmem>>, vector<2x4x4x64xf32>,
    %c0_167 = arith.constant 0 : index
    %c2_168 = arith.constant 2 : index
    %c0_169 = arith.constant 0 : index
    %c0_170 = arith.constant 0 : index
    %70 = vector.load %arg15[%c0_167, %c2_168, %c0_169, %c0_170] : memref<2x6x6x64xf32, #tpu.memory_space<vmem>>, vector<2x4x4x64xf32>
    %c0_171 = arith.constant 0 : index
    %c0_172 = arith.constant 0 : index
    %c0_173 = arith.constant 0 : index
    %c384 = arith.constant 384 : index
    %71 = vector.load %arg16[%c0_171, %c0_172, %c0_173, %c384] : memref<2x4x8x576xf32, #tpu.memory_space<vmem>>, vector<2x4x4x64xf32>
    tpu.vector_store %arg16[%c0_171, %c0_172, %c0_173, %c384], %70 {strides = array<i32>} : memref<2x4x8x576xf32, #tpu.memory_space<vmem>>, vector<2x4x4x64xf32>,
    %c0_174 = arith.constant 0 : index
    %c2_175 = arith.constant 2 : index
    %c1_176 = arith.constant 1 : index
    %c0_177 = arith.constant 0 : index
    %72 = vector.load %arg15[%c0_174, %c2_175, %c1_176, %c0_177] : memref<2x6x6x64xf32, #tpu.memory_space<vmem>>, vector<2x4x4x64xf32>
    %c0_178 = arith.constant 0 : index
    %c0_179 = arith.constant 0 : index
    %c0_180 = arith.constant 0 : index
    %c448 = arith.constant 448 : index
    %73 = vector.load %arg16[%c0_178, %c0_179, %c0_180, %c448] : memref<2x4x8x576xf32, #tpu.memory_space<vmem>>, vector<2x4x4x64xf32>
    tpu.vector_store %arg16[%c0_178, %c0_179, %c0_180, %c448], %72 {strides = array<i32>} : memref<2x4x8x576xf32, #tpu.memory_space<vmem>>, vector<2x4x4x64xf32>,
    %c0_181 = arith.constant 0 : index
    %c2_182 = arith.constant 2 : index
    %c2_183 = arith.constant 2 : index
    %c0_184 = arith.constant 0 : index
    %74 = vector.load %arg15[%c0_181, %c2_182, %c2_183, %c0_184] : memref<2x6x6x64xf32, #tpu.memory_space<vmem>>, vector<2x4x4x64xf32>
    %c0_185 = arith.constant 0 : index
    %c0_186 = arith.constant 0 : index
    %c0_187 = arith.constant 0 : index
    %c512 = arith.constant 512 : index
    %75 = vector.load %arg16[%c0_185, %c0_186, %c0_187, %c512] : memref<2x4x8x576xf32, #tpu.memory_space<vmem>>, vector<2x4x4x64xf32>
    tpu.vector_store %arg16[%c0_185, %c0_186, %c0_187, %c512], %74 {strides = array<i32>} : memref<2x4x8x576xf32, #tpu.memory_space<vmem>>, vector<2x4x4x64xf32>,
    %c0_188 = arith.constant 0 : index
    %c0_189 = arith.constant 0 : index
    %c0_190 = arith.constant 0 : index
    %c0_191 = arith.constant 0 : index
    %76 = vector.load %arg16[%c0_188, %c0_189, %c0_190, %c0_191] : memref<2x4x8x576xf32, #tpu.memory_space<vmem>>, vector<2x4x8x576xf32>
    %77 = vector.shape_cast %76 : vector<2x4x8x576xf32> to vector<64x576xf32>
    %c0_192 = arith.constant 0 : index
    %c0_193 = arith.constant 0 : index
    %78 = vector.load %arg6[%c0_192, %c0_193] : memref<576x64xf32, #tpu.memory_space<vmem>>, vector<576x64xf32>
    %cst_194 = arith.constant dense<0.000000e+00> : vector<64x64xf32>
    %79 = tpu.matmul %77, %78, %cst_194 {dimension_numbers = #tpu.dot_dimension_numbers<[1], [0], [0], [1], [0, 0, 1, 1], [], []>} : vector<64x576xf32>, vector<576x64xf32>, vector<64x64xf32> -> vector<64x64xf32>
    %c0_195 = arith.constant 0 : index
    %c0_196 = arith.constant 0 : index
    %80 = vector.load %arg7[%c0_195, %c0_196] : memref<1x64xf32, #tpu.memory_space<vmem>>, vector<1x64xf32>
    %81 = vector.broadcast %80 : vector<1x64xf32> to vector<64x64xf32>
    %82 = arith.addf %79, %81 : vector<64x64xf32>
    %cst_197 = arith.constant 0.000000e+00 : f32
    %83 = vector.broadcast %cst_197 : f32 to vector<64x64xf32>
    %84 = arith.maximumf %82, %83 : vector<64x64xf32>
    %85 = vector.shape_cast %84 : vector<64x64xf32> to vector<2x32x64xf32>
    %86 = tpu.iota {dimensions = array<i32: 1>} : vector<2x32x64xi32>
    %c8_i32 = arith.constant 8 : i32
    %c0_i32 = arith.constant 0 : i32
    %87 = arith.cmpi eq, %c8_i32, %c0_i32 : i32
    %c1_i32 = arith.constant 1 : i32
    %88 = arith.select %87, %c1_i32, %c8_i32 : i32
    %89 = vector.broadcast %88 : i32 to vector<2x32x64xi32>
    %90 = arith.remsi %86, %89 : vector<2x32x64xi32>
    %c0_i32_198 = arith.constant 0 : i32
    %91 = vector.broadcast %c0_i32_198 : i32 to vector<2x32x64xi32>
    %92 = arith.cmpi ne, %90, %91 : vector<2x32x64xi32>
    %c0_i32_199 = arith.constant 0 : i32
    %93 = vector.broadcast %c0_i32_199 : i32 to vector<2x32x64xi32>
    %94 = arith.cmpi slt, %90, %93 : vector<2x32x64xi32>
    %c0_i32_200 = arith.constant 0 : i32
    %95 = arith.cmpi slt, %88, %c0_i32_200 : i32
    %96 = vector.broadcast %95 : i1 to vector<2x32x64xi1>
    %97 = vector.broadcast %96 : vector<2x32x64xi1> to vector<2x32x64xi1>
    %98 = arith.xori %94, %97 : vector<2x32x64xi1>
    %99 = arith.andi %98, %92 : vector<2x32x64xi1>
    %100 = vector.broadcast %88 : i32 to vector<2x32x64xi32>
    %101 = arith.addi %90, %100 : vector<2x32x64xi32>
    %102 = arith.select %99, %101, %90 : vector<2x32x64xi1>, vector<2x32x64xi32>
    %c4_i32 = arith.constant 4 : i32
    %103 = vector.broadcast %c4_i32 : i32 to vector<2x32x64xi32>
    %104 = arith.cmpi slt, %102, %103 : vector<2x32x64xi32>
    %cst_201 = arith.constant 0.000000e+00 : f32
    %105 = vector.broadcast %cst_201 : f32 to vector<2x32x64xf32>
    %106 = arith.select %104, %85, %105 : vector<2x32x64xi1>, vector<2x32x64xf32>
    %cst_202 = arith.constant dense<0xFF800000> : vector<2x64xf32>
    %107 = vector.multi_reduction <maximumf>, %106, %cst_202 [1] : vector<2x32x64xf32> to vector<2x64xf32>
    %c0_203 = arith.constant 0 : index
    %c0_204 = arith.constant 0 : index
    %108 = vector.load %arg8[%c0_203, %c0_204] : memref<64x128xf32, #tpu.memory_space<vmem>>, vector<64x128xf32>
    %cst_205 = arith.constant dense<0.000000e+00> : vector<2x128xf32>
    %109 = tpu.matmul %107, %108, %cst_205 {dimension_numbers = #tpu.dot_dimension_numbers<[1], [0], [0], [1], [0, 0, 1, 1], [], []>} : vector<2x64xf32>, vector<64x128xf32>, vector<2x128xf32> -> vector<2x128xf32>
    %c0_206 = arith.constant 0 : index
    %c0_207 = arith.constant 0 : index
    %110 = vector.load %arg9[%c0_206, %c0_207] : memref<1x128xf32, #tpu.memory_space<vmem>>, vector<1x128xf32>
    %111 = vector.broadcast %110 : vector<1x128xf32> to vector<2x128xf32>
    %112 = arith.addf %109, %111 : vector<2x128xf32>
    %c0_208 = arith.constant 0 : index
    %c0_209 = arith.constant 0 : index
    %113 = vector.load %arg10[%c0_208, %c0_209] : memref<2x128xf32, #tpu.memory_space<vmem>>, vector<2x128xf32>
    tpu.vector_store %arg10[%c0_208, %c0_209], %112 {strides = array<i32>} : memref<2x128xf32, #tpu.memory_space<vmem>>, vector<2x128xf32>,
    return
  }
  func.func @transform_0(%arg0: i32) -> (i32, i32) {
    %c0_i32 = arith.constant 0 : i32
    %c0_i32_0 = arith.constant 0 : i32
    return %arg0, %c0_i32 : i32, i32
  }
  func.func @transform_1(%arg0: i32) -> (i32, i32) {
    %c0_i32 = arith.constant 0 : i32
    %c0_i32_0 = arith.constant 0 : i32
    %c0_i32_1 = arith.constant 0 : i32
    return %c0_i32, %c0_i32_0 : i32, i32
  }
  func.func @transform_2(%arg0: i32) -> (i32, i32) {
    %c0_i32 = arith.constant 0 : i32
    %c0_i32_0 = arith.constant 0 : i32
    %c0_i32_1 = arith.constant 0 : i32
    return %c0_i32, %c0_i32_0 : i32, i32
  }
  func.func @transform_3(%arg0: i32) -> (i32, i32) {
    %c0_i32 = arith.constant 0 : i32
    %c0_i32_0 = arith.constant 0 : i32
    %c0_i32_1 = arith.constant 0 : i32
    return %c0_i32, %c0_i32_0 : i32, i32
  }
  func.func @transform_4(%arg0: i32) -> (i32, i32) {
    %c0_i32 = arith.constant 0 : i32
    %c0_i32_0 = arith.constant 0 : i32
    %c0_i32_1 = arith.constant 0 : i32
    return %c0_i32, %c0_i32_0 : i32, i32
  }
  func.func @transform_5(%arg0: i32) -> (i32, i32) {
    %c0_i32 = arith.constant 0 : i32
    %c0_i32_0 = arith.constant 0 : i32
    %c0_i32_1 = arith.constant 0 : i32
    return %c0_i32, %c0_i32_0 : i32, i32
  }
  func.func @transform_6(%arg0: i32) -> (i32, i32) {
    %c0_i32 = arith.constant 0 : i32
    %c0_i32_0 = arith.constant 0 : i32
    %c0_i32_1 = arith.constant 0 : i32
    return %c0_i32, %c0_i32_0 : i32, i32
  }
  func.func @transform_7(%arg0: i32) -> (i32, i32) {
    %c0_i32 = arith.constant 0 : i32
    %c0_i32_0 = arith.constant 0 : i32
    %c0_i32_1 = arith.constant 0 : i32
    return %c0_i32, %c0_i32_0 : i32, i32
  }
  func.func @transform_8(%arg0: i32) -> (i32, i32) {
    %c0_i32 = arith.constant 0 : i32
    %c0_i32_0 = arith.constant 0 : i32
    %c0_i32_1 = arith.constant 0 : i32
    return %c0_i32, %c0_i32_0 : i32, i32
  }
  func.func @transform_9(%arg0: i32) -> (i32, i32) {
    %c0_i32 = arith.constant 0 : i32
    %c0_i32_0 = arith.constant 0 : i32
    return %arg0, %c0_i32 : i32, i32
  }
}

</mosaic_0001>

<bundles_post_ra>
// kernel: audio_stream_forward.1
= control target key start
LH: loop header
LB: loop body
LE: loop exit
PB: predicated region body
PF: predicated region fallthrough
CT: control target
= control target key end

     0   :  { %vm55_vm0 = vcmask 130048   ;;  %s3868_s0 = inlined_call_operand.vmem [shape: f32[128,16], index: 0, kind: input, shape index: {}]   ;;  %s3869_s1 = inlined_call_operand.vmem [shape: f32[16,128], index: 1, kind: input, shape index: {}]   ;;  %s3870_s2 = inlined_call_operand.vmem [shape: f32[1,128], index: 2, kind: input, shape index: {}]   ;;  %s3871_s3 = inlined_call_operand.vmem [shape: f32[288,64], index: 3, kind: input, shape index: {}]   ;;  %s3872_s4 = inlined_call_operand.vmem [shape: f32[1,64], index: 4, kind: input, shape index: {}]   ;;  %s3873_s5 = inlined_call_operand.vmem [shape: f32[576,64], index: 5, kind: input, shape index: {}]   ;;  %s3874_s6 = inlined_call_operand.vmem [shape: f32[1,64], index: 6, kind: input, shape index: {}]   ;;  %s3875_s7 = inlined_call_operand.vmem [shape: f32[64,128], index: 7, kind: input, shape index: {}]   ;;  %s3876_s8 = inlined_call_operand.vmem [shape: f32[1,128], index: 8, kind: input, shape index: {}]   ;;  %s3877_s9 = inlined_call_operand.hbm [shape: f32[2,128], index: 9, kind: output, shape index: {}]  }
   0x1   :  { %v50_v0 = vld [vmem:[%s3869_s1 + $0x8] sm:$0xff]  ;;  %v49_v1 = vld [vmem:[%s3869_s1] sm:$0xff] }
   0x2   :  { %118 = vmatpush.msra.mxu0 %v50_v0  ;;  %2353 = vmatpush.msra.mxu1 %v50_v0  ;;  %v33_v2 = vld [vmem:[%s3868_s0] sm:$0xff] }
   0x3   :  { %v45_v3 = vld [vmem:[%s3868_s0 + $0x60] sm:$0xff] }
   0x4   :  { %119 = vmatpush.msra.mxu0 %v49_v1  ;;  %2354 = vmatpush.msra.mxu1 %v49_v1 }
   0x5   :  { %2312 = vmatmul.msk.f32.vlgmr.msra.gmra.mxu0 %vm55_vm0, %v33_v2  ;;  %2324 = vmatmul.msk.f32.vlgmr.msra.gmra.mxu1 %vm55_vm0, %v45_v3 }
   0x6   :  { %14 = vsyncpa [#allocation9], 0  ;;  %v34_v4 = vld [vmem:[%s3868_s0 + $0x8] sm:$0xff]  ;;  %v35_v6 = vld [vmem:[%s3868_s0 + $0x10] sm:$0xff]  ;;  %vm345_vm1 = vcmask 261120   ;;  %vm347_vm2 = vcmask 254976  }
   0x7   :  { %v46_v5 = vld [vmem:[%s3868_s0 + $0x68] sm:$0xff]  ;;  %v47_v7 = vld [vmem:[%s3868_s0 + $0x70] sm:$0xff]  ;;  %v36_v8 = vld [vmem:[%s3868_s0 + $0x18] sm:$0xff]  ;;  %v2390_v14 = vmov 0.0   ;;  %s2391_s17 = smov 32   ;;  %s2392_s1 = smov 64  }
   0x8   :  { %v48_v9 = vld [vmem:[%s3868_s0 + $0x78] sm:$0xff]  ;;  %v37_v10 = vld [vmem:[%s3868_s0 + $0x20] sm:$0xff]  ;;  %v38_v11 = vld [vmem:[%s3868_s0 + $0x28] sm:$0xff]  ;;  %346 = vst.msk [vmem:[#allocation2] sm:$0xff] %vm345_vm1, %v2390_v14  ;;  %s2393_s22 = smov 96   ;;  %vm516_vm3 = vcmask 523520  }
   0x9   :  { %v39_v12 = vld [vmem:[%s3868_s0 + $0x30] sm:$0xff]  ;;  %v40_v13 = vld [vmem:[%s3868_s0 + $0x38] sm:$0xff]  ;;  %348 = vst.msk [vmem:[#allocation2 + $0x8] sm:$0x3] %vm347_vm2, %v2390_v14  ;;  %v41_v15 = vld [vmem:[%s3868_s0 + $0x40] sm:$0xff]  ;;  %vm613_vm4 = vcmask 785920  }
   0xa   :  { %349 = vst.msk [vmem:[#allocation2 + $0x10] sm:$0xff] %vm345_vm1, %v2390_v14  ;;  %v42_v18 = vld [vmem:[%s3868_s0 + $0x48] sm:$0xff]  ;;  %v43_v19 = vld [vmem:[%s3868_s0 + $0x50] sm:$0xff]  ;;  %v44_v21 = vld [vmem:[%s3868_s0 + $0x58] sm:$0xff]  ;;  %vm710_vm5 = vcmask 1048320   ;;  %vm1427_vm6 = vcmask 523264  }
   0xb   :  { %350 = vst.msk [vmem:[#allocation2 + $0x18] sm:$0x3] %vm347_vm2, %v2390_v14  ;;  %v2604_v25 = vld [vmem:[%s3870_s2] ss:$0 sm:$0xff]  ;;  %vm1516_vm7 = vcmask 521216   ;;  %vm1530_vm8 = vcmask 519168  }
   0xc   :  { %351 = vst.msk [vmem:[#allocation2 + $0x20] sm:$0xff] %vm345_vm1, %v2390_v14  ;;  %vm1595_vm9 = vcmask 1043968   ;;  %vm2271_vm14 = vcmask 1041409   ;;  %s2394_s21 = smov [#allocation8]   ;;  %s2303_s25 = sshll.u32 %s3877_s9, 4  ;;  %s2304_s25 = int_to_ptr.hbm [resolvable:$true] %s2303_s25 }
   0xd   :  { %2313 = vmatmul.msk.f32.gmra.mxu0 %vm55_vm0, %v34_v4  ;;  %2325 = vmatmul.msk.f32.gmra.mxu1 %vm55_vm0, %v46_v5  ;;  %352 = vst.msk [vmem:[#allocation2 + $0x28] sm:$0x3] %vm347_vm2, %v2390_v14  ;;  %s2301_s23 = sshll.u32 %s2394_s21, 4  ;;  %s2302_s23 = int_to_ptr.vmem [resolvable:$true] %s2301_s23 }
   0xe   :  { %353 = vst.msk [vmem:[#allocation2 + $0x30] sm:$0xff] %vm345_vm1, %v2390_v14 }
   0xf   :  { %354 = vst.msk [vmem:[#allocation2 + $0x38] sm:$0x3] %vm347_vm2, %v2390_v14  ;;  %v404_v63 = vld [vmem:[#allocation2] sm:$0xff] }
  0x10   :  { %v436_v16 = vld [vmem:[#allocation2 + $0x1] sm:$0xff]  ;;  %355 = vst.msk [vmem:[#allocation2 + $0x40] sm:$0xff] %vm345_vm1, %v2390_v14 }
  0x11   :  { %v533_v17 = vld [vmem:[#allocation2 + $0x2] sm:$0xff]  ;;  %468 = vrot.lane.b32.xlu0 %v436_v16, %s2391_s17  ;;  %356 = vst.msk [vmem:[#allocation2 + $0x48] sm:$0x3] %vm347_vm2, %v2390_v14 }
  0x12   :  { %565 = vrot.lane.b32.xlu1 %v533_v17, %s2392_s1  ;;  %357 = vst.msk [vmem:[#allocation2 + $0x50] sm:$0xff] %vm345_vm1, %v2390_v14 }
  0x13   :  { %358 = vst.msk [vmem:[#allocation2 + $0x58] sm:$0x3] %vm347_vm2, %v2390_v14 }
  0x14   :  { %359 = vst.msk [vmem:[#allocation2 + $0x60] sm:$0xff] %vm345_vm1, %v2390_v14 }
  0x15   :  { %2314 = vmatmul.msk.f32.gmra.mxu0 %vm55_vm0, %v35_v6  ;;  %2326 = vmatmul.msk.f32.gmra.mxu1 %vm55_vm0, %v47_v7  ;;  %360 = vst.msk [vmem:[#allocation2 + $0x68] sm:$0x3] %vm347_vm2, %v2390_v14 }
  0x16   :  { %361 = vst.msk [vmem:[#allocation2 + $0x70] sm:$0xff] %vm345_vm1, %v2390_v14 }
  0x17   :  { %362 = vst.msk [vmem:[#allocation2 + $0x78] sm:$0x3] %vm347_vm2, %v2390_v14 }
  0x18   :  { %363 = vst.msk [vmem:[#allocation2 + $0x80] sm:$0xff] %vm345_vm1, %v2390_v14 }
  0x19   :  { %364 = vst.msk [vmem:[#allocation2 + $0x88] sm:$0x3] %vm347_vm2, %v2390_v14 }
  0x1a   :  { %365 = vst.msk [vmem:[#allocation2 + $0x90] sm:$0xff] %vm345_vm1, %v2390_v14 }
  0x1b   :  { %366 = vst.msk [vmem:[#allocation2 + $0x98] sm:$0x3] %vm347_vm2, %v2390_v14 }
  0x1c   :  { %367 = vst.msk [vmem:[#allocation2 + $0xa0] sm:$0xff] %vm345_vm1, %v2390_v14 }
  0x1d   :  { %2315 = vmatmul.msk.f32.gmra.mxu0 %vm55_vm0, %v36_v8  ;;  %2327 = vmatmul.msk.f32.gmra.mxu1 %vm55_vm0, %v48_v9  ;;  %368 = vst.msk [vmem:[#allocation2 + $0xa8] sm:$0x3] %vm347_vm2, %v2390_v14 }
  0x1e   :  { %369 = vst.msk [vmem:[#allocation2 + $0xb0] sm:$0xff] %vm345_vm1, %v2390_v14 }
  0x1f   :  { %370 = vst.msk [vmem:[#allocation2 + $0xb8] sm:$0x3] %vm347_vm2, %v2390_v14 }
  0x20   :  { %371 = vst.msk [vmem:[#allocation2 + $0xc0] sm:$0xff] %vm345_vm1, %v2390_v14 }
  0x21   :  { %372 = vst.msk [vmem:[#allocation2 + $0xc8] sm:$0x3] %vm347_vm2, %v2390_v14  ;;  %v863_v23 = vld [vmem:[#allocation2 + $0x90] sm:$0xff] }
  0x22   :  { %373 = vst.msk [vmem:[#allocation2 + $0xd0] sm:$0xff] %vm345_vm1, %v2390_v14  ;;  %v959_v20 = vld [vmem:[#allocation2 + $0x91] sm:$0xff]  ;;  %902 = vrot.lane.b32.xlu2 %v863_v23, %s2392_s1 }
  0x23   :  { %374 = vst.msk [vmem:[#allocation2 + $0xd8] sm:$0x3] %vm347_vm2, %v2390_v14  ;;  %998 = vrot.lane.b32.xlu0 %v959_v20, %s2393_s22  ;;  %v412_v0 = vld [vmem:[#allocation2 + $0xa0] sm:$0xff] }
  0x24   :  { %375 = vst.msk [vmem:[#allocation2 + $0xe0] sm:$0xff] %vm345_vm1, %v2390_v14  ;;  %v444_v22 = vld [vmem:[#allocation2 + $0xa1] sm:$0xff] }
  0x25   :  { %2316 = vmatmul.msk.f32.gmra.mxu0 %vm55_vm0, %v37_v10  ;;  %376 = vst.msk [vmem:[#allocation2 + $0xe8] sm:$0x3] %vm347_vm2, %v2390_v14  ;;  %484 = vrot.lane.b32.xlu1 %v444_v22, %s2391_s17  ;;  %v541_v24 = vld [vmem:[#allocation2 + $0xa2] sm:$0xff] }
  0x26   :  { %377 = vst.msk [vmem:[#allocation2 + $0xf0] sm:$0xff] %vm345_vm1, %v2390_v14 }
  0x27   :  { %378 = vst.msk [vmem:[#allocation2 + $0xf8] sm:$0x3] %vm347_vm2, %v2390_v14 }
  0x28   :  { %379 = vst.msk [vmem:[#allocation2 + $0x100] sm:$0xff] %vm345_vm1, %v2390_v14 }
  0x29   :  { %380 = vst.msk [vmem:[#allocation2 + $0x108] sm:$0x3] %vm347_vm2, %v2390_v14 }
  0x2a   :  { %381 = vst.msk [vmem:[#allocation2 + $0x110] sm:$0xff] %vm345_vm1, %v2390_v14  ;;  %581 = vrot.lane.b32.xlu2 %v541_v24, %s2392_s1 }
  0x2b   :  { %382 = vst.msk [vmem:[#allocation2 + $0x118] sm:$0x3] %vm347_vm2, %v2390_v14 }
  0x2c   :  { %383 = vst.msk [vmem:[#allocation2 + $0x120] sm:$0xff] %vm345_vm1, %v2390_v14 }
  0x2d   :  { %2317 = vmatmul.msk.f32.gmra.mxu0 %vm55_vm0, %v38_v11  ;;  %384 = vst.msk [vmem:[#allocation2 + $0x128] sm:$0x3] %vm347_vm2, %v2390_v14 }
  0x2e   :  { %385 = vst.msk [vmem:[#allocation2 + $0x130] sm:$0xff] %vm345_vm1, %v2390_v14 }
  0x2f   :  { %386 = vst.msk [vmem:[#allocation2 + $0x138] sm:$0x3] %vm347_vm2, %v2390_v14 }
  0x30   :  { %420 = vst.msk [vmem:[#allocation3] sm:$0xff] %vm345_vm1, %v404_v63 }
  0x31   :  { %428 = vst.msk [vmem:[#allocation3 + $0xc0] sm:$0xff] %vm345_vm1, %v412_v0 }
  0x32   :  { %1518 = vst.msk [vmem:[#allocation6 + $0x8] sm:$0x3f] %vm1516_vm7, %v2390_v14 }
  0x33   :  { %1517 = vst.msk [vmem:[#allocation6] sm:$0x3f] %vm1516_vm7, %v2390_v14 }
  0x34   :  { %1519 = vst.msk [vmem:[#allocation6 + $0x10] sm:$0x3f] %vm1516_vm7, %v2390_v14 }
  0x35   :  { %2318 = vmatmul.msk.f32.gmra.mxu0 %vm55_vm0, %v39_v12  ;;  %1520 = vst.msk [vmem:[#allocation6 + $0x18] sm:$0x3f] %vm1516_vm7, %v2390_v14 }
  0x36   :  { %1521 = vst.msk [vmem:[#allocation6 + $0x20] sm:$0x3f] %vm1516_vm7, %v2390_v14 }
  0x37   :  { %1522 = vst.msk [vmem:[#allocation6 + $0x28] sm:$0x3f] %vm1516_vm7, %v2390_v14 }
  0x38   :  { %1523 = vst.msk [vmem:[#allocation6 + $0x30] sm:$0x3f] %vm1516_vm7, %v2390_v14 }
  0x39   :  { %1524 = vst.msk [vmem:[#allocation6 + $0x38] sm:$0x3f] %vm1516_vm7, %v2390_v14 }
  0x3a   :  { %1525 = vst.msk [vmem:[#allocation6 + $0x40] sm:$0x3f] %vm1516_vm7, %v2390_v14 }
  0x3b   :  { %1526 = vst.msk [vmem:[#allocation6 + $0x48] sm:$0x3f] %vm1516_vm7, %v2390_v14 }
  0x3c   :  { %1527 = vst.msk [vmem:[#allocation6 + $0x50] sm:$0x3f] %vm1516_vm7, %v2390_v14 }
  0x3d   :  { %2319 = vmatmul.msk.f32.gmra.mxu0 %vm55_vm0, %v40_v13  ;;  %1528 = vst.msk [vmem:[#allocation6 + $0x58] sm:$0x3f] %vm1516_vm7, %v2390_v14 }
  0x45   :  { %2320 = vmatmul.msk.f32.gmra.mxu0 %vm55_vm0, %v41_v15 }
  0x4d   :  { %2321 = vmatmul.msk.f32.gmra.mxu0 %vm55_vm0, %v42_v18 }
  0x55   :  { %2322 = vmatmul.msk.f32.gmra.mxu0 %vm55_vm0, %v43_v19 }
  0x5d   :  { %2323 = vmatmul.msk.f32.gmra.mxu0 %vm55_vm0, %v44_v21 }
  0x7c   :  { %v2696_v5 = vpop.permute.xlu2 %902 }
  0x82   :  { %v121_v26 = vpop.f32.mrf.mxu0  ;;  %v157_v27 = vpop.f32.mrf.mxu1 }
  0x83   :  { %v2607_v28 = vadd.f32 %v2604_v25, %v121_v26  ;;  %v2610_v29 = vadd.f32 %v2604_v25, %v157_v27  ;;  %v469_v62 = vpop.permute.xlu0 %468 }
  0x84   :  { %517 = vst.msk [vmem:[#allocation3] sm:$0xff] %vm516_vm3, %v469_v62  ;;  %v566_v1 = vpop.permute.xlu1 %565  ;;  %v582_v10 = vpop.permute.xlu2 %581 }
  0x85   :  { %v169_v30 = vmax.f32 %v2607_v28, 0.0  ;;  %v181_v31 = vmax.f32 %v2610_v29, 0.0  ;;  %614 = vst.msk [vmem:[#allocation3] sm:$0xff] %vm613_vm4, %v566_v1 }
  0x87   :  { %225 = vrot.lane.b32.xlu1 %v181_v31, %s2393_s22  ;;  %201 = vrot.lane.b32.xlu0 %v169_v30, %s2393_s22 }
  0x8a   :  { %v124_v32 = vpop.f32.mrf.mxu0  ;;  %v160_v33 = vpop.f32.mrf.mxu1 }
  0x8b   :  { %v2621_v34 = vadd.f32 %v2604_v25, %v124_v32  ;;  %v2625_v36 = vadd.f32 %v2604_v25, %v160_v33 }
  0x8d   :  { %v170_v35 = vmax.f32 %v2621_v34, 0.0  ;;  %v182_v39 = vmax.f32 %v2625_v36, 0.0 }
  0x8f   :  { %203 = vrot.lane.b32.xlu0 %v170_v35, %s2393_s22 }
  0x92   :  { %v127_v37 = vpop.f32.mrf.mxu0  ;;  %v163_v38 = vpop.f32.mrf.mxu1 }
  0x93   :  { %v2632_v40 = vadd.f32 %v2604_v25, %v127_v37  ;;  %v2636_v42 = vadd.f32 %v2604_v25, %v163_v38 }
  0x95   :  { %v171_v41 = vmax.f32 %v2632_v40, 0.0  ;;  %v183_v45 = vmax.f32 %v2636_v42, 0.0  ;;  %v2706_v18 = vpop.permute.xlu0 %998 }
  0x97   :  { %205 = vrot.lane.b32.xlu1 %v171_v41, %s2393_s22  ;;  %227 = vrot.lane.b32.xlu0 %v182_v39, %s2393_s22  ;;  %v485_v9 = vpop.permute.xlu1 %484 }
  0x98   :  { %525 = vst.msk [vmem:[#allocation3 + $0xc0] sm:$0xff] %vm516_vm3, %v485_v9 }
  0x99   :  { %622 = vst.msk [vmem:[#allocation3 + $0xc0] sm:$0xff] %vm613_vm4, %v582_v10 }
  0x9a   :  { %v130_v43 = vpop.f32.mrf.mxu0  ;;  %v166_v44 = vpop.f32.mrf.mxu1 }
  0x9b   :  { %v2646_v46 = vadd.f32 %v2604_v25, %v166_v44  ;;  %v2650_v48 = vadd.f32 %v2604_v25, %v130_v43 }
  0x9d   :  { %v184_v47 = vmax.f32 %v2646_v46, 0.0  ;;  %v172_v50 = vmax.f32 %v2650_v48, 0.0 }
  0x9f   :  { %231 = vrot.lane.b32.xlu2 %v184_v47, %s2393_s22  ;;  %229 = vrot.lane.b32.xlu1 %v183_v45, %s2393_s22 }
  0xa2   :  { %v133_v49 = vpop.f32.mrf.mxu0 }
  0xa3   :  { %v2660_v51 = vadd.f32 %v2604_v25, %v133_v49  ;;  %v1163_v49 = vld [vmem:[%s3871_s3 + $0x118] sm:$0xff] }
  0xa4   :  { %1358 = vmatpush.msra.mxu3 %v1163_v49 }
  0xa5   :  { %v173_v52 = vmax.f32 %v2660_v51, 0.0  ;;  %v1161_v51 = vld [vmem:[%s3871_s3 + $0x108] sm:$0xff] }
  0xa7   :  { %209 = vrot.lane.b32.xlu2 %v173_v52, %s2393_s22  ;;  %207 = vrot.lane.b32.xlu1 %v172_v50, %s2393_s22 }
  0xaa   :  { %v136_v53 = vpop.f32.mrf.mxu0 }
  0xab   :  { %v2670_v54 = vadd.f32 %v2604_v25, %v136_v53 }
  0xad   :  { %v174_v55 = vmax.f32 %v2670_v54, 0.0  ;;  %v1160_v54 = vld [vmem:[%s3871_s3 + $0x100] sm:$0xff] }
  0xaf   :  { %211 = vrot.lane.b32.xlu2 %v174_v55, %s2393_s22 }
  0xb2   :  { %v139_v56 = vpop.f32.mrf.mxu0 }
  0xb3   :  { %v2677_v57 = vadd.f32 %v2604_v25, %v139_v56 }
  0xb5   :  { %v175_v58 = vmax.f32 %v2677_v57, 0.0 }
  0xb7   :  { %213 = vrot.lane.b32.xlu0 %v175_v58, %s2393_s22 }
  0xba   :  { %v142_v59 = vpop.f32.mrf.mxu0 }
  0xbb   :  { %v2684_v60 = vadd.f32 %v2604_v25, %v142_v59 }
  0xbd   :  { %v176_v61 = vmax.f32 %v2684_v60, 0.0 }
  0xbf   :  { %215 = vrot.lane.b32.xlu0 %v176_v61, %s2393_s22 }
  0xc2   :  { %v145_v2 = vpop.f32.mrf.mxu0 }
  0xc3   :  { %v146_v3 = vadd.f32 %v2604_v25, %v145_v2 }
  0xc5   :  { %v177_v4 = vmax.f32 %v146_v3, 0.0 }
  0xc7   :  { %217 = vrot.lane.b32.xlu0 %v177_v4, %s2393_s22 }
  0xca   :  { %v148_v6 = vpop.f32.mrf.mxu0 }
  0xcb   :  { %v149_v7 = vadd.f32 %v2604_v25, %v148_v6 }
  0xcd   :  { %v178_v8 = vmax.f32 %v149_v7, 0.0 }
  0xcf   :  { %219 = vrot.lane.b32.xlu1 %v178_v8, %s2393_s22 }
  0xd2   :  { %v151_v11 = vpop.f32.mrf.mxu0 }
  0xd3   :  { %v152_v12 = vadd.f32 %v2604_v25, %v151_v11 }
  0xd5   :  { %v179_v13 = vmax.f32 %v152_v12, 0.0 }
  0xd7   :  { %221 = vrot.lane.b32.xlu0 %v179_v13, %s2393_s22 }
  0xda   :  { %v154_v15 = vpop.f32.mrf.mxu0 }
  0xdb   :  { %v155_v16 = vadd.f32 %v2604_v25, %v154_v15 }
  0xdd   :  { %v180_v17 = vmax.f32 %v155_v16, 0.0 }
  0xdf   :  { %223 = vrot.lane.b32.xlu2 %v180_v17, %s2393_s22 }
  0xf9   :  { %v226_v19 = vpop.permute.xlu1 %225  ;;  %v202_v21 = vpop.permute.xlu0 %201 }
  0xfa   :  { %v2710_v20 = vmax.f32 %v181_v31, %v226_v19  ;;  %v2714_v22 = vmax.f32 %v169_v30, %v202_v21  ;;  %v232_v28 = vpop.permute.xlu2 %231 }
  0xfc   :  { %305 = vrot.lane.b32.xlu0 %v2710_v20, %s2392_s1  ;;  %281 = vrot.lane.b32.xlu1 %v2714_v22, %s2392_s1 }
 0x101   :  { %v204_v23 = vpop.permute.xlu0 %203 }
 0x102   :  { %v250_v24 = vmax.f32 %v170_v35, %v204_v23  ;;  %v210_v32 = vpop.permute.xlu2 %209  ;;  %v2745_v35 = vmax.f32 %v184_v47, %v232_v28 }
 0x103   :  { %v2752_v37 = vmax.f32 %v173_v52, %v210_v32 }
 0x104   :  { %283 = vrot.lane.b32.xlu2 %v250_v24, %s2392_s1 }
 0x109   :  { %v206_v25 = vpop.permute.xlu1 %205  ;;  %v228_v26 = vpop.permute.xlu0 %227 }
 0x10a   :  { %v2725_v27 = vmax.f32 %v182_v39, %v228_v26  ;;  %v2735_v31 = vmax.f32 %v171_v41, %v206_v25  ;;  %v212_v36 = vpop.permute.xlu2 %211 }
 0x10b   :  { %v2756_v38 = vmax.f32 %v174_v55, %v212_v36 }
 0x10c   :  { %307 = vrot.lane.b32.xlu1 %v2725_v27, %s2392_s1 }
 0x111   :  { %v230_v29 = vpop.permute.xlu1 %229 }
 0x112   :  { %v2731_v30 = vmax.f32 %v183_v45, %v230_v29 }
 0x114   :  { %309 = vrot.lane.b32.xlu0 %v2731_v30, %s2392_s1  ;;  %285 = vrot.lane.b32.xlu1 %v2735_v31, %s2392_s1 }
 0x119   :  { %v208_v33 = vpop.permute.xlu1 %207 }
 0x11a   :  { %v252_v34 = vmax.f32 %v172_v50, %v208_v33  ;;  %v1162_v50 = vld [vmem:[%s3871_s3 + $0x110] sm:$0xff] }
 0x11b   :  { %1359 = vmatpush.msra.mxu3 %v1162_v50 }
 0x11c   :  { %287 = vrot.lane.b32.xlu2 %v252_v34, %s2392_s1  ;;  %311 = vrot.lane.b32.xlu1 %v2745_v35, %s2392_s1 }
 0x11d   :  { %1360 = vmatpush.msra.mxu3 %v1161_v51 }
 0x11f   :  { %1361 = vmatpush.msra.mxu3 %v1160_v54 }
 0x124   :  { %289 = vrot.lane.b32.xlu2 %v2752_v37, %s2392_s1  ;;  %291 = vrot.lane.b32.xlu1 %v2756_v38, %s2392_s1 }
 0x129   :  { %v214_v39 = vpop.permute.xlu0 %213 }
 0x12a   :  { %v2764_v40 = vmax.f32 %v175_v58, %v214_v39 }
 0x12c   :  { %293 = vrot.lane.b32.xlu0 %v2764_v40, %s2392_s1 }
 0x131   :  { %v216_v41 = vpop.permute.xlu0 %215 }
 0x132   :  { %v2770_v42 = vmax.f32 %v176_v61, %v216_v41 }
 0x134   :  { %295 = vrot.lane.b32.xlu2 %v2770_v42, %s2392_s1 }
 0x139   :  { %v218_v43 = vpop.permute.xlu0 %217  ;;  %v224_v45 = vpop.permute.xlu2 %223 }
 0x13a   :  { %v2774_v44 = vmax.f32 %v177_v4, %v218_v43  ;;  %v2778_v47 = vmax.f32 %v180_v17, %v224_v45 }
 0x13c   :  { %297 = vrot.lane.b32.xlu2 %v2774_v44, %s2392_s1 }
 0x141   :  { %v220_v46 = vpop.permute.xlu1 %219 }
 0x142   :  { %v2780_v48 = vmax.f32 %v178_v8, %v220_v46 }
 0x144   :  { %299 = vrot.lane.b32.xlu0 %v2780_v48, %s2392_s1  ;;  %303 = vrot.lane.b32.xlu2 %v2778_v47, %s2392_s1 }
 0x149   :  { %v222_v52 = vpop.permute.xlu0 %221 }
 0x14a   :  { %v2795_v53 = vmax.f32 %v179_v13, %v222_v52 }
 0x14c   :  { %301 = vrot.lane.b32.xlu1 %v2795_v53, %s2392_s1 }
 0x15e   :  { %v284_v55 = vpop.permute.xlu2 %283 }
 0x15f   :  { %v330_v56 = vmax.f32 %v250_v24, %v284_v55 }
 0x161   :  { %389 = vst.msk [vmem:[#allocation2 + $0x21] sm:$0xff] %vm345_vm1, %v330_v56 }
 0x168   :  { %v2803_v57 = vld [vmem:[#allocation2 + $0x22] sm:$0xff] }
 0x169   :  { %v856_v58 = vld [vmem:[#allocation2 + $0x20] sm:$0xff]  ;;  %1064 = vst.msk [vmem:[#allocation3 + $0x10] sm:$0xff] %vm345_vm1, %v2803_v57 }
 0x16a   :  { %v2805_v59 = vld [vmem:[#allocation2 + $0x21] sm:$0xff]  ;;  %422 = vst.msk [vmem:[#allocation3 + $0x30] sm:$0xff] %vm345_vm1, %v856_v58 }
 0x16b   :  { %744 = vst.msk [vmem:[#allocation3 + $0x20] sm:$0xff] %vm345_vm1, %v2805_v59 }
 0x16e   :  { %v306_v60 = vpop.permute.xlu0 %305  ;;  %v282_v61 = vpop.permute.xlu1 %281 }
 0x16f   :  { %v341_v62 = vmax.f32 %v2710_v20, %v306_v60  ;;  %v329_v63 = vmax.f32 %v2714_v22, %v282_v61  ;;  %v1141_v61 = vld [vmem:[%s3871_s3 + $0x68] sm:$0xff] }
 0x170   :  { %v1082_v0 = vld [vmem:[#allocation3 + $0x10] sm:$0xff] }
 0x171   :  { %400 = vst.msk [vmem:[#allocation2 + $0xf1] sm:$0xff] %vm345_vm1, %v341_v62  ;;  %2328 = vmatmul.msk.f32.vlgmr.msra.gmra.mxu3 %vm345_vm1, %v1082_v0 }
 0x172   :  { %388 = vst.msk [vmem:[#allocation2 + $0x11] sm:$0xff] %vm345_vm1, %v329_v63  ;;  %v1140_v63 = vld [vmem:[%s3871_s3 + $0x60] sm:$0xff] }
 0x176   :  { %v288_v1 = vpop.permute.xlu2 %287 }
 0x177   :  { %v332_v2 = vmax.f32 %v252_v34, %v288_v1 }
 0x178   :  { %v2817_v3 = vld [vmem:[#allocation2 + $0xf2] sm:$0xff] }
 0x179   :  { %391 = vst.msk [vmem:[#allocation2 + $0x41] sm:$0xff] %vm345_vm1, %v332_v2  ;;  %v759_v4 = vld [vmem:[#allocation2 + $0x12] sm:$0xff] }
 0x17a   :  { %v630_v6 = vld [vmem:[#allocation2 + $0x10] sm:$0xff]  ;;  %791 = vrot.lane.b32.xlu0 %v759_v4, %s2391_s17  ;;  %1075 = vst.msk [vmem:[#allocation3 + $0x118] sm:$0xff] %vm345_vm1, %v2817_v3  ;;  %v1139_v2 = vld [vmem:[%s3871_s3 + $0x58] sm:$0xff] }
 0x17b   :  { %v437_v7 = vld [vmem:[#allocation2 + $0x11] sm:$0xff]  ;;  %662 = vrot.lane.b32.xlu2 %v630_v6, %s2393_s22  ;;  %421 = vst.msk [vmem:[#allocation3 + $0x18] sm:$0xff] %vm345_vm1, %v630_v6 }
 0x17c   :  { %v739_v8 = vld [vmem:[#allocation2 + $0xf1] sm:$0xff]  ;;  %470 = vrot.lane.b32.xlu1 %v437_v7, %s2391_s17  ;;  %743 = vst.msk [vmem:[#allocation3 + $0x8] sm:$0xff] %vm345_vm1, %v437_v7 }
 0x17d   :  { %v417_v9 = vld [vmem:[#allocation2 + $0xf0] sm:$0xff]  ;;  %755 = vst.msk [vmem:[#allocation3 + $0x128] sm:$0xff] %vm345_vm1, %v739_v8 }
 0x17e   :  { %v290_v10 = vpop.permute.xlu2 %289  ;;  %433 = vst.msk [vmem:[#allocation3 + $0x138] sm:$0xff] %vm345_vm1, %v417_v9  ;;  %v308_v12 = vpop.permute.xlu1 %307  ;;  %v2834_v16 = vld [vmem:[#allocation2 + $0xf1] sm:$0xff] }
 0x17f   :  { %v333_v11 = vmax.f32 %v2752_v37, %v290_v10  ;;  %v342_v13 = vmax.f32 %v2725_v27, %v308_v12  ;;  %v2856_v25 = vld [vmem:[#allocation2 + $0xf0] sm:$0xff] }
 0x180   :  { %v2831_v15 = vld [vmem:[#allocation2 + $0x42] sm:$0xff]  ;;  %v1138_v6 = vld [vmem:[%s3871_s3 + $0x50] sm:$0xff] }
 0x181   :  { %392 = vst.msk [vmem:[#allocation2 + $0x51] sm:$0xff] %vm345_vm1, %v333_v11  ;;  %v2836_v17 = vld [vmem:[#allocation2 + $0x41] sm:$0xff] }
 0x182   :  { %401 = vst.msk [vmem:[#allocation2 + $0x101] sm:$0xff] %vm345_vm1, %v342_v13  ;;  %1006 = vrot.lane.b32.xlu0 %v2834_v16, %s2393_s22  ;;  %v2842_v19 = vld [vmem:[#allocation2 + $0x40] sm:$0xff]  ;;  %v1137_v13 = vld [vmem:[%s3871_s3 + $0x48] sm:$0xff] }
 0x183   :  { %567 = vrot.lane.b32.xlu2 %v759_v4, %s2392_s1  ;;  %1066 = vst.msk [vmem:[#allocation3 + $0x40] sm:$0xff] %vm345_vm1, %v2831_v15 }
 0x184   :  { %888 = vrot.lane.b32.xlu1 %v856_v58, %s2392_s1  ;;  %746 = vst.msk [vmem:[#allocation3 + $0x50] sm:$0xff] %vm345_vm1, %v2836_v17 }
 0x185   :  { %424 = vst.msk [vmem:[#allocation3 + $0x60] sm:$0xff] %vm345_vm1, %v2842_v19 }
 0x186   :  { %v310_v20 = vpop.permute.xlu0 %309  ;;  %v286_v21 = vpop.permute.xlu1 %285 }
 0x187   :  { %v343_v22 = vmax.f32 %v2731_v30, %v310_v20  ;;  %v331_v23 = vmax.f32 %v2735_v31, %v286_v21  ;;  %v1136_v21 = vld [vmem:[%s3871_s3 + $0x40] sm:$0xff] }
 0x188   :  { %v2853_v24 = vld [vmem:[#allocation2 + $0x52] sm:$0xff] }
 0x189   :  { %402 = vst.msk [vmem:[#allocation2 + $0x111] sm:$0xff] %vm345_vm1, %v343_v22  ;;  %v2858_v26 = vld [vmem:[#allocation2 + $0x102] sm:$0xff]  ;;  %v2864_v27 = vld [vmem:[#allocation2 + $0x50] sm:$0xff]  ;;  %v1135_v22 = vld [vmem:[%s3871_s3 + $0x38] sm:$0xff] }
 0x18a   :  { %390 = vst.msk [vmem:[#allocation2 + $0x31] sm:$0xff] %vm345_vm1, %v331_v23  ;;  %664 = vrot.lane.b32.xlu0 %v856_v58, %s2393_s22  ;;  %v2870_v28 = vld [vmem:[#allocation2 + $0x51] sm:$0xff]  ;;  %v2874_v29 = vld [vmem:[#allocation2 + $0x101] sm:$0xff] }
 0x18b   :  { %910 = vrot.lane.b32.xlu2 %v2856_v25, %s2392_s1  ;;  %1067 = vst.msk [vmem:[#allocation3 + $0x58] sm:$0xff] %vm345_vm1, %v2853_v24  ;;  %v2876_v30 = vld [vmem:[#allocation2 + $0x100] sm:$0xff] }
 0x18c   :  { %793 = vrot.lane.b32.xlu1 %v2803_v57, %s2391_s17  ;;  %1076 = vst.msk [vmem:[#allocation3 + $0x130] sm:$0xff] %vm345_vm1, %v2858_v26  ;;  %v1088_v62 = vld [vmem:[#allocation3 + $0x40] sm:$0xff] }
 0x18d   :  { %425 = vst.msk [vmem:[#allocation3 + $0x78] sm:$0xff] %vm345_vm1, %v2864_v27 }
 0x18e   :  { %v296_v31 = vpop.permute.xlu2 %295  ;;  %747 = vst.msk [vmem:[#allocation3 + $0x68] sm:$0xff] %vm345_vm1, %v2870_v28  ;;  %v312_v32 = vpop.permute.xlu1 %311 }
 0x18f   :  { %v336_v33 = vmax.f32 %v2770_v42, %v296_v31  ;;  %756 = vst.msk [vmem:[#allocation3 + $0x140] sm:$0xff] %vm345_vm1, %v2874_v29  ;;  %v344_v34 = vmax.f32 %v2745_v35, %v312_v32  ;;  %v1134_v31 = vld [vmem:[%s3871_s3 + $0x30] sm:$0xff]  ;;  %v1133_v32 = vld [vmem:[%s3871_s3 + $0x28] sm:$0xff] }
 0x190   :  { %434 = vst.msk [vmem:[#allocation3 + $0x150] sm:$0xff] %vm345_vm1, %v2876_v30  ;;  %v2891_v39 = vld [vmem:[#allocation2 + $0x112] sm:$0xff] }
 0x191   :  { %395 = vst.msk [vmem:[#allocation2 + $0x81] sm:$0xff] %vm345_vm1, %v336_v33  ;;  %v2889_v36 = vld [vmem:[#allocation2 + $0x31] sm:$0xff] }
 0x192   :  { %v1049_v37 = vld [vmem:[#allocation2 + $0x32] sm:$0xff]  ;;  %403 = vst.msk [vmem:[#allocation2 + $0x121] sm:$0xff] %vm345_vm1, %v344_v34  ;;  %986 = vrot.lane.b32.xlu0 %v2889_v36, %s2393_s22 }
 0x193   :  { %984 = vrot.lane.b32.xlu2 %v2805_v59, %s2393_s22  ;;  %v632_v41 = vld [vmem:[#allocation2 + $0x30] sm:$0xff]  ;;  %1065 = vst.msk [vmem:[#allocation3 + $0x28] sm:$0xff] %vm345_vm1, %v1049_v37  ;;  %v1091_v11 = vld [vmem:[#allocation3 + $0x58] sm:$0xff] }
 0x194   :  { %472 = vrot.lane.b32.xlu1 %v2805_v59, %s2391_s17  ;;  %1077 = vst.msk [vmem:[#allocation3 + $0x148] sm:$0xff] %vm345_vm1, %v2891_v39  ;;  %v2903_v35 = vld [vmem:[#allocation2 + $0x111] sm:$0xff] }
 0x195   :  { %423 = vst.msk [vmem:[#allocation3 + $0x48] sm:$0xff] %vm345_vm1, %v632_v41  ;;  %v2906_v42 = vld [vmem:[#allocation2 + $0x110] sm:$0xff] }
 0x196   :  { %v298_v43 = vpop.permute.xlu2 %297  ;;  %745 = vst.msk [vmem:[#allocation3 + $0x38] sm:$0xff] %vm345_vm1, %v2889_v36  ;;  %v292_v45 = vpop.permute.xlu1 %291  ;;  %v1142_v59 = vld [vmem:[%s3871_s3 + $0x70] sm:$0xff] }
 0x197   :  { %v337_v46 = vmax.f32 %v2774_v44, %v298_v43  ;;  %757 = vst.msk [vmem:[#allocation3 + $0x158] sm:$0xff] %vm345_vm1, %v2903_v35  ;;  %v334_v49 = vmax.f32 %v2756_v38, %v292_v45  ;;  %v1143_v38 = vld [vmem:[%s3871_s3 + $0x78] sm:$0xff] }
 0x198   :  { %v2914_v50 = vld [vmem:[#allocation2 + $0x82] sm:$0xff]  ;;  %435 = vst.msk [vmem:[#allocation3 + $0x168] sm:$0xff] %vm345_vm1, %v2906_v42  ;;  %1216 = vmatpush.msrb.mxu1 %v1143_v38 }
 0x199   :  { %396 = vst.msk [vmem:[#allocation2 + $0xb1] sm:$0xff] %vm345_vm1, %v337_v46  ;;  %v2919_v51 = vld [vmem:[#allocation2 + $0x122] sm:$0xff] }
 0x19a   :  { %393 = vst.msk [vmem:[#allocation2 + $0x61] sm:$0xff] %vm345_vm1, %v334_v49  ;;  %v1085_v52 = vld [vmem:[#allocation3 + $0x28] sm:$0xff]  ;;  %666 = vrot.lane.b32.xlu0 %v632_v41, %s2393_s22  ;;  %1217 = vmatpush.msrb.mxu1 %v1142_v59 }
 0x19b   :  { %569 = vrot.lane.b32.xlu2 %v2803_v57, %s2392_s1  ;;  %v2925_v44 = vld [vmem:[#allocation2 + $0x81] sm:$0xff]  ;;  %2329 = vmatmul.msk.f32.gmra.mxu3 %vm345_vm1, %v1085_v52  ;;  %1070 = vst.msk [vmem:[#allocation3 + $0xa0] sm:$0xff] %vm345_vm1, %v2914_v50 }
 0x19c   :  { %795 = vrot.lane.b32.xlu1 %v1049_v37, %s2391_s17  ;;  %v2934_v54 = vld [vmem:[#allocation2 + $0x121] sm:$0xff]  ;;  %1078 = vst.msk [vmem:[#allocation3 + $0x160] sm:$0xff] %vm345_vm1, %v2919_v51  ;;  %1218 = vmatpush.msrb.mxu1 %v1141_v61  ;;  %v1154_v61 = vld [vmem:[%s3871_s3 + $0xd0] sm:$0xff] }
 0x19d   :  { %750 = vst.msk [vmem:[#allocation3 + $0xb0] sm:$0xff] %vm345_vm1, %v2925_v44  ;;  %v1129_v46 = vld [vmem:[%s3871_s3 + $0x8] sm:$0xff]  ;;  %v1128_v52 = vld [vmem:[%s3871_s3] sm:$0xff] }
 0x19e   :  { %v304_v55 = vpop.permute.xlu2 %303  ;;  %v294_v56 = vpop.permute.xlu0 %293  ;;  %758 = vst.msk [vmem:[#allocation3 + $0x170] sm:$0xff] %vm345_vm1, %v2934_v54  ;;  %1219 = vmatpush.msrb.mxu1 %v1140_v63  ;;  %v1157_v38 = vld [vmem:[%s3871_s3 + $0xe8] sm:$0xff]  ;;  %v1150_v63 = vld [vmem:[%s3871_s3 + $0xb0] sm:$0xff] }
 0x19f   :  { %v340_v57 = vmax.f32 %v2778_v47, %v304_v55  ;;  %v335_v58 = vmax.f32 %v2764_v40, %v294_v56  ;;  %v1055_v47 = vld [vmem:[#allocation2 + $0x92] sm:$0xff] }
 0x1a0   :  { %1071 = vst.msk [vmem:[#allocation3 + $0xb8] sm:$0xff] %vm345_vm1, %v1055_v47  ;;  %v2969_v1 = vld [vmem:[#allocation2 + $0xb1] sm:$0xff]  ;;  %1220 = vmatpush.msrb.mxu1 %v1139_v2 }
 0x1a1   :  { %399 = vst.msk [vmem:[#allocation2 + $0xe1] sm:$0xff] %vm345_vm1, %v340_v57  ;;  %v2948_v60 = vld [vmem:[#allocation2 + $0x62] sm:$0xff]  ;;  %v2974_v4 = vld [vmem:[#allocation2 + $0xb0] sm:$0xff]  ;;  %v1155_v55 = vld [vmem:[%s3871_s3 + $0xd8] sm:$0xff] }
 0x1a2   :  { %394 = vst.msk [vmem:[#allocation2 + $0x71] sm:$0xff] %vm345_vm1, %v335_v58  ;;  %571 = vrot.lane.b32.xlu0 %v1049_v37, %s2392_s1  ;;  %v2956_v40 = vld [vmem:[#allocation2 + $0x60] sm:$0xff]  ;;  %1221 = vmatpush.msrb.mxu1 %v1138_v6  ;;  %v1159_v37 = vld [vmem:[%s3871_s3 + $0xf8] sm:$0xff] }
 0x1a3   :  { %890 = vrot.lane.b32.xlu2 %v632_v41, %s2392_s1  ;;  %2330 = vmatmul.msk.f32.gmra.mxu3 %vm345_vm1, %v1088_v62  ;;  %1068 = vst.msk [vmem:[#allocation3 + $0x70] sm:$0xff] %vm345_vm1, %v2948_v60  ;;  %v2966_v0 = vld [vmem:[#allocation2 + $0x61] sm:$0xff] }
 0x1a4   :  { %668 = vrot.lane.b32.xlu1 %v2842_v19, %s2393_s22  ;;  %426 = vst.msk [vmem:[#allocation3 + $0x90] sm:$0xff] %vm345_vm1, %v2956_v40  ;;  %1222 = vmatpush.msrb.mxu1 %v1137_v13  ;;  %v1153_v62 = vld [vmem:[%s3871_s3 + $0xc8] sm:$0xff]  ;;  %v1148_v6 = vld [vmem:[%s3871_s3 + $0xa0] sm:$0xff]  ;;  %v1147_v13 = vld [vmem:[%s3871_s3 + $0x98] sm:$0xff] }
 0x1a5   :  { %748 = vst.msk [vmem:[#allocation3 + $0x80] sm:$0xff] %vm345_vm1, %v2966_v0  ;;  %1281 = vmatpush.msra.mxu2 %v1159_v37 }
 0x1a6   :  { %751 = vst.msk [vmem:[#allocation3 + $0xc8] sm:$0xff] %vm345_vm1, %v2969_v1  ;;  %1223 = vmatpush.msrb.mxu1 %v1136_v21 }
 0x1a7   :  { %429 = vst.msk [vmem:[#allocation3 + $0xd8] sm:$0xff] %vm345_vm1, %v2974_v4  ;;  %v1103_v56 = vld [vmem:[#allocation3 + $0xb8] sm:$0xff] }
 0x1a8   :  { %v2985_v7 = vld [vmem:[#allocation2 + $0xe2] sm:$0xff]  ;;  %1224 = vmatpush.msrb.mxu1 %v1135_v22 }
 0x1a9   :  { %v2989_v8 = vld [vmem:[#allocation2 + $0x72] sm:$0xff]  ;;  %1074 = vst.msk [vmem:[#allocation3 + $0x100] sm:$0xff] %vm345_vm1, %v2985_v7  ;;  %v3003_v12 = vld [vmem:[#allocation2 + $0xe0] sm:$0xff] }
 0x1aa   :  { %v2991_v9 = vld [vmem:[#allocation2 + $0x70] sm:$0xff]  ;;  %988 = vrot.lane.b32.xlu0 %v2836_v17, %s2393_s22  ;;  %1069 = vst.msk [vmem:[#allocation3 + $0x88] sm:$0xff] %vm345_vm1, %v2989_v8  ;;  %v3011_v20 = vld [vmem:[#allocation2 + $0xe1] sm:$0xff]  ;;  %1225 = vmatpush.msrb.mxu1 %v1134_v31 }
 0x1ab   :  { %v2993_v10 = vld [vmem:[#allocation2 + $0x71] sm:$0xff]  ;;  %474 = vrot.lane.b32.xlu2 %v2889_v36, %s2391_s17  ;;  %2331 = vmatmul.msk.f32.gmra.mxu3 %vm345_vm1, %v1091_v11  ;;  %427 = vst.msk [vmem:[#allocation3 + $0xa8] sm:$0xff] %vm345_vm1, %v2991_v9 }
 0x1ac   :  { %573 = vrot.lane.b32.xlu1 %v2831_v15, %s2392_s1  ;;  %749 = vst.msk [vmem:[#allocation3 + $0x98] sm:$0xff] %vm345_vm1, %v2993_v10  ;;  %v1094_v23 = vld [vmem:[#allocation3 + $0x70] sm:$0xff]  ;;  %1226 = vmatpush.msrb.mxu1 %v1133_v32  ;;  %v1144_v32 = vld [vmem:[%s3871_s3 + $0x80] sm:$0xff] }
 0x1ad   :  { %432 = vst.msk [vmem:[#allocation3 + $0x120] sm:$0xff] %vm345_vm1, %v3003_v12  ;;  %v1130_v36 = vld [vmem:[%s3871_s3 + $0x10] sm:$0xff] }
 0x1ae   :  { %754 = vst.msk [vmem:[#allocation3 + $0x110] sm:$0xff] %vm345_vm1, %v3011_v20 }
 0x1b0   :  { %v1112_v31 = vld [vmem:[#allocation3 + $0x100] sm:$0xff] }
 0x1b1   :  { %v1097_v34 = vld [vmem:[#allocation3 + $0x88] sm:$0xff] }
 0x1b2   :  { %476 = vrot.lane.b32.xlu0 %v2836_v17, %s2391_s17 }
 0x1b3   :  { %892 = vrot.lane.b32.xlu2 %v2842_v19, %s2392_s1  ;;  %2332 = vmatmul.msk.f32.gmra.mxu3 %vm345_vm1, %v1094_v23  ;;  %v1132_v19 = vld [vmem:[%s3871_s3 + $0x20] sm:$0xff] }
 0x1b4   :  { %990 = vrot.lane.b32.xlu1 %v2870_v28, %s2393_s22  ;;  %1227 = vmatpush.msrb.mxu1 %v1132_v19  ;;  %v862_v23 = vld [vmem:[#allocation2 + $0x80] sm:$0xff] }
 0x1b6   :  { %v300_v33 = vpop.permute.xlu0 %299 }
 0x1b7   :  { %v338_v17 = vmax.f32 %v2780_v48, %v300_v33  ;;  %v1131_v48 = vld [vmem:[%s3871_s3 + $0x18] sm:$0xff] }
 0x1b8   :  { %1228 = vmatpush.msrb.mxu1 %v1131_v48  ;;  %v1118_v48 = vld [vmem:[#allocation3 + $0x130] sm:$0xff] }
 0x1b9   :  { %397 = vst.msk [vmem:[#allocation2 + $0xc1] sm:$0xff] %vm345_vm1, %v338_v17 }
 0x1ba   :  { %894 = vrot.lane.b32.xlu0 %v2864_v27, %s2392_s1  ;;  %1229 = vmatpush.msrb.mxu1 %v1130_v36 }
 0x1bb   :  { %797 = vrot.lane.b32.xlu2 %v2831_v15, %s2391_s17  ;;  %2333 = vmatmul.msk.f32.gmra.mxu3 %vm345_vm1, %v1097_v34  ;;  %v1158_v15 = vld [vmem:[%s3871_s3 + $0xf0] sm:$0xff] }
 0x1bc   :  { %478 = vrot.lane.b32.xlu1 %v2870_v28, %s2391_s17  ;;  %1282 = vmatpush.msra.mxu2 %v1158_v15  ;;  %v767_v34 = vld [vmem:[#allocation2 + $0xb2] sm:$0xff] }
 0x1bd   :  { %1230 = vmatpush.msrb.mxu1 %v1129_v46  ;;  %v1124_v46 = vld [vmem:[#allocation3 + $0x160] sm:$0xff] }
 0x1be   :  { %v302_v28 = vpop.permute.xlu1 %301  ;;  %1283 = vmatpush.msra.mxu2 %v1157_v38 }
 0x1bf   :  { %v339_v41 = vmax.f32 %v2795_v53, %v302_v28  ;;  %v1100_v53 = vld [vmem:[#allocation3 + $0xa0] sm:$0xff]  ;;  %1231 = vmatpush.msrb.mxu1 %v1128_v52 }
 0x1c0   :  { %v3065_v43 = vld [vmem:[#allocation2 + $0xc2] sm:$0xff] }
 0x1c1   :  { %v3067_v45 = vld [vmem:[#allocation2 + $0xc1] sm:$0xff]  ;;  %398 = vst.msk [vmem:[#allocation2 + $0xd1] sm:$0xff] %vm345_vm1, %v339_v41 }
 0x1c2   :  { %v3073_v49 = vld [vmem:[#allocation2 + $0xc0] sm:$0xff]  ;;  %799 = vrot.lane.b32.xlu0 %v2853_v24, %s2391_s17  ;;  %1072 = vst.msk [vmem:[#allocation3 + $0xd0] sm:$0xff] %vm345_vm1, %v3065_v43 }
 0x1c3   :  { %670 = vrot.lane.b32.xlu2 %v2864_v27, %s2393_s22  ;;  %2334 = vmatmul.msk.f32.gmra.mxu3 %vm345_vm1, %v1100_v53  ;;  %752 = vst.msk [vmem:[#allocation3 + $0xe0] sm:$0xff] %vm345_vm1, %v3067_v45  ;;  %v1156_v27 = vld [vmem:[%s3871_s3 + $0xe0] sm:$0xff] }
 0x1c4   :  { %896 = vrot.lane.b32.xlu1 %v2956_v40, %s2392_s1  ;;  %430 = vst.msk [vmem:[#allocation3 + $0xf0] sm:$0xff] %vm345_vm1, %v3073_v49  ;;  %1284 = vmatpush.msra.mxu2 %v1156_v27 }
 0x1c6   :  { %1285 = vmatpush.msra.mxu2 %v1155_v55 }
 0x1c8   :  { %v3100_v57 = vld [vmem:[#allocation2 + $0xd2] sm:$0xff]  ;;  %1286 = vmatpush.msra.mxu2 %v1154_v61 }
 0x1c9   :  { %v3102_v58 = vld [vmem:[#allocation2 + $0xd1] sm:$0xff]  ;;  %1073 = vst.msk [vmem:[#allocation3 + $0xe8] sm:$0xff] %vm345_vm1, %v3100_v57 }
 0x1ca   :  { %v3104_v59 = vld [vmem:[#allocation2 + $0xd0] sm:$0xff]  ;;  %672 = vrot.lane.b32.xlu0 %v2956_v40, %s2393_s22  ;;  %753 = vst.msk [vmem:[#allocation3 + $0xf8] sm:$0xff] %vm345_vm1, %v3102_v58  ;;  %1287 = vmatpush.msra.mxu2 %v1153_v62  ;;  %v1151_v40 = vld [vmem:[%s3871_s3 + $0xb8] sm:$0xff] }
 0x1cb   :  { %575 = vrot.lane.b32.xlu2 %v2853_v24, %s2392_s1  ;;  %2335 = vmatmul.msk.f32.gmra.mxu3 %vm345_vm1, %v1103_v56  ;;  %431 = vst.msk [vmem:[#allocation3 + $0x108] sm:$0xff] %vm345_vm1, %v3104_v59  ;;  %v1152_v24 = vld [vmem:[%s3871_s3 + $0xc0] sm:$0xff]  ;;  %v1106_v47 = vld [vmem:[#allocation3 + $0xd0] sm:$0xff] }
 0x1cc   :  { %801 = vrot.lane.b32.xlu1 %v2948_v60, %s2391_s17  ;;  %1288 = vmatpush.msra.mxu2 %v1152_v24 }
 0x1ce   :  { %1289 = vmatpush.msra.mxu2 %v1151_v40 }
 0x1d0   :  { %1290 = vmatpush.msra.mxu2 %v1150_v63  ;;  %v1109_v11 = vld [vmem:[#allocation3 + $0xe8] sm:$0xff] }
 0x1d2   :  { %577 = vrot.lane.b32.xlu0 %v2948_v60, %s2392_s1  ;;  %v1149_v60 = vld [vmem:[%s3871_s3 + $0xa8] sm:$0xff] }
 0x1d3   :  { %992 = vrot.lane.b32.xlu2 %v2966_v0, %s2393_s22  ;;  %2336 = vmatmul.msk.f32.gmra.mxu3 %vm345_vm1, %v1106_v47 }
 0x1d4   :  { %674 = vrot.lane.b32.xlu1 %v2991_v9, %s2393_s22  ;;  %1291 = vmatpush.msra.mxu2 %v1149_v60 }
 0x1d5   :  { %v663_v2 = vpop.permute.xlu2 %662 }
 0x1d6   :  { %711 = vst.msk [vmem:[#allocation3] sm:$0xff] %vm710_vm5, %v663_v2  ;;  %1292 = vmatpush.msra.mxu2 %v1148_v6 }
 0x1d8   :  { %1293 = vmatpush.msra.mxu2 %v1147_v13 }
 0x1da   :  { %994 = vrot.lane.b32.xlu0 %v2993_v10, %s2393_s22 }
 0x1db   :  { %480 = vrot.lane.b32.xlu2 %v2966_v0, %s2391_s17  ;;  %2337 = vmatmul.msk.f32.gmra.mxu3 %vm345_vm1, %v1109_v11  ;;  %v1146_v0 = vld [vmem:[%s3871_s3 + $0x90] sm:$0xff] }
 0x1dc   :  { %482 = vrot.lane.b32.xlu1 %v2993_v10, %s2391_s17  ;;  %1294 = vmatpush.msra.mxu2 %v1146_v0  ;;  %v1145_v10 = vld [vmem:[%s3871_s3 + $0x88] sm:$0xff] }
 0x1dd   :  { %v568_v21 = vpop.permute.xlu2 %567  ;;  %v1080_v22 = vld [vmem:[#allocation3] sm:$0xff] }
 0x1de   :  { %1232 = vmatmul.f32.vlgmr.msrb.gmra.mxu1 %v1080_v22  ;;  %1295 = vmatpush.msra.mxu2 %v1145_v10 }
 0x1e0   :  { %1296 = vmatpush.msra.mxu2 %v1144_v32 }
 0x1e2   :  { %900 = vrot.lane.b32.xlu0 %v862_v23, %s2392_s1 }
 0x1e3   :  { %898 = vrot.lane.b32.xlu2 %v2991_v9, %s2392_s1  ;;  %2338 = vmatmul.msk.f32.gmra.mxu3 %vm345_vm1, %v1112_v31  ;;  %v1115_v9 = vld [vmem:[#allocation3 + $0x118] sm:$0xff] }
 0x1e4   :  { %996 = vrot.lane.b32.xlu1 %v2925_v44, %s2393_s22 }
 0x1e5   :  { %v3173_v33 = vpop.permute.xlu2 %910 }
 0x1ea   :  { %676 = vrot.lane.b32.xlu0 %v862_v23, %s2393_s22 }
 0x1eb   :  { %803 = vrot.lane.b32.xlu2 %v2989_v8, %s2391_s17  ;;  %2339 = vmatmul.msk.f32.gmra.mxu3 %vm345_vm1, %v1115_v9 }
 0x1ec   :  { %805 = vrot.lane.b32.xlu1 %v2914_v50, %s2391_s17  ;;  %v792_v17 = vpop.permute.xlu0 %791 }
 0x1ed   :  { %v985_v44 = vpop.permute.xlu2 %984  ;;  %839 = vst.msk [vmem:[#allocation3 + $0x8] sm:$0xff] %vm516_vm3, %v792_v17 }
 0x1ee   :  { %v471_v19 = vpop.permute.xlu1 %470 }
 0x1ef   :  { %518 = vst.msk [vmem:[#allocation3 + $0x18] sm:$0xff] %vm516_vm3, %v471_v19 }
 0x1f0   :  { %615 = vst.msk [vmem:[#allocation3 + $0x18] sm:$0xff] %vm613_vm4, %v568_v21 }
 0x1f2   :  { %678 = vrot.lane.b32.xlu0 %v2974_v4, %s2393_s22  ;;  %v1121_v4 = vld [vmem:[#allocation3 + $0x148] sm:$0xff] }
 0x1f3   :  { %579 = vrot.lane.b32.xlu2 %v2989_v8, %s2392_s1  ;;  %2340 = vmatmul.msk.f32.gmra.mxu3 %vm345_vm1, %v1118_v48 }
 0x1f4   :  { %807 = vrot.lane.b32.xlu1 %v767_v34, %s2391_s17  ;;  %v3190_v36 = vpop.permute.xlu0 %1006 }
 0x1f5   :  { %v570_v50 = vpop.permute.xlu2 %569 }
 0x1f6   :  { %v889_v37 = vpop.permute.xlu1 %888 }
 0x1f7   :  { %936 = vst.msk [vmem:[#allocation3 + $0x8] sm:$0xff] %vm613_vm4, %v889_v37  ;;  %v967_v37 = vld [vmem:[#allocation2 + $0x131] sm:$0xff] }
 0x1f8   :  { %1032 = vst.msk [vmem:[#allocation3 + $0x8] sm:$0xff] %vm710_vm5, %v985_v44  ;;  %v870_v44 = vld [vmem:[#allocation2 + $0x120] sm:$0xff] }
 0x1fa   :  { %1000 = vrot.lane.b32.xlu0 %v3067_v45, %s2393_s22 }
 0x1fb   :  { %583 = vrot.lane.b32.xlu2 %v767_v34, %s2392_s1  ;;  %2341 = vmatmul.msk.f32.gmra.mxu3 %vm345_vm1, %v1121_v4 }
 0x1fc   :  { %486 = vrot.lane.b32.xlu1 %v2969_v1, %s2391_s17  ;;  %v665_v15 = vpop.permute.xlu0 %664 }
 0x1fd   :  { %v891_v8 = vpop.permute.xlu2 %890  ;;  %712 = vst.msk [vmem:[#allocation3 + $0x18] sm:$0xff] %vm710_vm5, %v665_v15 }
 0x1fe   :  { %v794_v28 = vpop.permute.xlu1 %793 }
 0x1ff   :  { %840 = vst.msk [vmem:[#allocation3 + $0x20] sm:$0xff] %vm516_vm3, %v794_v28  ;;  %v1081_v41 = vld [vmem:[#allocation3 + $0x8] sm:$0xff] }
 0x200   :  { %937 = vst.msk [vmem:[#allocation3 + $0x20] sm:$0xff] %vm613_vm4, %v891_v8  ;;  %1297 = vmatmul.f32.vlgmr.msra.gmra.mxu2 %v1081_v41 }
 0x202   :  { %680 = vrot.lane.b32.xlu0 %v3073_v49, %s2393_s22 }
 0x203   :  { %904 = vrot.lane.b32.xlu2 %v3073_v49, %s2392_s1  ;;  %2342 = vmatmul.msk.f32.gmra.mxu3 %vm345_vm1, %v1124_v46 }
 0x204   :  { %809 = vrot.lane.b32.xlu1 %v3065_v43, %s2391_s17  ;;  %v987_v53 = vpop.permute.xlu0 %986  ;;  %v1083_v52 = vld [vmem:[#allocation3 + $0x18] sm:$0xff] }
 0x205   :  { %v475_v1 = vpop.permute.xlu2 %474  ;;  %1235 = vmatmul.f32.gmra.mxu1 %v1083_v52  ;;  %1033 = vst.msk [vmem:[#allocation3 + $0x20] sm:$0xff] %vm710_vm5, %v987_v53 }
 0x206   :  { %v473_v38 = vpop.permute.xlu1 %472  ;;  %520 = vst.msk [vmem:[#allocation3 + $0x48] sm:$0xff] %vm516_vm3, %v475_v1 }
 0x207   :  { %519 = vst.msk [vmem:[#allocation3 + $0x30] sm:$0xff] %vm516_vm3, %v473_v38 }
 0x208   :  { %616 = vst.msk [vmem:[#allocation3 + $0x30] sm:$0xff] %vm613_vm4, %v570_v50  ;;  %v871_v50 = vld [vmem:[#allocation2 + $0x130] sm:$0xff] }
 0x20a   :  { %1002 = vrot.lane.b32.xlu0 %v3102_v58, %s2393_s22 }
 0x20b   :  { %585 = vrot.lane.b32.xlu2 %v3065_v43, %s2392_s1 }
 0x20c   :  { %488 = vrot.lane.b32.xlu1 %v3067_v45, %s2391_s17  ;;  %v667_v27 = vpop.permute.xlu0 %666  ;;  %v1084_v56 = vld [vmem:[#allocation3 + $0x20] sm:$0xff] }
 0x20d   :  { %v893_v49 = vpop.permute.xlu2 %892  ;;  %713 = vst.msk [vmem:[#allocation3 + $0x30] sm:$0xff] %vm710_vm5, %v667_v27  ;;  %1300 = vmatmul.f32.gmra.mxu2 %v1084_v56 }
 0x20e   :  { %v796_v55 = vpop.permute.xlu1 %795 }
 0x20f   :  { %841 = vst.msk [vmem:[#allocation3 + $0x38] sm:$0xff] %vm516_vm3, %v796_v55  ;;  %v3329_v55 = vld [vmem:[%s3872_s4] ss:$0 sm:$0xff] }
 0x210   :  { %938 = vst.msk [vmem:[#allocation3 + $0x38] sm:$0xff] %vm613_vm4, %v893_v49 }
 0x212   :  { %682 = vrot.lane.b32.xlu0 %v3104_v59, %s2393_s22 }
 0x213   :  { %906 = vrot.lane.b32.xlu2 %v3104_v59, %s2392_s1 }
 0x214   :  { %811 = vrot.lane.b32.xlu1 %v3100_v57, %s2391_s17  ;;  %v572_v45 = vpop.permute.xlu0 %571  ;;  %v1086_v61 = vld [vmem:[#allocation3 + $0x30] sm:$0xff] }
 0x215   :  { %v798_v43 = vpop.permute.xlu2 %797  ;;  %1238 = vmatmul.f32.gmra.mxu1 %v1086_v61  ;;  %617 = vst.msk [vmem:[#allocation3 + $0x48] sm:$0xff] %vm613_vm4, %v572_v45 }
 0x216   :  { %v669_v62 = vpop.permute.xlu1 %668  ;;  %842 = vst.msk [vmem:[#allocation3 + $0x50] sm:$0xff] %vm516_vm3, %v798_v43 }
 0x217   :  { %714 = vst.msk [vmem:[#allocation3 + $0x48] sm:$0xff] %vm710_vm5, %v669_v62  ;;  %v1363_v62 = vpop.f32.mrf.mxu3 }
 0x21a   :  { %912 = vrot.lane.b32.xlu0 %v2876_v30, %s2392_s1 }
 0x21b   :  { %587 = vrot.lane.b32.xlu2 %v3100_v57, %s2392_s1 }
 0x21c   :  { %490 = vrot.lane.b32.xlu1 %v3102_v58, %s2391_s17  ;;  %v989_v24 = vpop.permute.xlu0 %988 }
 0x21d   :  { %v671_v59 = vpop.permute.xlu2 %670  ;;  %1034 = vst.msk [vmem:[#allocation3 + $0x38] sm:$0xff] %vm710_vm5, %v989_v24 }
 0x21e   :  { %v574_v40 = vpop.permute.xlu1 %573  ;;  %v1089_v47 = vld [vmem:[#allocation3 + $0x48] sm:$0xff] }
 0x21f   :  { %1241 = vmatmul.f32.gmra.mxu1 %v1089_v47 }
 0x222   :  { %1004 = vrot.lane.b32.xlu0 %v3011_v20, %s2393_s22 }
 0x223   :  { %908 = vrot.lane.b32.xlu2 %v3003_v12, %s2392_s1 }
 0x224   :  { %1008 = vrot.lane.b32.xlu1 %v2874_v29, %s2393_s22  ;;  %v477_v63 = vpop.permute.xlu0 %476  ;;  %v1087_v2 = vld [vmem:[#allocation3 + $0x38] sm:$0xff] }
 0x225   :  { %v576_v57 = vpop.permute.xlu2 %575  ;;  %521 = vst.msk [vmem:[#allocation3 + $0x60] sm:$0xff] %vm516_vm3, %v477_v63  ;;  %1303 = vmatmul.f32.gmra.mxu2 %v1087_v2 }
 0x226   :  { %v991_v58 = vpop.permute.xlu1 %990  ;;  %618 = vst.msk [vmem:[#allocation3 + $0x60] sm:$0xff] %vm613_vm4, %v574_v40 }
 0x227   :  { %715 = vst.msk [vmem:[#allocation3 + $0x60] sm:$0xff] %vm710_vm5, %v671_v59 }
 0x22a   :  { %914 = vrot.lane.b32.xlu0 %v2906_v42, %s2392_s1 }
 0x22b   :  { %815 = vrot.lane.b32.xlu2 %v2817_v3, %s2391_s17 }
 0x22c   :  { %813 = vrot.lane.b32.xlu1 %v2985_v7, %s2391_s17  ;;  %v895_v6 = vpop.permute.xlu0 %894 }
 0x22d   :  { %v993_v60 = vpop.permute.xlu2 %992  ;;  %939 = vst.msk [vmem:[#allocation3 + $0x50] sm:$0xff] %vm613_vm4, %v895_v6 }
 0x22e   :  { %v479_v11 = vpop.permute.xlu1 %478  ;;  %v1092_v13 = vld [vmem:[#allocation3 + $0x60] sm:$0xff]  ;;  %1035 = vst.msk [vmem:[#allocation3 + $0x50] sm:$0xff] %vm710_vm5, %v991_v58 }
 0x22f   :  { %522 = vst.msk [vmem:[#allocation3 + $0x78] sm:$0xff] %vm516_vm3, %v479_v11  ;;  %1244 = vmatmul.f32.gmra.mxu1 %v1092_v13 }
 0x230   :  { %619 = vst.msk [vmem:[#allocation3 + $0x78] sm:$0xff] %vm613_vm4, %v576_v57 }
 0x232   :  { %684 = vrot.lane.b32.xlu0 %v3003_v12, %s2393_s22 }
 0x233   :  { %817 = vrot.lane.b32.xlu2 %v2858_v26, %s2391_s17 }
 0x234   :  { %686 = vrot.lane.b32.xlu1 %v2856_v25, %s2393_s22  ;;  %v800_v22 = vpop.permute.xlu0 %799 }
 0x235   :  { %v481_v21 = vpop.permute.xlu2 %480  ;;  %843 = vst.msk [vmem:[#allocation3 + $0x68] sm:$0xff] %vm516_vm3, %v800_v22  ;;  %v1090_v23 = vld [vmem:[#allocation3 + $0x50] sm:$0xff] }
 0x236   :  { %v897_v0 = vpop.permute.xlu1 %896  ;;  %523 = vst.msk [vmem:[#allocation3 + $0x90] sm:$0xff] %vm516_vm3, %v481_v21  ;;  %1306 = vmatmul.f32.gmra.mxu2 %v1090_v23 }
 0x237   :  { %940 = vst.msk [vmem:[#allocation3 + $0x68] sm:$0xff] %vm613_vm4, %v897_v0 }
 0x238   :  { %1036 = vst.msk [vmem:[#allocation3 + $0x68] sm:$0xff] %vm710_vm5, %v993_v60 }
 0x23a   :  { %589 = vrot.lane.b32.xlu0 %v2985_v7, %s2392_s1 }
 0x23b   :  { %492 = vrot.lane.b32.xlu2 %v3011_v20, %s2391_s17 }
 0x23c   :  { %1010 = vrot.lane.b32.xlu1 %v2903_v35, %s2393_s22  ;;  %v673_v12 = vpop.permute.xlu0 %672 }
 0x23d   :  { %v899_v25 = vpop.permute.xlu2 %898  ;;  %716 = vst.msk [vmem:[#allocation3 + $0x78] sm:$0xff] %vm710_vm5, %v673_v12  ;;  %v1366_v12 = vpop.f32.mrf.mxu3 }
 0x23e   :  { %v802_v10 = vpop.permute.xlu1 %801 }
 0x23f   :  { %844 = vst.msk [vmem:[#allocation3 + $0x80] sm:$0xff] %vm516_vm3, %v802_v10  ;;  %v1093_v31 = vld [vmem:[#allocation3 + $0x68] sm:$0xff] }
 0x240   :  { %941 = vst.msk [vmem:[#allocation3 + $0x80] sm:$0xff] %vm613_vm4, %v899_v25  ;;  %1309 = vmatmul.f32.gmra.mxu2 %v1093_v31 }
 0x242   :  { %591 = vrot.lane.b32.xlu0 %v2817_v3, %s2392_s1 }
 0x243   :  { %494 = vrot.lane.b32.xlu2 %v2834_v16, %s2391_s17 }
 0x244   :  { %688 = vrot.lane.b32.xlu1 %v2876_v30, %s2393_s22  ;;  %v578_v20 = vpop.permute.xlu0 %577  ;;  %v1095_v32 = vld [vmem:[#allocation3 + $0x78] sm:$0xff] }
 0x245   :  { %v804_v7 = vpop.permute.xlu2 %803  ;;  %1247 = vmatmul.f32.gmra.mxu1 %v1095_v32  ;;  %620 = vst.msk [vmem:[#allocation3 + $0x90] sm:$0xff] %vm613_vm4, %v578_v20 }
 0x246   :  { %845 = vst.msk [vmem:[#allocation3 + $0x98] sm:$0xff] %vm516_vm3, %v804_v7  ;;  %v675_v9 = vpop.permute.xlu1 %674 }
 0x247   :  { %717 = vst.msk [vmem:[#allocation3 + $0x90] sm:$0xff] %vm710_vm5, %v675_v9 }
 0x24a   :  { %916 = vrot.lane.b32.xlu0 %v870_v44, %s2392_s1 }
 0x24b   :  { %819 = vrot.lane.b32.xlu2 %v2891_v39, %s2391_s17 }
 0x24c   :  { %1012 = vrot.lane.b32.xlu1 %v2934_v54, %s2393_s22  ;;  %v995_v16 = vpop.permute.xlu0 %994 }
 0x24d   :  { %v580_v3 = vpop.permute.xlu2 %579  ;;  %1037 = vst.msk [vmem:[#allocation3 + $0x80] sm:$0xff] %vm710_vm5, %v995_v16 }
 0x24e   :  { %v483_v30 = vpop.permute.xlu1 %482  ;;  %v1098_v17 = vld [vmem:[#allocation3 + $0x90] sm:$0xff] }
 0x24f   :  { %524 = vst.msk [vmem:[#allocation3 + $0xa8] sm:$0xff] %vm516_vm3, %v483_v30  ;;  %1250 = vmatmul.f32.gmra.mxu1 %v1098_v17 }
 0x250   :  { %621 = vst.msk [vmem:[#allocation3 + $0xa8] sm:$0xff] %vm613_vm4, %v580_v3 }
 0x252   :  { %593 = vrot.lane.b32.xlu0 %v2858_v26, %s2392_s1 }
 0x253   :  { %496 = vrot.lane.b32.xlu2 %v2874_v29, %s2391_s17 }
 0x254   :  { %690 = vrot.lane.b32.xlu1 %v2906_v42, %s2393_s22  ;;  %v901_v19 = vpop.permute.xlu0 %900  ;;  %v1096_v34 = vld [vmem:[#allocation3 + $0x80] sm:$0xff] }
 0x255   :  { %v584_v54 = vpop.permute.xlu2 %583  ;;  %942 = vst.msk [vmem:[#allocation3 + $0x98] sm:$0xff] %vm613_vm4, %v901_v19  ;;  %1312 = vmatmul.f32.gmra.mxu2 %v1096_v34 }
 0x256   :  { %v997_v48 = vpop.permute.xlu1 %996 }
 0x257   :  { %1038 = vst.msk [vmem:[#allocation3 + $0x98] sm:$0xff] %vm710_vm5, %v997_v48 }
 0x25a   :  { %918 = vrot.lane.b32.xlu0 %v871_v50, %s2392_s1 }
 0x25b   :  { %821 = vrot.lane.b32.xlu2 %v2919_v51, %s2391_s17  ;;  %v1233_v43 = vpop.f32.mrf.mxu1 }
 0x25c   :  { %1014 = vrot.lane.b32.xlu1 %v967_v37, %s2393_s22  ;;  %v677_v29 = vpop.permute.xlu0 %676  ;;  %v1234_v45 = vadd.f32 %v3329_v55, %v1233_v43  ;;  %v1555_v37 = vld [vmem:[#allocation6 + $0x1] sm:$0xf] }
 0x25d   :  { %v905_v26 = vpop.permute.xlu2 %904  ;;  %718 = vst.msk [vmem:[#allocation3 + $0xa8] sm:$0xff] %vm710_vm5, %v677_v29 }
 0x25e   :  { %v806_v42 = vpop.permute.xlu1 %805  ;;  %v1099_v4 = vld [vmem:[#allocation3 + $0x98] sm:$0xff] }
 0x25f   :  { %846 = vst.msk [vmem:[#allocation3 + $0xb0] sm:$0xff] %vm516_vm3, %v806_v42  ;;  %1315 = vmatmul.f32.gmra.mxu2 %v1099_v4 }
 0x260   :  { %943 = vst.msk [vmem:[#allocation3 + $0xb0] sm:$0xff] %vm613_vm4, %v2696_v5 }
 0x261   :  { %1039 = vst.msk [vmem:[#allocation3 + $0xb0] sm:$0xff] %vm710_vm5, %v2706_v18 }
 0x262   :  { %595 = vrot.lane.b32.xlu0 %v2891_v39, %s2392_s1 }
 0x263   :  { %498 = vrot.lane.b32.xlu2 %v2903_v35, %s2391_s17 }
 0x264   :  { %692 = vrot.lane.b32.xlu1 %v870_v44, %s2393_s22  ;;  %v679_v8 = vpop.permute.xlu0 %678  ;;  %v1101_v15 = vld [vmem:[#allocation3 + $0xa8] sm:$0xff] }
 0x265   :  { %v586_v51 = vpop.permute.xlu2 %585  ;;  %719 = vst.msk [vmem:[#allocation3 + $0xc0] sm:$0xff] %vm710_vm5, %v679_v8  ;;  %1253 = vmatmul.f32.gmra.mxu1 %v1101_v15 }
 0x266   :  { %v808_v28 = vpop.permute.xlu1 %807 }
 0x267   :  { %847 = vst.msk [vmem:[#allocation3 + $0xc8] sm:$0xff] %vm516_vm3, %v808_v28 }
 0x268   :  { %944 = vst.msk [vmem:[#allocation3 + $0xc8] sm:$0xff] %vm613_vm4, %v905_v26  ;;  %v1102_v5 = vld [vmem:[#allocation3 + $0xb0] sm:$0xff]  ;;  %v1369_v26 = vpop.f32.mrf.mxu3 }
 0x269   :  { %1318 = vmatmul.f32.gmra.mxu2 %v1102_v5 }
 0x26b   :  { %1571 = vrot.lane.b32.xlu2 %v1555_v37, %s2392_s1 }
 0x26c   :  { %v1001_v39 = vpop.permute.xlu0 %1000  ;;  %v1104_v41 = vld [vmem:[#allocation3 + $0xc0] sm:$0xff] }
 0x26d   :  { %v907_v18 = vpop.permute.xlu2 %906  ;;  %1040 = vst.msk [vmem:[#allocation3 + $0xc8] sm:$0xff] %vm710_vm5, %v1001_v39  ;;  %1256 = vmatmul.f32.gmra.mxu1 %v1104_v41 }
 0x26e   :  { %v487_v46 = vpop.permute.xlu1 %486 }
 0x26f   :  { %526 = vst.msk [vmem:[#allocation3 + $0xd8] sm:$0xff] %vm516_vm3, %v487_v46 }
 0x270   :  { %623 = vst.msk [vmem:[#allocation3 + $0xd8] sm:$0xff] %vm613_vm4, %v584_v54 }
 0x274   :  { %v681_v1 = vpop.permute.xlu0 %680  ;;  %v1105_v53 = vld [vmem:[#allocation3 + $0xc8] sm:$0xff] }
 0x275   :  { %v588_v35 = vpop.permute.xlu2 %587  ;;  %720 = vst.msk [vmem:[#allocation3 + $0xd8] sm:$0xff] %vm710_vm5, %v681_v1  ;;  %1321 = vmatmul.f32.gmra.mxu2 %v1105_v53 }
 0x276   :  { %v810_v52 = vpop.permute.xlu1 %809 }
 0x277   :  { %848 = vst.msk [vmem:[#allocation3 + $0xe0] sm:$0xff] %vm516_vm3, %v810_v52 }
 0x278   :  { %945 = vst.msk [vmem:[#allocation3 + $0xe0] sm:$0xff] %vm613_vm4, %v907_v18 }
 0x27c   :  { %v1003_v49 = vpop.permute.xlu0 %1002  ;;  %v1107_v27 = vld [vmem:[#allocation3 + $0xd8] sm:$0xff] }
 0x27d   :  { %v909_v38 = vpop.permute.xlu2 %908  ;;  %1041 = vst.msk [vmem:[#allocation3 + $0xe0] sm:$0xff] %vm710_vm5, %v1003_v49  ;;  %1259 = vmatmul.f32.gmra.mxu1 %v1107_v27  ;;  %v1372_v49 = vpop.f32.mrf.mxu3 }
 0x27e   :  { %v489_v56 = vpop.permute.xlu1 %488 }
 0x27f   :  { %527 = vst.msk [vmem:[#allocation3 + $0xf0] sm:$0xff] %vm516_vm3, %v489_v56  ;;  %v1063_v56 = vld [vmem:[#allocation2 + $0x132] sm:$0xff] }
 0x280   :  { %624 = vst.msk [vmem:[#allocation3 + $0xf0] sm:$0xff] %vm613_vm4, %v586_v51 }
 0x281   :  { %1079 = vst.msk [vmem:[#allocation3 + $0x178] sm:$0xff] %vm345_vm1, %v1063_v56 }
 0x282   :  { %v1236_v11 = vpop.f32.mrf.mxu1 }
 0x283   :  { %v1298_v61 = vpop.f32.mrf.mxu2  ;;  %v1237_v21 = vadd.f32 %v3329_v55, %v1236_v11 }
 0x284   :  { %v1299_v59 = vadd.f32 %v1298_v61, %v1234_v45  ;;  %v683_v40 = vpop.permute.xlu0 %682  ;;  %v1108_v47 = vld [vmem:[#allocation3 + $0xe0] sm:$0xff] }
 0x285   :  { %v816_v24 = vpop.permute.xlu2 %815  ;;  %1324 = vmatmul.f32.gmra.mxu2 %v1108_v47  ;;  %721 = vst.msk [vmem:[#allocation3 + $0xf0] sm:$0xff] %vm710_vm5, %v683_v40 }
 0x286   :  { %v1364_v57 = vadd.f32 %v1363_v62, %v1299_v59  ;;  %851 = vst.msk [vmem:[#allocation3 + $0x128] sm:$0xff] %vm516_vm3, %v816_v24  ;;  %v812_v63 = vpop.permute.xlu1 %811 }
 0x287   :  { %849 = vst.msk [vmem:[#allocation3 + $0xf8] sm:$0xff] %vm516_vm3, %v812_v63 }
 0x288   :  { %v1411_v2 = vmax.f32 %v1364_v57, 0.0  ;;  %946 = vst.msk [vmem:[#allocation3 + $0xf8] sm:$0xff] %vm613_vm4, %v909_v38 }
 0x28a   :  { %1428 = vst.msk [vmem:[#allocation4] sm:$0xff] %vm1427_vm6, %v1411_v2  ;;  %v1559_v2 = vld [vmem:[#allocation6 + $0x31] sm:$0xf] }
 0x28c   :  { %v913_v60 = vpop.permute.xlu0 %912  ;;  %v1110_v13 = vld [vmem:[#allocation3 + $0xf0] sm:$0xff] }
 0x28d   :  { %v818_v58 = vpop.permute.xlu2 %817  ;;  %948 = vst.msk [vmem:[#allocation3 + $0x128] sm:$0xff] %vm613_vm4, %v913_v60  ;;  %1262 = vmatmul.f32.gmra.mxu1 %v1110_v13  ;;  %v1375_v13 = vpop.f32.mrf.mxu3 }
 0x28e   :  { %852 = vst.msk [vmem:[#allocation3 + $0x140] sm:$0xff] %vm516_vm3, %v818_v58  ;;  %v491_v6 = vpop.permute.xlu1 %490 }
 0x28f   :  { %528 = vst.msk [vmem:[#allocation3 + $0x108] sm:$0xff] %vm516_vm3, %v491_v6  ;;  %v1127_v6 = vld [vmem:[#allocation3 + $0x178] sm:$0xff] }
 0x290   :  { %625 = vst.msk [vmem:[#allocation3 + $0x108] sm:$0xff] %vm613_vm4, %v588_v35  ;;  %v1301_v22 = vpop.f32.mrf.mxu2  ;;  %2343 = vmatmul.msk.f32.gmra.mxu3 %vm345_vm1, %v1127_v6 }
 0x291   :  { %v1302_v0 = vadd.f32 %v1301_v22, %v1237_v21  ;;  %v1444_v3 = vld [vmem:[#allocation4] sm:$0xff] }
 0x292   :  { %v1239_v17 = vpop.f32.mrf.mxu1 }
 0x293   :  { %v1367_v31 = vadd.f32 %v1366_v12, %v1302_v0 }
 0x294   :  { %v1005_v25 = vpop.permute.xlu0 %1004 }
 0x295   :  { %v493_v23 = vpop.permute.xlu2 %492  ;;  %1042 = vst.msk [vmem:[#allocation3 + $0xf8] sm:$0xff] %vm710_vm5, %v1005_v25  ;;  %v1412_v7 = vmax.f32 %v1367_v31, 0.0 }
 0x296   :  { %529 = vst.msk [vmem:[#allocation3 + $0x120] sm:$0xff] %vm516_vm3, %v493_v23  ;;  %v1009_v10 = vpop.permute.xlu1 %1008 }
 0x297   :  { %1044 = vst.msk [vmem:[#allocation3 + $0x128] sm:$0xff] %vm710_vm5, %v1009_v10 }
 0x298   :  { %1429 = vst.msk [vmem:[#allocation4 + $0x8] sm:$0xff] %vm1427_vm6, %v1412_v7 }
 0x29c   :  { %v915_v9 = vpop.permute.xlu0 %914  ;;  %v1111_v44 = vld [vmem:[#allocation3 + $0xf8] sm:$0xff]  ;;  %v1242_v35 = vpop.f32.mrf.mxu1 }
 0x29d   :  { %v495_v20 = vpop.permute.xlu2 %494  ;;  %1327 = vmatmul.f32.gmra.mxu2 %v1111_v44  ;;  %949 = vst.msk [vmem:[#allocation3 + $0x140] sm:$0xff] %vm613_vm4, %v915_v9  ;;  %v1243_v27 = vadd.f32 %v3329_v55, %v1242_v35 }
 0x29e   :  { %530 = vst.msk [vmem:[#allocation3 + $0x138] sm:$0xff] %vm516_vm3, %v495_v20  ;;  %v814_v32 = vpop.permute.xlu1 %813  ;;  %v1117_v14 = vld [vmem:[#allocation3 + $0x128] sm:$0xff] }
 0x29f   :  { %850 = vst.msk [vmem:[#allocation3 + $0x110] sm:$0xff] %vm516_vm3, %v814_v32  ;;  %v1453_v16 = vld [vmem:[#allocation4 + $0x8] sm:$0xff] }
 0x2a0   :  { %947 = vst.msk [vmem:[#allocation3 + $0x110] sm:$0xff] %vm613_vm4, %v3173_v33  ;;  %v1461_v30 = vmax.f32 %v1444_v3, %v1453_v16 }
 0x2a1   :  { %1043 = vst.msk [vmem:[#allocation3 + $0x110] sm:$0xff] %vm710_vm5, %v3190_v36  ;;  %v1240_v36 = vadd.f32 %v3329_v55, %v1239_v17 }
 0x2a2   :  { %1469 = vst.msk [vmem:[#allocation5] sm:$0xff] %vm1427_vm6, %v1461_v30 }
 0x2a4   :  { %v685_v19 = vpop.permute.xlu0 %684 }
 0x2a5   :  { %v820_v54 = vpop.permute.xlu2 %819  ;;  %722 = vst.msk [vmem:[#allocation3 + $0x108] sm:$0xff] %vm710_vm5, %v685_v19 }
 0x2a6   :  { %853 = vst.msk [vmem:[#allocation3 + $0x158] sm:$0xff] %vm516_vm3, %v820_v54  ;;  %v687_v33 = vpop.permute.xlu1 %686 }
 0x2a8   :  { %v1114_v34 = vld [vmem:[#allocation3 + $0x110] sm:$0xff]  ;;  %v1304_v48 = vpop.f32.mrf.mxu2 }
 0x2a9   :  { %1330 = vmatmul.f32.gmra.mxu2 %v1114_v34  ;;  %v1305_v50 = vadd.f32 %v1304_v48, %v1240_v36  ;;  %v1477_v42 = vld [vmem:[#allocation5] ss:$2 sm:$0xf]  ;;  %v1493_v4 = vld [vmem:[#allocation5 + $0x1] ss:$2 sm:$0xf]  ;;  %v1378_v48 = vpop.f32.mrf.mxu3 }
 0x2aa   :  { %v1508_v18 = vmax.f32 %v1477_v42, %v1493_v4 }
 0x2ab   :  { %v1370_v29 = vadd.f32 %v1369_v26, %v1305_v50 }
 0x2ac   :  { %v590_v28 = vpop.permute.xlu0 %589  ;;  %v1113_v5 = vld [vmem:[#allocation3 + $0x108] sm:$0xff]  ;;  %1531 = vst.msk [vmem:[#allocation6 + $0x9] sm:$0xf] %vm1530_vm8, %v1508_v18  ;;  %v1245_v63 = vpop.f32.mrf.mxu1 }
 0x2ad   :  { %v497_v51 = vpop.permute.xlu2 %496  ;;  %v1413_v8 = vmax.f32 %v1370_v29, 0.0  ;;  %1265 = vmatmul.f32.gmra.mxu1 %v1113_v5  ;;  %626 = vst.msk [vmem:[#allocation3 + $0x120] sm:$0xff] %vm613_vm4, %v590_v28  ;;  %v1246_v60 = vadd.f32 %v3329_v55, %v1245_v63 }
 0x2ae   :  { %531 = vst.msk [vmem:[#allocation3 + $0x150] sm:$0xff] %vm516_vm3, %v497_v51  ;;  %v1011_v15 = vpop.permute.xlu1 %1010 }
 0x2af   :  { %1045 = vst.msk [vmem:[#allocation3 + $0x140] sm:$0xff] %vm710_vm5, %v1011_v15 }
 0x2b0   :  { %1430 = vst.msk [vmem:[#allocation4 + $0x10] sm:$0xff] %vm1427_vm6, %v1413_v8 }
 0x2b1   :  { %1333 = vmatmul.f32.gmra.mxu2 %v1117_v14  ;;  %723 = vst.msk [vmem:[#allocation3 + $0x120] sm:$0xff] %vm710_vm5, %v687_v33 }
 0x2b3   :  { %v1556_v52 = vld [vmem:[#allocation6 + $0x9] sm:$0xf] }
 0x2b4   :  { %v592_v46 = vpop.permute.xlu0 %591  ;;  %v1540_v38 = vld [vmem:[#allocation6 + $0x8] sm:$0xf]  ;;  %1573 = vrot.lane.b32.xlu0 %v1556_v52, %s2392_s1 }
 0x2b5   :  { %v822_v39 = vpop.permute.xlu2 %821  ;;  %627 = vst.msk [vmem:[#allocation3 + $0x138] sm:$0xff] %vm613_vm4, %v592_v46  ;;  %v1605_v43 = vld [vmem:[#allocation6 + $0xa] sm:$0xf]  ;;  %v1381_v46 = vpop.f32.mrf.mxu3 }
 0x2b6   :  { %854 = vst.msk [vmem:[#allocation3 + $0x170] sm:$0xff] %vm516_vm3, %v822_v39  ;;  %v689_v41 = vpop.permute.xlu1 %688  ;;  %v1120_v1 = vld [vmem:[#allocation3 + $0x140] sm:$0xff]  ;;  %v1668_v40 = vld [vmem:[#allocation6 + $0x9] sm:$0xf] }
 0x2b7   :  { %724 = vst.msk [vmem:[#allocation3 + $0x138] sm:$0xff] %vm710_vm5, %v689_v41  ;;  %v1445_v10 = vld [vmem:[#allocation4 + $0x10] sm:$0xff]  ;;  %v1620_v7 = vld [vmem:[#allocation6 + $0x8] sm:$0xf] }
 0x2b8   :  { %v1116_v53 = vld [vmem:[#allocation3 + $0x120] sm:$0xff]  ;;  %1548 = vst.msk [vmem:[#allocation7 + $0x28] sm:$0xf] %vm1530_vm8, %v1540_v38  ;;  %v1868_v38 = vld [vmem:[%s3873_s5 + $0x78] sm:$0xff] }
 0x2b9   :  { %1336 = vmatmul.f32.gmra.mxu2 %v1120_v1  ;;  %1268 = vmatmul.f32.gmra.mxu1 %v1116_v53  ;;  %v1307_v45 = vpop.f32.mrf.mxu2  ;;  %1613 = vst.msk [vmem:[#allocation7 + $0x30] sm:$0xf] %vm1530_vm8, %v1605_v43 }
 0x2ba   :  { %v1308_v61 = vadd.f32 %v1307_v45, %v1243_v27  ;;  %1676 = vst.msk [vmem:[#allocation7 + $0x10] sm:$0xf] %vm1530_vm8, %v1668_v40  ;;  %1953 = vmatpush.msrb.mxu0 %v1868_v38 }
 0x2bc   :  { %v917_v24 = vpop.permute.xlu0 %916  ;;  %v1373_v47 = vadd.f32 %v1372_v49, %v1308_v61  ;;  %1579 = vrot.lane.b32.xlu0 %v1559_v2, %s2392_s1  ;;  %v1865_v2 = vld [vmem:[%s3873_s5 + $0x60] sm:$0xff] }
 0x2bd   :  { %v499_v62 = vpop.permute.xlu2 %498  ;;  %950 = vst.msk [vmem:[#allocation3 + $0x158] sm:$0xff] %vm613_vm4, %v917_v24  ;;  %v1384_v61 = vpop.f32.mrf.mxu3 }
 0x2be   :  { %532 = vst.msk [vmem:[#allocation3 + $0x168] sm:$0xff] %vm516_vm3, %v499_v62  ;;  %v1013_v59 = vpop.permute.xlu1 %1012  ;;  %v1119_v57 = vld [vmem:[#allocation3 + $0x138] sm:$0xff]  ;;  %v1414_v58 = vmax.f32 %v1373_v47, 0.0 }
 0x2bf   :  { %1046 = vst.msk [vmem:[#allocation3 + $0x158] sm:$0xff] %vm710_vm5, %v1013_v59  ;;  %v1867_v59 = vld [vmem:[%s3873_s5 + $0x70] sm:$0xff] }
 0x2c0   :  { %1431 = vst.msk [vmem:[#allocation4 + $0x18] sm:$0xff] %vm1427_vm6, %v1414_v58  ;;  %1954 = vmatpush.msrb.mxu0 %v1867_v59 }
 0x2c1   :  { %1271 = vmatmul.f32.gmra.mxu1 %v1119_v57  ;;  %v1866_v57 = vld [vmem:[%s3873_s5 + $0x68] sm:$0xff] }
 0x2c2   :  { %v1248_v3 = vpop.f32.mrf.mxu1  ;;  %1955 = vmatpush.msrb.mxu0 %v1866_v57  ;;  %v1873_v57 = vld [vmem:[%s3873_s5 + $0xa0] sm:$0xff] }
 0x2c3   :  { %v1310_v11 = vpop.f32.mrf.mxu2  ;;  %v1249_v36 = vadd.f32 %v3329_v55, %v1248_v3 }
 0x2c4   :  { %v1311_v21 = vadd.f32 %v1310_v11, %v1246_v60  ;;  %v594_v0 = vpop.permute.xlu0 %593  ;;  %1636 = vrot.lane.b32.xlu0 %v1620_v7, %s2392_s1  ;;  %1956 = vmatpush.msrb.mxu0 %v1865_v2  ;;  %v1864_v60 = vld [vmem:[%s3873_s5 + $0x58] sm:$0xff]  ;;  %v1863_v11 = vld [vmem:[%s3873_s5 + $0x50] sm:$0xff] }
 0x2c5   :  { %628 = vst.msk [vmem:[#allocation3 + $0x150] sm:$0xff] %vm613_vm4, %v594_v0  ;;  %v1872_v2 = vld [vmem:[%s3873_s5 + $0x98] sm:$0xff] }
 0x2c6   :  { %v691_v22 = vpop.permute.xlu1 %690  ;;  %v1376_v23 = vadd.f32 %v1375_v13, %v1311_v21  ;;  %v1123_v25 = vld [vmem:[#allocation3 + $0x158] sm:$0xff]  ;;  %1957 = vmatpush.msrb.mxu0 %v1864_v60  ;;  %v1543_v60 = vld [vmem:[#allocation6 + $0x30] sm:$0xf] }
 0x2c7   :  { %725 = vst.msk [vmem:[#allocation3 + $0x150] sm:$0xff] %vm710_vm5, %v691_v22  ;;  %1339 = vmatmul.f32.gmra.mxu2 %v1123_v25  ;;  %v1454_v31 = vld [vmem:[#allocation4 + $0x18] sm:$0xff]  ;;  %v1387_v25 = vpop.f32.mrf.mxu3 }
 0x2c8   :  { %v1415_v12 = vmax.f32 %v1376_v23, 0.0  ;;  %v1462_v20 = vmax.f32 %v1445_v10, %v1454_v31  ;;  %1958 = vmatpush.msrb.mxu0 %v1863_v11  ;;  %v1862_v23 = vld [vmem:[%s3873_s5 + $0x48] sm:$0xff]  ;;  %v1861_v10 = vld [vmem:[%s3873_s5 + $0x40] sm:$0xff]  ;;  %1551 = vst.msk [vmem:[#allocation7 + $0xa0] sm:$0xf] %vm1530_vm8, %v1543_v60  ;;  %v1899_v60 = vld [vmem:[%s3873_s5 + $0x170] sm:$0xff] }
 0x2ca   :  { %1432 = vst.msk [vmem:[#allocation4 + $0x20] sm:$0xff] %vm1427_vm6, %v1415_v12  ;;  %1959 = vmatpush.msrb.mxu0 %v1862_v23 }
 0x2cb   :  { %1470 = vst.msk [vmem:[#allocation5 + $0x8] sm:$0xff] %vm1427_vm6, %v1462_v20 }
 0x2cc   :  { %v919_v9 = vpop.permute.xlu0 %918  ;;  %v1251_v26 = vpop.f32.mrf.mxu1  ;;  %1960 = vmatpush.msrb.mxu0 %v1861_v10 }
 0x2cd   :  { %951 = vst.msk [vmem:[#allocation3 + $0x170] sm:$0xff] %vm613_vm4, %v919_v9  ;;  %v1252_v8 = vadd.f32 %v3329_v55, %v1251_v26  ;;  %v1539_v9 = vld [vmem:[#allocation6] sm:$0xf] }
 0x2ce   :  { %v1015_v32 = vpop.permute.xlu1 %1014  ;;  %v1122_v44 = vld [vmem:[#allocation3 + $0x150] sm:$0xff]  ;;  %1547 = vst.msk [vmem:[#allocation7] sm:$0xf] %vm1530_vm8, %v1539_v9 }
 0x2cf   :  { %1047 = vst.msk [vmem:[#allocation3 + $0x170] sm:$0xff] %vm710_vm5, %v1015_v32  ;;  %1274 = vmatmul.f32.gmra.mxu1 %v1122_v44  ;;  %v1860_v32 = vld [vmem:[%s3873_s5 + $0x38] sm:$0xff] }
 0x2d0   :  { %v1884_v44 = vld [vmem:[%s3873_s5 + $0xf8] sm:$0xff]  ;;  %1961 = vmatpush.msrb.mxu0 %v1860_v32 }
 0x2d1   :  { %v1446_v1 = vld [vmem:[#allocation4 + $0x20] sm:$0xff]  ;;  %1994 = vmatpush.msrb.mxu3 %v1884_v44 }
 0x2d2   :  { %v1479_v16 = vld [vmem:[#allocation5 + $0x8] ss:$2 sm:$0xf]  ;;  %v1495_v30 = vld [vmem:[#allocation5 + $0x9] ss:$2 sm:$0xf] }
 0x2d3   :  { %v1509_v17 = vmax.f32 %v1479_v16, %v1495_v30  ;;  %v1859_v30 = vld [vmem:[%s3873_s5 + $0x30] sm:$0xff] }
 0x2d4   :  { %v596_v33 = vpop.permute.xlu0 %595  ;;  %1962 = vmatpush.msrb.mxu0 %v1859_v30 }
 0x2d5   :  { %629 = vst.msk [vmem:[#allocation3 + $0x168] sm:$0xff] %vm613_vm4, %v596_v33  ;;  %v1858_v33 = vld [vmem:[%s3873_s5 + $0x28] sm:$0xff] }
 0x2d6   :  { %v693_v54 = vpop.permute.xlu1 %692  ;;  %v1126_v19 = vld [vmem:[#allocation3 + $0x170] sm:$0xff]  ;;  %1532 = vst.msk [vmem:[#allocation6 + $0x11] sm:$0xf] %vm1530_vm8, %v1509_v17  ;;  %1963 = vmatpush.msrb.mxu0 %v1858_v33 }
 0x2d7   :  { %726 = vst.msk [vmem:[#allocation3 + $0x168] sm:$0xff] %vm710_vm5, %v693_v54  ;;  %1342 = vmatmul.f32.gmra.mxu2 %v1126_v19 }
 0x2d8   :  { %v1313_v34 = vpop.f32.mrf.mxu2 }
 0x2d9   :  { %v1314_v50 = vadd.f32 %v1313_v34, %v1249_v36  ;;  %v1857_v34 = vld [vmem:[%s3873_s5 + $0x20] sm:$0xff] }
 0x2da   :  { %1964 = vmatpush.msrb.mxu0 %v1857_v34 }
 0x2db   :  { %v1379_v37 = vadd.f32 %v1378_v48, %v1314_v50 }
 0x2dd   :  { %v1416_v29 = vmax.f32 %v1379_v37, 0.0  ;;  %v1621_v4 = vld [vmem:[#allocation6 + $0x10] sm:$0xf] }
 0x2de   :  { %v1125_v42 = vld [vmem:[#allocation3 + $0x168] sm:$0xff]  ;;  %v1557_v51 = vld [vmem:[#allocation6 + $0x11] sm:$0xf]  ;;  %1638 = vrot.lane.b32.xlu0 %v1621_v4, %s2392_s1 }
 0x2df   :  { %1433 = vst.msk [vmem:[#allocation4 + $0x28] sm:$0xff] %vm1427_vm6, %v1416_v29  ;;  %1277 = vmatmul.f32.gmra.mxu1 %v1125_v42  ;;  %1575 = vrot.lane.b32.xlu1 %v1557_v51, %s2392_s1  ;;  %v1541_v15 = vld [vmem:[#allocation6 + $0x10] sm:$0xf]  ;;  %v1572_v29 = vpop.permute.xlu2 %1571  ;;  %v1856_v42 = vld [vmem:[%s3873_s5 + $0x18] sm:$0xff] }
 0x2e0   :  { %v1606_v28 = vld [vmem:[#allocation6 + $0x12] sm:$0xf]  ;;  %1549 = vst.msk [vmem:[#allocation7 + $0x50] sm:$0xf] %vm1530_vm8, %v1541_v15  ;;  %1965 = vmatpush.msrb.mxu0 %v1856_v42 }
 0x2e1   :  { %v1733_v18 = vld [vmem:[#allocation6 + $0x10] sm:$0xf]  ;;  %1614 = vst.msk [vmem:[#allocation7 + $0x58] sm:$0xf] %vm1530_vm8, %v1606_v28 }
 0x2e2   :  { %v1316_v5 = vpop.f32.mrf.mxu2  ;;  %v1669_v39 = vld [vmem:[#allocation6 + $0x11] sm:$0xf]  ;;  %1741 = vst.msk [vmem:[#allocation7 + $0x18] sm:$0xf] %vm1530_vm8, %v1733_v18  ;;  %v1254_v27 = vpop.f32.mrf.mxu1  ;;  %v1882_v18 = vld [vmem:[%s3873_s5 + $0xe8] sm:$0xff] }
 0x2e3   :  { %v1317_v14 = vadd.f32 %v1316_v5, %v1252_v8  ;;  %v1797_v41 = vld [vmem:[#allocation6 + $0x12] sm:$0xf]  ;;  %1677 = vst.msk [vmem:[#allocation7 + $0x38] sm:$0xf] %vm1530_vm8, %v1669_v39  ;;  %v1255_v56 = vadd.f32 %v3329_v55, %v1254_v27  ;;  %v1854_v5 = vld [vmem:[%s3873_s5 + $0x8] sm:$0xff] }
 0x2e4   :  { %1805 = vst.msk [vmem:[#allocation7 + $0x20] sm:$0xf] %vm1530_vm8, %v1797_v41  ;;  %v1855_v51 = vld [vmem:[%s3873_s5 + $0x10] sm:$0xff]  ;;  %v1853_v41 = vld [vmem:[%s3873_s5] sm:$0xff] }
 0x2e5   :  { %v1382_v35 = vadd.f32 %v1381_v46, %v1317_v14  ;;  %1596 = vst.msk [vmem:[#allocation7] sm:$0xf] %vm1595_vm9, %v1572_v29  ;;  %v1883_v8 = vld [vmem:[%s3873_s5 + $0xf0] sm:$0xff]  ;;  %1966 = vmatpush.msrb.mxu0 %v1855_v51  ;;  %v1390_v14 = vpop.f32.mrf.mxu3  ;;  %v1881_v46 = vld [vmem:[%s3873_s5 + $0xe0] sm:$0xff] }
 0x2e6   :  { %v1455_v53 = vld [vmem:[#allocation4 + $0x28] sm:$0xff]  ;;  %1995 = vmatpush.msrb.mxu3 %v1883_v8  ;;  %v1879_v27 = vld [vmem:[%s3873_s5 + $0xd0] sm:$0xff] }
 0x2e7   :  { %v1417_v52 = vmax.f32 %v1382_v35, 0.0  ;;  %v1463_v49 = vmax.f32 %v1446_v1, %v1455_v53  ;;  %1967 = vmatpush.msrb.mxu0 %v1854_v5 }
 0x2e8   :  { %1996 = vmatpush.msrb.mxu3 %v1882_v18 }
 0x2e9   :  { %1434 = vst.msk [vmem:[#allocation4 + $0x30] sm:$0xff] %vm1427_vm6, %v1417_v52  ;;  %1968 = vmatpush.msrb.mxu0 %v1853_v41  ;;  %v1880_v52 = vld [vmem:[%s3873_s5 + $0xd8] sm:$0xff] }
 0x2ea   :  { %1471 = vst.msk [vmem:[#allocation5 + $0x10] sm:$0xff] %vm1427_vm6, %v1463_v49  ;;  %v1257_v58 = vpop.f32.mrf.mxu1  ;;  %1997 = vmatpush.msrb.mxu3 %v1881_v46 }
 0x2eb   :  { %v1258_v6 = vadd.f32 %v3329_v55, %v1257_v58 }
 0x2ec   :  { %v1319_v43 = vpop.f32.mrf.mxu2  ;;  %v1813_v35 = vld [vmem:[#allocation7] sm:$0xff]  ;;  %1998 = vmatpush.msrb.mxu3 %v1880_v52 }
 0x2ed   :  { %v1320_v45 = vadd.f32 %v1319_v43, %v1255_v56  ;;  %1969 = vmatmul.f32.vlgmr.msrb.gmra.mxu0 %v1813_v35  ;;  %v1878_v43 = vld [vmem:[%s3873_s5 + $0xc8] sm:$0xff]  ;;  %v1393_v10 = vpop.f32.mrf.mxu3 }
 0x2ee   :  { %1999 = vmatpush.msrb.mxu3 %v1879_v27 }
 0x2ef   :  { %v1385_v62 = vadd.f32 %v1384_v61, %v1320_v45  ;;  %v1877_v45 = vld [vmem:[%s3873_s5 + $0xc0] sm:$0xff]  ;;  %v1876_v61 = vld [vmem:[%s3873_s5 + $0xb8] sm:$0xff] }
 0x2f0   :  { %v1447_v21 = vld [vmem:[#allocation4 + $0x30] sm:$0xff]  ;;  %2000 = vmatpush.msrb.mxu3 %v1878_v43 }
 0x2f1   :  { %v1418_v24 = vmax.f32 %v1385_v62, 0.0  ;;  %v1481_v40 = vld [vmem:[#allocation5 + $0x10] ss:$2 sm:$0xf] }
 0x2f2   :  { %v1497_v47 = vld [vmem:[#allocation5 + $0x11] ss:$2 sm:$0xf]  ;;  %2001 = vmatpush.msrb.mxu3 %v1877_v45 }
 0x2f3   :  { %1435 = vst.msk [vmem:[#allocation4 + $0x38] sm:$0xff] %vm1427_vm6, %v1418_v24  ;;  %v1510_v63 = vmax.f32 %v1481_v40, %v1497_v47  ;;  %v1875_v40 = vld [vmem:[%s3873_s5 + $0xb0] sm:$0xff]  ;;  %v1874_v47 = vld [vmem:[%s3873_s5 + $0xa8] sm:$0xff] }
 0x2f4   :  { %2002 = vmatpush.msrb.mxu3 %v1876_v61 }
 0x2f5   :  { %1533 = vst.msk [vmem:[#allocation6 + $0x19] sm:$0xf] %vm1530_vm8, %v1510_v63  ;;  %v1604_v63 = vld [vmem:[#allocation6 + $0x2] sm:$0xf]  ;;  %v1396_v33 = vpop.f32.mrf.mxu3 }
 0x2f6   :  { %2003 = vmatpush.msrb.mxu3 %v1875_v40  ;;  %1612 = vst.msk [vmem:[#allocation7 + $0x8] sm:$0xf] %vm1530_vm8, %v1604_v63  ;;  %v1916_v40 = vld [vmem:[%s3873_s5 + $0x1f8] sm:$0xff] }
 0x2f7   :  { %2076 = vmatpush.msrb.mxu2 %v1916_v40  ;;  %v1893_v40 = vld [vmem:[%s3873_s5 + $0x140] sm:$0xff] }
 0x2f8   :  { %v1322_v13 = vpop.f32.mrf.mxu2  ;;  %2004 = vmatpush.msrb.mxu3 %v1874_v47  ;;  %v1900_v47 = vld [vmem:[%s3873_s5 + $0x178] sm:$0xff] }
 0x2f9   :  { %v1323_v0 = vadd.f32 %v1322_v13, %v1258_v6  ;;  %v1871_v6 = vld [vmem:[%s3873_s5 + $0x90] sm:$0xff]  ;;  %2035 = vmatpush.msra.mxu1 %v1900_v47 }
 0x2fa   :  { %v1456_v22 = vld [vmem:[#allocation4 + $0x38] sm:$0xff]  ;;  %v1260_v37 = vpop.f32.mrf.mxu1  ;;  %2005 = vmatpush.msrb.mxu3 %v1873_v57  ;;  %v1915_v57 = vld [vmem:[%s3873_s5 + $0x1f0] sm:$0xff] }
 0x2fb   :  { %v1464_v12 = vmax.f32 %v1447_v21, %v1456_v22  ;;  %v1388_v31 = vadd.f32 %v1387_v25, %v1323_v0  ;;  %v1261_v4 = vadd.f32 %v3329_v55, %v1260_v37  ;;  %v1870_v0 = vld [vmem:[%s3873_s5 + $0x88] sm:$0xff]  ;;  %2077 = vmatpush.msrb.mxu2 %v1915_v57  ;;  %2036 = vmatpush.msra.mxu1 %v1899_v60  ;;  %v1608_v47 = vld [vmem:[#allocation6 + $0x32] sm:$0xf] }
 0x2fc   :  { %v1622_v7 = vld [vmem:[#allocation6 + $0x18] sm:$0xf]  ;;  %2006 = vmatpush.msrb.mxu3 %v1872_v2  ;;  %1616 = vst.msk [vmem:[#allocation7 + $0xa8] sm:$0xf] %vm1530_vm8, %v1608_v47 }
 0x2fd   :  { %v1558_v20 = vld [vmem:[#allocation6 + $0x19] sm:$0xf]  ;;  %1472 = vst.msk [vmem:[#allocation5 + $0x18] sm:$0xff] %vm1427_vm6, %v1464_v12  ;;  %1640 = vrot.lane.b32.xlu0 %v1622_v7, %s2392_s1  ;;  %v1419_v3 = vmax.f32 %v1388_v31, 0.0  ;;  %v1869_v12 = vld [vmem:[%s3873_s5 + $0x80] sm:$0xff]  ;;  %v1399_v42 = vpop.f32.mrf.mxu3 }
 0x2fe   :  { %1577 = vrot.lane.b32.xlu2 %v1558_v20, %s2392_s1  ;;  %v1542_v16 = vld [vmem:[#allocation6 + $0x18] sm:$0xf]  ;;  %2007 = vmatpush.msrb.mxu3 %v1871_v6 }
 0x2ff   :  { %1550 = vst.msk [vmem:[#allocation7 + $0x78] sm:$0xf] %vm1530_vm8, %v1542_v16  ;;  %v1607_v17 = vld [vmem:[#allocation6 + $0x1a] sm:$0xf] }
 0x300   :  { %1436 = vst.msk [vmem:[#allocation4 + $0x40] sm:$0xff] %vm1427_vm6, %v1419_v3  ;;  %v1734_v54 = vld [vmem:[#allocation6 + $0x18] sm:$0xf]  ;;  %2008 = vmatpush.msrb.mxu3 %v1870_v0 }
 0x301   :  { %1615 = vst.msk [vmem:[#allocation7 + $0x80] sm:$0xf] %vm1530_vm8, %v1607_v17  ;;  %v1670_v19 = vld [vmem:[#allocation6 + $0x19] sm:$0xf] }
 0x302   :  { %1742 = vst.msk [vmem:[#allocation7 + $0x40] sm:$0xf] %vm1530_vm8, %v1734_v54  ;;  %v1798_v36 = vld [vmem:[#allocation6 + $0x1a] sm:$0xf]  ;;  %2009 = vmatpush.msrb.mxu3 %v1869_v12 }
 0x303   :  { %1678 = vst.msk [vmem:[#allocation7 + $0x60] sm:$0xf] %vm1530_vm8, %v1670_v19 }
 0x304   :  { %v1483_v48 = vld [vmem:[#allocation5 + $0x18] ss:$2 sm:$0xf]  ;;  %v1499_v50 = vld [vmem:[#allocation5 + $0x19] ss:$2 sm:$0xf] }
 0x305   :  { %v1511_v26 = vmax.f32 %v1483_v48, %v1499_v50  ;;  %1806 = vst.msk [vmem:[#allocation7 + $0x48] sm:$0xf] %vm1530_vm8, %v1798_v36  ;;  %v1402_v35 = vpop.f32.mrf.mxu3 }
 0x307   :  { %1534 = vst.msk [vmem:[#allocation6 + $0x21] sm:$0xf] %vm1530_vm8, %v1511_v26  ;;  %v1448_v62 = vld [vmem:[#allocation4 + $0x40] sm:$0xff] }
 0x308   :  { %v1325_v15 = vpop.f32.mrf.mxu2 }
 0x309   :  { %v1326_v28 = vadd.f32 %v1325_v15, %v1261_v4 }
 0x30a   :  { %v1263_v58 = vpop.f32.mrf.mxu1 }
 0x30b   :  { %v1391_v39 = vadd.f32 %v1390_v14, %v1326_v28  ;;  %v1264_v21 = vadd.f32 %v3329_v55, %v1263_v58 }
 0x30d   :  { %v1420_v1 = vmax.f32 %v1391_v39, 0.0  ;;  %v1405_v63 = vpop.f32.mrf.mxu3 }
 0x30e   :  { %v1623_v53 = vld [vmem:[#allocation6 + $0x20] sm:$0xf] }
 0x30f   :  { %1642 = vrot.lane.b32.xlu0 %v1623_v53, %s2392_s1  ;;  %v1735_v38 = vld [vmem:[#allocation6 + $0x20] sm:$0xf]  ;;  %1437 = vst.msk [vmem:[#allocation4 + $0x48] sm:$0xff] %vm1427_vm6, %v1420_v1 }
 0x310   :  { %v1671_v49 = vld [vmem:[#allocation6 + $0x21] sm:$0xf]  ;;  %1743 = vst.msk [vmem:[#allocation7 + $0x68] sm:$0xf] %vm1530_vm8, %v1735_v38 }
 0x311   :  { %v1799_v56 = vld [vmem:[#allocation6 + $0x22] sm:$0xf]  ;;  %1679 = vst.msk [vmem:[#allocation7 + $0x88] sm:$0xf] %vm1530_vm8, %v1671_v49 }
 0x312   :  { %1807 = vst.msk [vmem:[#allocation7 + $0x70] sm:$0xf] %vm1530_vm8, %v1799_v56 }
 0x316   :  { %v1457_v59 = vld [vmem:[#allocation4 + $0x48] sm:$0xff] }
 0x317   :  { %v1465_v24 = vmax.f32 %v1448_v62, %v1457_v59 }
 0x319   :  { %1473 = vst.msk [vmem:[#allocation5 + $0x20] sm:$0xff] %vm1427_vm6, %v1465_v24 }
 0x320   :  { %v1485_v11 = vld [vmem:[#allocation5 + $0x20] ss:$2 sm:$0xf]  ;;  %v1501_v13 = vld [vmem:[#allocation5 + $0x21] ss:$2 sm:$0xf]  ;;  %v1328_v23 = vpop.f32.mrf.mxu2 }
 0x321   :  { %v1512_v22 = vmax.f32 %v1485_v11, %v1501_v13  ;;  %v1329_v25 = vadd.f32 %v1328_v23, %v1264_v21  ;;  %v1914_v11 = vld [vmem:[%s3873_s5 + $0x1e8] sm:$0xff] }
 0x322   :  { %2078 = vmatpush.msrb.mxu2 %v1914_v11  ;;  %v1898_v23 = vld [vmem:[%s3873_s5 + $0x168] sm:$0xff] }
 0x323   :  { %1535 = vst.msk [vmem:[#allocation6 + $0x39] sm:$0xf] %vm1530_vm8, %v1512_v22  ;;  %v1394_v31 = vadd.f32 %v1393_v10, %v1329_v25  ;;  %2037 = vmatpush.msra.mxu1 %v1898_v23  ;;  %v1749_v10 = vld [vmem:[#allocation6 + $0x11] sm:$0xf]  ;;  %v1924_v23 = vld [vmem:[%s3873_s5 + $0x238] sm:$0xff] }
 0x324   :  { %2125 = vmatpush.msra.mxu0 %v1924_v23 }
 0x325   :  { %v1421_v7 = vmax.f32 %v1394_v31, 0.0 }
 0x326   :  { %v1574_v16 = vpop.permute.xlu0 %1573 }
 0x327   :  { %1438 = vst.msk [vmem:[#allocation4 + $0x50] sm:$0xff] %vm1427_vm6, %v1421_v7 }
 0x328   :  { %1597 = vst.msk [vmem:[#allocation7 + $0x28] sm:$0xf] %vm1595_vm9, %v1574_v16 }
 0x32a   :  { %v1624_v20 = vld [vmem:[#allocation6 + $0x38] sm:$0xf]  ;;  %v1266_v9 = vpop.f32.mrf.mxu1 }
 0x32b   :  { %v1560_v32 = vld [vmem:[#allocation6 + $0x39] sm:$0xf]  ;;  %1644 = vrot.lane.b32.xlu0 %v1624_v20, %s2392_s1  ;;  %v1267_v30 = vadd.f32 %v3329_v55, %v1266_v9  ;;  %v1913_v9 = vld [vmem:[%s3873_s5 + $0x1e0] sm:$0xff] }
 0x32c   :  { %1581 = vrot.lane.b32.xlu1 %v1560_v32, %s2392_s1  ;;  %v1544_v44 = vld [vmem:[#allocation6 + $0x38] sm:$0xf]  ;;  %v1331_v17 = vpop.f32.mrf.mxu2  ;;  %2079 = vmatpush.msrb.mxu2 %v1913_v9  ;;  %v1923_v9 = vld [vmem:[%s3873_s5 + $0x230] sm:$0xff] }
 0x32d   :  { %v1609_v3 = vld [vmem:[#allocation6 + $0x3a] sm:$0xf]  ;;  %1552 = vst.msk [vmem:[#allocation7 + $0xc8] sm:$0xf] %vm1530_vm8, %v1544_v44  ;;  %v1332_v19 = vadd.f32 %v1331_v17, %v1267_v30  ;;  %2126 = vmatpush.msra.mxu0 %v1923_v9 }
 0x32e   :  { %v1672_v54 = vld [vmem:[#allocation6 + $0x39] sm:$0xf]  ;;  %1617 = vst.msk [vmem:[#allocation7 + $0xd0] sm:$0xf] %vm1530_vm8, %v1609_v3  ;;  %v1580_v48 = vpop.permute.xlu0 %1579  ;;  %v1449_v51 = vld [vmem:[#allocation4 + $0x50] sm:$0xff] }
 0x32f   :  { %1680 = vst.msk [vmem:[#allocation7 + $0xb0] sm:$0xf] %vm1530_vm8, %v1672_v54  ;;  %v1397_v36 = vadd.f32 %v1396_v33, %v1332_v19  ;;  %v1818_v50 = vld [vmem:[#allocation7 + $0x28] sm:$0xff]  ;;  %v1897_v33 = vld [vmem:[%s3873_s5 + $0x160] sm:$0xff]  ;;  %v1912_v19 = vld [vmem:[%s3873_s5 + $0x1d8] sm:$0xff] }
 0x330   :  { %1600 = vst.msk [vmem:[#allocation7 + $0xa0] sm:$0xf] %vm1595_vm9, %v1580_v48  ;;  %1972 = vmatmul.f32.gmra.mxu0 %v1818_v50  ;;  %2038 = vmatpush.msra.mxu1 %v1897_v33  ;;  %v1750_v50 = vld [vmem:[#allocation6 + $0x19] sm:$0xf]  ;;  %v1902_v33 = vld [vmem:[%s3873_s5 + $0x188] sm:$0xff] }
 0x331   :  { %v1422_v34 = vmax.f32 %v1397_v36, 0.0  ;;  %2080 = vmatpush.msrb.mxu2 %v1912_v19 }
 0x333   :  { %1439 = vst.msk [vmem:[#allocation4 + $0x58] sm:$0xff] %vm1427_vm6, %v1422_v34  ;;  %v1408_v34 = vpop.f32.mrf.mxu3 }
 0x334   :  { %v1334_v37 = vpop.f32.mrf.mxu2 }
 0x336   :  { %v1269_v26 = vpop.f32.mrf.mxu1  ;;  %v1637_v5 = vpop.permute.xlu0 %1636 }
 0x337   :  { %v1270_v29 = vadd.f32 %v3329_v55, %v1269_v26  ;;  %1660 = vst.msk [vmem:[#allocation7 + $0x8] sm:$0xf] %vm1595_vm9, %v1637_v5  ;;  %v1833_v57 = vld [vmem:[#allocation7 + $0xa0] sm:$0xff] }
 0x339   :  { %v1335_v4 = vadd.f32 %v1334_v37, %v1270_v29 }
 0x33a   :  { %v1458_v8 = vld [vmem:[#allocation4 + $0x58] sm:$0xff] }
 0x33b   :  { %v1400_v15 = vadd.f32 %v1399_v42, %v1335_v4  ;;  %v1466_v28 = vmax.f32 %v1449_v51, %v1458_v8  ;;  %v1911_v8 = vld [vmem:[%s3873_s5 + $0x1d0] sm:$0xff] }
 0x33c   :  { %v1337_v41 = vpop.f32.mrf.mxu2  ;;  %2081 = vmatpush.msrb.mxu2 %v1911_v8  ;;  %v1887_v8 = vld [vmem:[%s3873_s5 + $0x110] sm:$0xff] }
 0x33d   :  { %v1423_v18 = vmax.f32 %v1400_v15, 0.0  ;;  %1474 = vst.msk [vmem:[#allocation5 + $0x28] sm:$0xff] %vm1427_vm6, %v1466_v28 }
 0x33e   :  { %v1272_v14 = vpop.f32.mrf.mxu1  ;;  %v1814_v53 = vld [vmem:[#allocation7 + $0x8] sm:$0xff] }
 0x33f   :  { %1440 = vst.msk [vmem:[#allocation4 + $0x60] sm:$0xff] %vm1427_vm6, %v1423_v18  ;;  %v1273_v39 = vadd.f32 %v3329_v55, %v1272_v14  ;;  %2010 = vmatmul.f32.vlgmr.msrb.gmra.mxu3 %v1814_v53  ;;  %v1751_v14 = vld [vmem:[#allocation6 + $0x21] sm:$0xf] }
 0x341   :  { %v1338_v46 = vadd.f32 %v1337_v41, %v1273_v39  ;;  %v1684_v41 = vld [vmem:[#allocation6 + $0xa] sm:$0xf] }
 0x343   :  { %v1403_v1 = vadd.f32 %v1402_v35, %v1338_v46  ;;  %v1895_v35 = vld [vmem:[%s3873_s5 + $0x150] sm:$0xff] }
 0x344   :  { %v1487_v38 = vld [vmem:[#allocation5 + $0x28] ss:$2 sm:$0xf]  ;;  %v1503_v49 = vld [vmem:[#allocation5 + $0x29] ss:$2 sm:$0xf] }
 0x345   :  { %v1424_v52 = vmax.f32 %v1403_v1, 0.0  ;;  %v1513_v27 = vmax.f32 %v1487_v38, %v1503_v49  ;;  %v1910_v1 = vld [vmem:[%s3873_s5 + $0x1c8] sm:$0xff]  ;;  %v1685_v49 = vld [vmem:[#allocation6 + $0x12] sm:$0xf] }
 0x346   :  { %v1450_v45 = vld [vmem:[#allocation4 + $0x60] sm:$0xff]  ;;  %2082 = vmatpush.msrb.mxu2 %v1910_v1  ;;  %v1752_v38 = vld [vmem:[#allocation6 + $0x29] sm:$0xf] }
 0x347   :  { %1441 = vst.msk [vmem:[#allocation4 + $0x68] sm:$0xff] %vm1427_vm6, %v1424_v52 }
 0x348   :  { %1536 = vst.msk [vmem:[#allocation6 + $0x41] sm:$0xf] %vm1530_vm8, %v1513_v27  ;;  %v1894_v27 = vld [vmem:[%s3873_s5 + $0x148] sm:$0xff] }
 0x34a   :  { %v1340_v62 = vpop.f32.mrf.mxu2 }
 0x34c   :  { %v1275_v56 = vpop.f32.mrf.mxu1 }
 0x34d   :  { %v1276_v43 = vadd.f32 %v3329_v55, %v1275_v56  ;;  %v1909_v56 = vld [vmem:[%s3873_s5 + $0x1c0] sm:$0xff] }
 0x34e   :  { %v1459_v61 = vld [vmem:[#allocation4 + $0x68] sm:$0xff]  ;;  %2083 = vmatpush.msrb.mxu2 %v1909_v56 }
 0x34f   :  { %v1467_v59 = vmax.f32 %v1450_v45, %v1459_v61  ;;  %v1341_v24 = vadd.f32 %v1340_v62, %v1276_v43  ;;  %v1625_v2 = vld [vmem:[#allocation6 + $0x40] sm:$0xf] }
 0x350   :  { %v1561_v58 = vld [vmem:[#allocation6 + $0x41] sm:$0xf]  ;;  %1646 = vrot.lane.b32.xlu0 %v1625_v2, %s2392_s1  ;;  %v1639_v21 = vpop.permute.xlu0 %1638 }
 0x351   :  { %1475 = vst.msk [vmem:[#allocation5 + $0x30] sm:$0xff] %vm1427_vm6, %v1467_v59  ;;  %v1406_v6 = vadd.f32 %v1405_v63, %v1341_v24  ;;  %1583 = vrot.lane.b32.xlu2 %v1561_v58, %s2392_s1  ;;  %v1576_v13 = vpop.permute.xlu1 %1575  ;;  %v1545_v0 = vld [vmem:[#allocation6 + $0x40] sm:$0xf]  ;;  %v1686_v24 = vld [vmem:[#allocation6 + $0x1a] sm:$0xf] }
 0x352   :  { %1598 = vst.msk [vmem:[#allocation7 + $0x50] sm:$0xf] %vm1595_vm9, %v1576_v13  ;;  %v1737_v12 = vld [vmem:[#allocation6 + $0x40] sm:$0xf]  ;;  %v1908_v63 = vld [vmem:[%s3873_s5 + $0x1b8] sm:$0xff] }
 0x353   :  { %v1425_v22 = vmax.f32 %v1406_v6, 0.0  ;;  %1661 = vst.msk [vmem:[#allocation7 + $0x30] sm:$0xf] %vm1595_vm9, %v1639_v21  ;;  %v1610_v31 = vld [vmem:[#allocation6 + $0x42] sm:$0xf]  ;;  %2084 = vmatpush.msrb.mxu2 %v1908_v63  ;;  %v1892_v6 = vld [vmem:[%s3873_s5 + $0x138] sm:$0xff] }
 0x354   :  { %1553 = vst.msk [vmem:[#allocation7 + $0xf0] sm:$0xf] %vm1530_vm8, %v1545_v0  ;;  %v1673_v44 = vld [vmem:[#allocation6 + $0x41] sm:$0xf]  ;;  %v1907_v0 = vld [vmem:[%s3873_s5 + $0x1b0] sm:$0xff] }
 0x355   :  { %1442 = vst.msk [vmem:[#allocation4 + $0x70] sm:$0xff] %vm1427_vm6, %v1425_v22  ;;  %v1801_v16 = vld [vmem:[#allocation6 + $0x42] sm:$0xf]  ;;  %2085 = vmatpush.msrb.mxu2 %v1907_v0  ;;  %v1740_v0 = vld [vmem:[#allocation6 + $0x58] sm:$0xf] }
 0x356   :  { %1745 = vst.msk [vmem:[#allocation7 + $0xb8] sm:$0xf] %vm1530_vm8, %v1737_v12  ;;  %v1753_v59 = vld [vmem:[#allocation6 + $0x41] sm:$0xf] }
 0x357   :  { %1618 = vst.msk [vmem:[#allocation7 + $0xf8] sm:$0xf] %vm1530_vm8, %v1610_v31  ;;  %v1687_v22 = vld [vmem:[#allocation6 + $0x22] sm:$0xf]  ;;  %v1688_v31 = vld [vmem:[#allocation6 + $0x3a] sm:$0xf] }
 0x358   :  { %v1578_v25 = vpop.permute.xlu2 %1577  ;;  %v1489_v7 = vld [vmem:[#allocation5 + $0x30] ss:$2 sm:$0xf]  ;;  %v1505_v20 = vld [vmem:[#allocation5 + $0x31] ss:$2 sm:$0xf] }
 0x359   :  { %1599 = vst.msk [vmem:[#allocation7 + $0x78] sm:$0xf] %vm1595_vm9, %v1578_v25  ;;  %1765 = vrot.lane.b32.xlu2 %v1749_v10, %s2392_s1  ;;  %v1514_v32 = vmax.f32 %v1489_v7, %v1505_v20  ;;  %v1823_v3 = vld [vmem:[#allocation7 + $0x50] sm:$0xff]  ;;  %v1689_v7 = vld [vmem:[#allocation6 + $0x42] sm:$0xf] }
 0x35a   :  { %1975 = vmatmul.f32.gmra.mxu0 %v1823_v3  ;;  %v1819_v30 = vld [vmem:[#allocation7 + $0x30] sm:$0xff]  ;;  %v1343_v54 = vpop.f32.mrf.mxu2  ;;  %1681 = vst.msk [vmem:[#allocation7 + $0xd8] sm:$0xf] %vm1530_vm8, %v1673_v44  ;;  %v1905_v44 = vld [vmem:[%s3873_s5 + $0x1a0] sm:$0xff]  ;;  %v1890_v3 = vld [vmem:[%s3873_s5 + $0x128] sm:$0xff] }
 0x35b   :  { %1537 = vst.msk [vmem:[#allocation6 + $0x49] sm:$0xf] %vm1530_vm8, %v1514_v32  ;;  %2013 = vmatmul.f32.gmra.mxu3 %v1819_v30  ;;  %v1891_v20 = vld [vmem:[%s3873_s5 + $0x130] sm:$0xff]  ;;  %v1906_v32 = vld [vmem:[%s3873_s5 + $0x1a8] sm:$0xff]  ;;  %v1904_v30 = vld [vmem:[%s3873_s5 + $0x198] sm:$0xff] }
 0x35c   :  { %v1278_v17 = vpop.f32.mrf.mxu1  ;;  %1809 = vst.msk [vmem:[#allocation7 + $0xc0] sm:$0xf] %vm1530_vm8, %v1801_v16  ;;  %v1451_v39 = vld [vmem:[#allocation4 + $0x70] sm:$0xff]  ;;  %2086 = vmatpush.msrb.mxu2 %v1906_v32  ;;  %v1756_v16 = vld [vmem:[#allocation6 + $0x59] sm:$0xf] }
 0x35d   :  { %v1279_v36 = vadd.f32 %v3329_v55, %v1278_v17  ;;  %v1896_v55 = vld [vmem:[%s3873_s5 + $0x158] sm:$0xff]  ;;  %v1922_v17 = vld [vmem:[%s3873_s5 + $0x228] sm:$0xff]  ;;  %1748 = vst.msk [vmem:[#allocation7 + $0x130] sm:$0xf] %vm1530_vm8, %v1740_v0  ;;  %v2261_v0 = vld [vmem:[%s3875_s7 + $0x20] sm:$0xff] }
 0x35e   :  { %2039 = vmatpush.msra.mxu1 %v1896_v55  ;;  %2087 = vmatpush.msrb.mxu2 %v1905_v44 }
 0x35f   :  { %v1344_v48 = vadd.f32 %v1343_v54, %v1279_v36  ;;  %2127 = vmatpush.msra.mxu0 %v1922_v17  ;;  %v1903_v54 = vld [vmem:[%s3873_s5 + $0x190] sm:$0xff]  ;;  %v1901_v36 = vld [vmem:[%s3873_s5 + $0x180] sm:$0xff] }
 0x360   :  { %v1828_v37 = vld [vmem:[#allocation7 + $0x78] sm:$0xff]  ;;  %2040 = vmatpush.msra.mxu1 %v1895_v35  ;;  %2088 = vmatpush.msrb.mxu2 %v1904_v30  ;;  %v1917_v35 = vld [vmem:[%s3873_s5 + $0x200] sm:$0xff] }
 0x361   :  { %v1409_v26 = vadd.f32 %v1408_v34, %v1344_v48  ;;  %1767 = vrot.lane.b32.xlu2 %v1750_v50, %s2392_s1  ;;  %v1889_v34 = vld [vmem:[%s3873_s5 + $0x120] sm:$0xff] }
 0x362   :  { %v1626_v29 = vld [vmem:[#allocation6 + $0x48] sm:$0xf]  ;;  %1978 = vmatmul.f32.gmra.mxu0 %v1828_v37  ;;  %2041 = vmatpush.msra.mxu1 %v1894_v27  ;;  %v1921_v48 = vld [vmem:[%s3873_s5 + $0x220] sm:$0xff] }
 0x363   :  { %v1562_v42 = vld [vmem:[#allocation6 + $0x49] sm:$0xf]  ;;  %v1426_v4 = vmax.f32 %v1409_v26, 0.0  ;;  %1648 = vrot.lane.b32.xlu0 %v1626_v29, %s2392_s1  ;;  %2089 = vmatpush.msrb.mxu2 %v1903_v54  ;;  %v1837_v54 = vld [vmem:[#allocation7 + $0xc0] sm:$0xff] }
 0x364   :  { %v1546_v51 = vld [vmem:[#allocation6 + $0x48] sm:$0xf]  ;;  %1585 = vrot.lane.b32.xlu1 %v1562_v42, %s2392_s1  ;;  %2042 = vmatpush.msra.mxu1 %v1893_v40  ;;  %v1888_v42 = vld [vmem:[%s3873_s5 + $0x118] sm:$0xff] }
 0x365   :  { %1554 = vst.msk [vmem:[#allocation7 + $0x118] sm:$0xf] %vm1530_vm8, %v1546_v51  ;;  %v1738_v15 = vld [vmem:[#allocation6 + $0x48] sm:$0xf]  ;;  %2090 = vmatpush.msrb.mxu2 %v1902_v33  ;;  %2128 = vmatpush.msra.mxu0 %v1921_v48 }
 0x366   :  { %1443 = vst.msk [vmem:[#allocation4 + $0x78] sm:$0xff] %vm1427_vm6, %v1426_v4  ;;  %v1611_v28 = vld [vmem:[#allocation6 + $0x4a] sm:$0xf]  ;;  %2043 = vmatpush.msra.mxu1 %v1892_v6  ;;  %v1920_v4 = vld [vmem:[%s3873_s5 + $0x218] sm:$0xff]  ;;  %v1817_v6 = vld [vmem:[#allocation7 + $0x20] sm:$0xff] }
 0x367   :  { %v1674_v5 = vld [vmem:[#allocation6 + $0x49] sm:$0xf]  ;;  %1746 = vst.msk [vmem:[#allocation7 + $0xe0] sm:$0xf] %vm1530_vm8, %v1738_v15  ;;  %2091 = vmatpush.msrb.mxu2 %v1901_v36  ;;  %2129 = vmatpush.msra.mxu0 %v1920_v4  ;;  %v1919_v15 = vld [vmem:[%s3873_s5 + $0x210] sm:$0xff] }
 0x368   :  { %v1802_v18 = vld [vmem:[#allocation6 + $0x4a] sm:$0xf]  ;;  %1619 = vst.msk [vmem:[#allocation7 + $0x120] sm:$0xf] %vm1530_vm8, %v1611_v28  ;;  %2044 = vmatpush.msra.mxu1 %v1891_v20 }
 0x369   :  { %1682 = vst.msk [vmem:[#allocation7 + $0x100] sm:$0xf] %vm1530_vm8, %v1674_v5  ;;  %1769 = vrot.lane.b32.xlu2 %v1751_v14, %s2392_s1  ;;  %v1754_v2 = vld [vmem:[#allocation6 + $0x49] sm:$0xf]  ;;  %2130 = vmatpush.msra.mxu0 %v1919_v15 }
 0x36a   :  { %1810 = vst.msk [vmem:[#allocation7 + $0xe8] sm:$0xf] %vm1530_vm8, %v1802_v18  ;;  %1981 = vmatmul.f32.gmra.mxu0 %v1833_v57  ;;  %2045 = vmatpush.msra.mxu1 %v1890_v3  ;;  %v1690_v19 = vld [vmem:[#allocation6 + $0x4a] sm:$0xf] }
 0x36b   :  { %v1736_v51 = vld [vmem:[#allocation6 + $0x28] sm:$0xf] }
 0x36c   :  { %1700 = vrot.lane.b32.xlu1 %v1684_v41, %s2392_s1  ;;  %2046 = vmatpush.msra.mxu1 %v1889_v34  ;;  %1744 = vst.msk [vmem:[#allocation7 + $0x90] sm:$0xf] %vm1530_vm8, %v1736_v51  ;;  %v1886_v18 = vld [vmem:[%s3873_s5 + $0x108] sm:$0xff] }
 0x36d   :  { %v1460_v46 = vld [vmem:[#allocation4 + $0x78] sm:$0xff]  ;;  %v1918_v14 = vld [vmem:[%s3873_s5 + $0x208] sm:$0xff] }
 0x36e   :  { %v1468_v53 = vmax.f32 %v1451_v39, %v1460_v46  ;;  %2047 = vmatpush.msra.mxu1 %v1888_v42  ;;  %2131 = vmatpush.msra.mxu0 %v1918_v14  ;;  %v1885_v46 = vld [vmem:[%s3873_s5 + $0x100] sm:$0xff]  ;;  %v1800_v57 = vld [vmem:[#allocation6 + $0x2a] sm:$0xf] }
 0x36f   :  { %v1641_v52 = vpop.permute.xlu0 %1640  ;;  %1808 = vst.msk [vmem:[#allocation7 + $0x98] sm:$0xf] %vm1530_vm8, %v1800_v57 }
 0x370   :  { %1476 = vst.msk [vmem:[#allocation5 + $0x38] sm:$0xff] %vm1427_vm6, %v1468_v53  ;;  %2048 = vmatpush.msra.mxu1 %v1887_v8  ;;  %2132 = vmatpush.msra.mxu0 %v1917_v35 }
 0x371   :  { %1662 = vst.msk [vmem:[#allocation7 + $0x58] sm:$0xf] %vm1595_vm9, %v1641_v52  ;;  %1771 = vrot.lane.b32.xlu2 %v1752_v38, %s2392_s1  ;;  %v1842_v36 = vld [vmem:[#allocation7 + $0xe8] sm:$0xff] }
 0x372   :  { %2049 = vmatpush.msra.mxu1 %v1886_v18 }
 0x374   :  { %1702 = vrot.lane.b32.xlu1 %v1685_v49, %s2392_s1  ;;  %2050 = vmatpush.msra.mxu1 %v1885_v46 }
 0x376   :  { %v1832_v9 = vld [vmem:[#allocation7 + $0x98] sm:$0xff] }
 0x377   :  { %v1491_v43 = vld [vmem:[#allocation5 + $0x38] ss:$2 sm:$0xf]  ;;  %v1507_v45 = vld [vmem:[#allocation5 + $0x39] ss:$2 sm:$0xf] }
 0x378   :  { %v1824_v61 = vld [vmem:[#allocation7 + $0x58] sm:$0xff]  ;;  %v1515_v62 = vmax.f32 %v1491_v43, %v1507_v45 }
 0x379   :  { %2016 = vmatmul.f32.gmra.mxu3 %v1824_v61  ;;  %1773 = vrot.lane.b32.xlu2 %v1753_v59, %s2392_s1 }
 0x37a   :  { %1538 = vst.msk [vmem:[#allocation6 + $0x51] sm:$0xf] %vm1530_vm8, %v1515_v62 }
 0x37c   :  { %1704 = vrot.lane.b32.xlu1 %v1686_v24, %s2392_s1 }
 0x381   :  { %v1643_v58 = vpop.permute.xlu0 %1642  ;;  %v1627_v60 = vld [vmem:[#allocation6 + $0x50] sm:$0xf]  ;;  %1775 = vrot.lane.b32.xlu2 %v1754_v2, %s2392_s1 }
 0x382   :  { %1663 = vst.msk [vmem:[#allocation7 + $0x80] sm:$0xf] %vm1595_vm9, %v1643_v58  ;;  %1650 = vrot.lane.b32.xlu0 %v1627_v60, %s2392_s1  ;;  %v1739_v11 = vld [vmem:[#allocation6 + $0x50] sm:$0xf] }
 0x383   :  { %1747 = vst.msk [vmem:[#allocation7 + $0x108] sm:$0xf] %vm1530_vm8, %v1739_v11  ;;  %v1675_v13 = vld [vmem:[#allocation6 + $0x51] sm:$0xf] }
 0x384   :  { %v1803_v21 = vld [vmem:[#allocation6 + $0x52] sm:$0xf]  ;;  %1683 = vst.msk [vmem:[#allocation7 + $0x128] sm:$0xf] %vm1530_vm8, %v1675_v13  ;;  %1706 = vrot.lane.b32.xlu1 %v1687_v22, %s2392_s1  ;;  %v1822_v22 = vld [vmem:[#allocation7 + $0x48] sm:$0xff] }
 0x385   :  { %1811 = vst.msk [vmem:[#allocation7 + $0x110] sm:$0xf] %vm1530_vm8, %v1803_v21  ;;  %v1755_v25 = vld [vmem:[#allocation6 + $0x51] sm:$0xf] }
 0x386   :  { %v1691_v12 = vld [vmem:[#allocation6 + $0x52] sm:$0xf] }
 0x389   :  { %v1829_v10 = vld [vmem:[#allocation7 + $0x80] sm:$0xff]  ;;  %1777 = vrot.lane.b32.xlu2 %v1755_v25, %s2392_s1 }
 0x38a   :  { %1714 = vrot.lane.b32.xlu0 %v1691_v12, %s2392_s1  ;;  %2019 = vmatmul.f32.gmra.mxu3 %v1829_v10 }
 0x38c   :  { %1708 = vrot.lane.b32.xlu1 %v1688_v31, %s2392_s1  ;;  %v1827_v31 = vld [vmem:[#allocation7 + $0x70] sm:$0xff] }
 0x38d   :  { %v1847_v48 = vld [vmem:[#allocation7 + $0x110] sm:$0xff] }
 0x391   :  { %1779 = vrot.lane.b32.xlu2 %v1756_v16, %s2392_s1  ;;  %v1804_v16 = vld [vmem:[#allocation6 + $0x5a] sm:$0xf] }
 0x392   :  { %1812 = vst.msk [vmem:[#allocation7 + $0x138] sm:$0xf] %vm1530_vm8, %v1804_v16 }
 0x394   :  { %1710 = vrot.lane.b32.xlu1 %v1689_v7, %s2392_s1 }
 0x39c   :  { %1712 = vrot.lane.b32.xlu1 %v1690_v19, %s2392_s1 }
 0x39d   :  { %v1645_v37 = vpop.permute.xlu0 %1644 }
 0x39e   :  { %v1582_v50 = vpop.permute.xlu1 %1581  ;;  %1664 = vst.msk [vmem:[#allocation7 + $0xa8] sm:$0xf] %vm1595_vm9, %v1645_v37  ;;  %v1970_v37 = vpop.f32.mrf.mxu0 }
 0x39f   :  { %1601 = vst.msk [vmem:[#allocation7 + $0xc8] sm:$0xf] %vm1595_vm9, %v1582_v50  ;;  %v1852_v50 = vld [vmem:[#allocation7 + $0x138] sm:$0xff] }
 0x3a5   :  { %v1834_v29 = vld [vmem:[#allocation7 + $0xa8] sm:$0xff] }
 0x3a6   :  { %v1838_v26 = vld [vmem:[#allocation7 + $0xc8] sm:$0xff]  ;;  %2022 = vmatmul.f32.gmra.mxu3 %v1834_v29 }
 0x3a7   :  { %1984 = vmatmul.f32.gmra.mxu0 %v1838_v26 }
 0x3ab   :  { %v1584_v55 = vpop.permute.xlu2 %1583 }
 0x3ac   :  { %1602 = vst.msk [vmem:[#allocation7 + $0xf0] sm:$0xf] %vm1595_vm9, %v1584_v55 }
 0x3ad   :  { %v1973_v29 = vpop.f32.mrf.mxu0 }
 0x3b3   :  { %v1766_v28 = vpop.permute.xlu2 %1765  ;;  %v1843_v5 = vld [vmem:[#allocation7 + $0xf0] sm:$0xff] }
 0x3b4   :  { %1789 = vst.msk [vmem:[#allocation7 + $0x18] sm:$0xf] %vm1595_vm9, %v1766_v28  ;;  %1987 = vmatmul.f32.gmra.mxu0 %v1843_v5  ;;  %v2264_v5 = vld [vmem:[%s3875_s7 + $0x38] sm:$0xff] }
 0x3b5   :  { %2283 = vmatpush.msra.mxu3 %v2264_v5 }
 0x3bb   :  { %v1768_v39 = vpop.permute.xlu2 %1767  ;;  %v1816_v41 = vld [vmem:[#allocation7 + $0x18] sm:$0xff] }
 0x3bc   :  { %1790 = vst.msk [vmem:[#allocation7 + $0x40] sm:$0xf] %vm1595_vm9, %v1768_v39  ;;  %2092 = vmatmul.f32.vlgmr.msrb.gmra.mxu2 %v1816_v41  ;;  %v3786_v39 = vld [vmem:[%s3874_s6] ss:$0 sm:$0xff] }
 0x3bd   :  { %v1971_v35 = vadd.f32 %v3786_v39, %v1970_v37 }
 0x3c2   :  { %v1647_v53 = vpop.permute.xlu0 %1646  ;;  %v2011_v18 = vpop.f32.mrf.mxu3 }
 0x3c3   :  { %v1770_v1 = vpop.permute.xlu2 %1769  ;;  %v1821_v52 = vld [vmem:[#allocation7 + $0x40] sm:$0xff]  ;;  %1665 = vst.msk [vmem:[#allocation7 + $0xd0] sm:$0xf] %vm1595_vm9, %v1647_v53  ;;  %v2012_v53 = vadd.f32 %v2011_v18, %v1971_v35 }
 0x3c4   :  { %1791 = vst.msk [vmem:[#allocation7 + $0x68] sm:$0xf] %vm1595_vm9, %v1770_v1  ;;  %2095 = vmatmul.f32.gmra.mxu2 %v1821_v52 }
 0x3ca   :  { %v1839_v27 = vld [vmem:[#allocation7 + $0xd0] sm:$0xff] }
 0x3cb   :  { %v1772_v38 = vpop.permute.xlu2 %1771  ;;  %v1826_v49 = vld [vmem:[#allocation7 + $0x68] sm:$0xff]  ;;  %2025 = vmatmul.f32.gmra.mxu3 %v1839_v27 }
 0x3cc   :  { %1792 = vst.msk [vmem:[#allocation7 + $0x90] sm:$0xf] %vm1595_vm9, %v1772_v38  ;;  %2098 = vmatmul.f32.gmra.mxu2 %v1826_v49  ;;  %v2166_v49 = vlaneseq }
 0x3d3   :  { %v1774_v56 = vpop.permute.xlu2 %1773  ;;  %v1831_v43 = vld [vmem:[#allocation7 + $0x90] sm:$0xff] }
 0x3d4   :  { %1793 = vst.msk [vmem:[#allocation7 + $0xb8] sm:$0xf] %vm1595_vm9, %v1774_v56  ;;  %2101 = vmatmul.f32.gmra.mxu2 %v1831_v43  ;;  %v1974_v43 = vadd.f32 %v3786_v39, %v1973_v29 }
 0x3d5   :  { %v1649_v45 = vpop.permute.xlu0 %1648 }
 0x3d6   :  { %v1586_v61 = vpop.permute.xlu1 %1585  ;;  %1666 = vst.msk [vmem:[#allocation7 + $0xf8] sm:$0xf] %vm1595_vm9, %v1649_v45 }
 0x3d7   :  { %1603 = vst.msk [vmem:[#allocation7 + $0x118] sm:$0xf] %vm1595_vm9, %v1586_v61  ;;  %v1976_v42 = vpop.f32.mrf.mxu0 }
 0x3db   :  { %v1776_v62 = vpop.permute.xlu2 %1775  ;;  %v1836_v59 = vld [vmem:[#allocation7 + $0xb8] sm:$0xff] }
 0x3dc   :  { %1794 = vst.msk [vmem:[#allocation7 + $0xe0] sm:$0xf] %vm1595_vm9, %v1776_v62  ;;  %2104 = vmatmul.f32.gmra.mxu2 %v1836_v59  ;;  %v2167_v62 = vshrl.u32 %v2166_v49, 7  ;;  %v1977_v59 = vadd.f32 %v3786_v39, %v1976_v42 }
 0x3dd   :  { %v1844_v24 = vld [vmem:[#allocation7 + $0xf8] sm:$0xff] }
 0x3de   :  { %v1701_v40 = vpop.permute.xlu1 %1700  ;;  %v1848_v47 = vld [vmem:[#allocation7 + $0x118] sm:$0xff]  ;;  %2028 = vmatmul.f32.gmra.mxu3 %v1844_v24  ;;  %v2014_v1 = vpop.f32.mrf.mxu3 }
 0x3df   :  { %1724 = vst.msk [vmem:[#allocation7 + $0x10] sm:$0xf] %vm1595_vm9, %v1701_v40  ;;  %1990 = vmatmul.f32.gmra.mxu0 %v1848_v47  ;;  %v1979_v4 = vpop.f32.mrf.mxu0  ;;  %v2015_v24 = vadd.f32 %v2014_v1, %v1974_v43  ;;  %v2169_v40 = vadd.s32 16, %v2167_v62 }
 0x3e3   :  { %v1778_v63 = vpop.permute.xlu2 %1777  ;;  %v1841_v2 = vld [vmem:[#allocation7 + $0xe0] sm:$0xff] }
 0x3e4   :  { %1795 = vst.msk [vmem:[#allocation7 + $0x108] sm:$0xf] %vm1595_vm9, %v1778_v63  ;;  %2107 = vmatmul.f32.gmra.mxu2 %v1841_v2  ;;  %v2263_v2 = vld [vmem:[%s3875_s7 + $0x30] sm:$0xff] }
 0x3e5   :  { %2284 = vmatpush.msra.mxu3 %v2263_v2 }
 0x3e6   :  { %v1703_v58 = vpop.permute.xlu1 %1702  ;;  %v1815_v60 = vld [vmem:[#allocation7 + $0x10] sm:$0xff] }
 0x3e7   :  { %1725 = vst.msk [vmem:[#allocation7 + $0x38] sm:$0xf] %vm1595_vm9, %v1703_v58  ;;  %2051 = vmatmul.f32.vlgmr.msra.gmra.mxu1 %v1815_v60  ;;  %2344 = vmatmul.msk.f32.vlgmr.msra.gmra.mxu0 %vm1427_vm6, %v1817_v6  ;;  %v3772_v51 = vpop.f32.mrf.mxu0  ;;  %v2262_v58 = vld [vmem:[%s3875_s7 + $0x28] sm:$0xff]  ;;  %v2175_v60 = vand.u32 7, %v2167_v62 }
 0x3e8   :  { %2285 = vmatpush.msra.mxu3 %v2262_v58 }
 0x3e9   :  { %vm3800_vm10 = vcmp.lt.s32.totalorder %v2175_v60, 4 }
 0x3ea   :  { %2286 = vmatpush.msra.mxu3 %v2261_v0 }
 0x3eb   :  { %v1846_v11 = vld [vmem:[#allocation7 + $0x108] sm:$0xff]  ;;  %v1780_v23 = vpop.permute.xlu2 %1779 }
 0x3ec   :  { %2110 = vmatmul.f32.gmra.mxu2 %v1846_v11  ;;  %1796 = vst.msk [vmem:[#allocation7 + $0x130] sm:$0xf] %vm1595_vm9, %v1780_v23 }
 0x3ee   :  { %v1705_v13 = vpop.permute.xlu1 %1704  ;;  %v1820_v21 = vld [vmem:[#allocation7 + $0x38] sm:$0xff] }
 0x3ef   :  { %1726 = vst.msk [vmem:[#allocation7 + $0x60] sm:$0xf] %vm1595_vm9, %v1705_v13  ;;  %2054 = vmatmul.f32.gmra.mxu1 %v1820_v21  ;;  %2345 = vmatmul.msk.f32.gmra.mxu0 %vm1427_vm6, %v1822_v22  ;;  %v2189_v22 = vand.u32 7, %v2169_v40 }
 0x3f1   :  { %vm3805_vm11 = vcmp.lt.s32.totalorder %v2189_v22, 4 }
 0x3f3   :  { %v1851_v7 = vld [vmem:[#allocation7 + $0x130] sm:$0xff] }
 0x3f4   :  { %v1651_v25 = vpop.permute.xlu0 %1650  ;;  %2113 = vmatmul.f32.gmra.mxu2 %v1851_v7  ;;  %v2168_v7 = vadd.s32 8, %v2167_v62 }
 0x3f5   :  { %1667 = vst.msk [vmem:[#allocation7 + $0x120] sm:$0xf] %vm1595_vm9, %v1651_v25 }
 0x3f6   :  { %v1707_v12 = vpop.permute.xlu1 %1706  ;;  %v1825_v10 = vld [vmem:[#allocation7 + $0x60] sm:$0xff] }
 0x3f7   :  { %1727 = vst.msk [vmem:[#allocation7 + $0x88] sm:$0xf] %vm1595_vm9, %v1707_v12  ;;  %2057 = vmatmul.f32.gmra.mxu1 %v1825_v10  ;;  %2346 = vmatmul.msk.f32.gmra.mxu0 %vm1427_vm6, %v1827_v31 }
 0x3fc   :  { %v1715_v20 = vpop.permute.xlu0 %1714  ;;  %v1849_v32 = vld [vmem:[#allocation7 + $0x120] sm:$0xff]  ;;  %v2017_v61 = vpop.f32.mrf.mxu3 }
 0x3fd   :  { %1731 = vst.msk [vmem:[#allocation7 + $0x128] sm:$0xf] %vm1595_vm9, %v1715_v20  ;;  %2031 = vmatmul.f32.gmra.mxu3 %v1849_v32  ;;  %v2018_v47 = vadd.f32 %v2017_v61, %v1977_v59  ;;  %v1980_v20 = vadd.f32 %v3786_v39, %v1979_v4  ;;  %v2260_v4 = vld [vmem:[%s3875_s7 + $0x18] sm:$0xff] }
 0x3fe   :  { %v1709_v44 = vpop.permute.xlu1 %1708  ;;  %v1830_v3 = vld [vmem:[#allocation7 + $0x88] sm:$0xff]  ;;  %2287 = vmatpush.msra.mxu3 %v2260_v4 }
 0x3ff   :  { %1728 = vst.msk [vmem:[#allocation7 + $0xb0] sm:$0xf] %vm1595_vm9, %v1709_v44  ;;  %2060 = vmatmul.f32.gmra.mxu1 %v1830_v3  ;;  %2347 = vmatmul.msk.f32.gmra.mxu0 %vm1427_vm6, %v1832_v9  ;;  %v2170_v44 = vadd.s32 24, %v2167_v62 }
 0x401   :  { %v2196_v37 = vand.u32 7, %v2170_v44 }
 0x403   :  { %vm3822_vm13 = vcmp.lt.s32.totalorder %v2196_v37, 4 }
 0x404   :  { %v1850_v26 = vld [vmem:[#allocation7 + $0x128] sm:$0xff] }
 0x406   :  { %v1711_v30 = vpop.permute.xlu1 %1710  ;;  %v1835_v17 = vld [vmem:[#allocation7 + $0xb0] sm:$0xff] }
 0x407   :  { %1729 = vst.msk [vmem:[#allocation7 + $0xd8] sm:$0xf] %vm1595_vm9, %v1711_v30  ;;  %2063 = vmatmul.f32.gmra.mxu1 %v1835_v17  ;;  %2348 = vmatmul.msk.f32.gmra.mxu0 %vm1427_vm6, %v1837_v54  ;;  %v2182_v54 = vand.u32 7, %v2168_v7 }
 0x409   :  { %vm3818_vm12 = vcmp.lt.s32.totalorder %v2182_v54, 4 }
 0x40d   :  { %v2020_v10 = vpop.f32.mrf.mxu3 }
 0x40e   :  { %v1713_v33 = vpop.permute.xlu1 %1712  ;;  %v1840_v19 = vld [vmem:[#allocation7 + $0xd8] sm:$0xff]  ;;  %v2021_v3 = vadd.f32 %v2020_v10, %v1980_v20 }
 0x40f   :  { %1730 = vst.msk [vmem:[#allocation7 + $0x100] sm:$0xf] %vm1595_vm9, %v1713_v33  ;;  %2066 = vmatmul.f32.gmra.mxu1 %v1840_v19  ;;  %2349 = vmatmul.msk.f32.gmra.mxu0 %vm1427_vm6, %v1842_v36 }
 0x416   :  { %v1845_v34 = vld [vmem:[#allocation7 + $0x100] sm:$0xff] }
 0x417   :  { %2069 = vmatmul.f32.gmra.mxu1 %v1845_v34  ;;  %2350 = vmatmul.msk.f32.gmra.mxu0 %vm1427_vm6, %v1847_v48 }
 0x41f   :  { %2072 = vmatmul.f32.gmra.mxu1 %v1850_v26  ;;  %2351 = vmatmul.msk.f32.gmra.mxu0 %vm1427_vm6, %v1852_v50 }
 0x424   :  { %v3774_v55 = vpop.f32.mrf.mxu0 }
 0x431   :  { %v3776_v8 = vpop.f32.mrf.mxu0 }
 0x43f   :  { %v2093_v15 = vpop.f32.mrf.mxu2 }
 0x447   :  { %v2096_v14 = vpop.f32.mrf.mxu2 }
 0x44f   :  { %v2099_v52 = vpop.f32.mrf.mxu2 }
 0x457   :  { %v2102_v21 = vpop.f32.mrf.mxu2 }
 0x45c   :  { %v3778_v28 = vpop.f32.mrf.mxu0 }
 0x45d   :  { %v1992_v7 = vadd.f32 %v3786_v39, %v3778_v28 }
 0x45f   :  { %v2105_v5 = vpop.f32.mrf.mxu2 }
 0x464   :  { %v2052_v41 = vpop.f32.mrf.mxu1  ;;  %v2134_v46 = vpop.f32.mrf.mxu0 }
 0x465   :  { %v2053_v38 = vadd.f32 %v2052_v41, %v2012_v53  ;;  %v2363_v41 = vld [vmem:[%s3876_s8] ss:$0 sm:$0xff] }
 0x467   :  { %v2094_v45 = vadd.f32 %v2093_v15, %v2053_v38  ;;  %v2023_v15 = vpop.f32.mrf.mxu3  ;;  %v2108_v62 = vpop.f32.mrf.mxu2 }
 0x469   :  { %v2135_v57 = vadd.f32 %v2134_v46, %v2094_v45 }
 0x46b   :  { %v2158_v23 = vmax.f32 %v2135_v57, 0.0 }
 0x46c   :  { %v2055_v27 = vpop.f32.mrf.mxu1  ;;  %v2137_v56 = vpop.f32.mrf.mxu0 }
 0x46d   :  { %v2056_v63 = vadd.f32 %v2055_v27, %v2015_v24  ;;  %v2223_v16 = vsel %vm3800_vm10, %v2158_v23, 0.0 }
 0x46e   :  { %v2231_v48 = vsel %vm1427_vm6, %v2223_v16, -inf }
 0x46f   :  { %v2097_v25 = vadd.f32 %v2096_v14, %v2056_v63  ;;  %v2026_v43 = vpop.f32.mrf.mxu3  ;;  %v1989_v63 = vadd.f32 %v3786_v39, %v3776_v8  ;;  %v2257_v8 = vld [vmem:[%s3875_s7] sm:$0xff] }
 0x471   :  { %v2138_v30 = vadd.f32 %v2137_v56, %v2097_v25 }
 0x473   :  { %v2159_v26 = vmax.f32 %v2138_v30, 0.0 }
 0x474   :  { %v2058_v6 = vpop.f32.mrf.mxu1  ;;  %v2140_v11 = vpop.f32.mrf.mxu0 }
 0x475   :  { %v2059_v13 = vadd.f32 %v2058_v6, %v2018_v47  ;;  %v2224_v46 = vsel %vm3818_vm12, %v2159_v26, 0.0  ;;  %v1986_v47 = vadd.f32 %v3786_v39, %v3774_v55 }
 0x476   :  { %v2232_v49 = vsel %vm1427_vm6, %v2224_v46, -inf }
 0x477   :  { %v2100_v12 = vadd.f32 %v2099_v52, %v2059_v13  ;;  %v1983_v52 = vadd.f32 %v3786_v39, %v3772_v51  ;;  %v2029_v51 = vpop.f32.mrf.mxu3  ;;  %v2027_v2 = vadd.f32 %v2026_v43, %v1986_v47  ;;  %v2258_v13 = vld [vmem:[%s3875_s7 + $0x8] sm:$0xff] }
 0x478   :  { %v2030_v58 = vadd.f32 %v2029_v51, %v1989_v63 }
 0x479   :  { %v2141_v32 = vadd.f32 %v2140_v11, %v2100_v12  ;;  %v2024_v45 = vadd.f32 %v2023_v15, %v1983_v52  ;;  %v2259_v11 = vld [vmem:[%s3875_s7 + $0x10] sm:$0xff] }
 0x47a   :  { %2288 = vmatpush.msra.mxu3 %v2259_v11 }
 0x47b   :  { %v2160_v17 = vmax.f32 %v2141_v32, 0.0 }
 0x47c   :  { %v2061_v33 = vpop.f32.mrf.mxu1  ;;  %v2143_v19 = vpop.f32.mrf.mxu0  ;;  %2289 = vmatpush.msra.mxu3 %v2258_v13 }
 0x47d   :  { %v2225_v36 = vsel %vm3805_vm11, %v2160_v17, 0.0  ;;  %v2062_v34 = vadd.f32 %v2061_v33, %v2021_v3 }
 0x47e   :  { %v2233_v50 = vsel %vm1427_vm6, %v2225_v36, -inf  ;;  %2290 = vmatpush.msra.mxu3 %v2257_v8 }
 0x47f   :  { %v2234_v29 = vmax.f32 %v2231_v48, %v2233_v50  ;;  %v2103_v42 = vadd.f32 %v2102_v21, %v2062_v34  ;;  %v2111_v21 = vpop.f32.mrf.mxu2 }
 0x480   :  { %v2032_v10 = vpop.f32.mrf.mxu3 }
 0x481   :  { %v2144_v14 = vadd.f32 %v2143_v19, %v2103_v42  ;;  %v2033_v32 = vadd.f32 %v2032_v10, %v1992_v7 }
 0x483   :  { %v2161_v35 = vmax.f32 %v2144_v14, 0.0 }
 0x484   :  { %v2064_v1 = vpop.f32.mrf.mxu1  ;;  %v2146_v53 = vpop.f32.mrf.mxu0 }
 0x485   :  { %v2226_v38 = vsel %vm3822_vm13, %v2161_v35, 0.0  ;;  %v2065_v59 = vadd.f32 %v2064_v1, %v2024_v45 }
 0x486   :  { %v2235_v27 = vsel %vm1427_vm6, %v2226_v38, -inf }
 0x487   :  { %v2236_v56 = vmax.f32 %v2232_v49, %v2235_v27  ;;  %v2106_v57 = vadd.f32 %v2105_v5, %v2065_v59  ;;  %v2114_v17 = vpop.f32.mrf.mxu2 }
 0x489   :  { %v2237_v61 = vmax.f32 %v2234_v29, %v2236_v56  ;;  %v2147_v60 = vadd.f32 %v2146_v53, %v2106_v57 }
 0x48b   :  { %v2162_v23 = vmax.f32 %v2147_v60, 0.0  ;;  %v2238_v50 = vrot.slane %v2237_v61, 4 }
 0x48c   :  { %v2067_v24 = vpop.f32.mrf.mxu1  ;;  %v2149_v40 = vpop.f32.mrf.mxu0 }
 0x48d   :  { %v2068_v6 = vadd.f32 %v2067_v24, %v2027_v2  ;;  %v2227_v44 = vsel %vm3800_vm10, %v2162_v23, 0.0  ;;  %v2239_v29 = vmax.f32 %v2237_v61, %v2238_v50 }
 0x48e   :  { %v2244_v19 = vsel %vm1427_vm6, %v2227_v44, -inf }
 0x48f   :  { %v2109_v25 = vadd.f32 %v2108_v62, %v2068_v6  ;;  %v2240_v5 = vrot.slane %v2239_v29, 2 }
 0x491   :  { %v2150_v3 = vadd.f32 %v2149_v40, %v2109_v25  ;;  %v2241_v35 = vmax.f32 %v2239_v29, %v2240_v5 }
 0x493   :  { %v2163_v48 = vmax.f32 %v2150_v3, 0.0  ;;  %v2242_v52 = vrot.slane %v2241_v35, 1 }
 0x494   :  { %v2070_v22 = vpop.f32.mrf.mxu1  ;;  %v2152_v0 = vpop.f32.mrf.mxu0 }
 0x495   :  { %v2071_v55 = vadd.f32 %v2070_v22, %v2030_v58  ;;  %v2228_v31 = vsel %vm3818_vm12, %v2163_v48, 0.0  ;;  %v2243_v49 = vmax.f32 %v2241_v35, %v2242_v52 }
 0x496   :  { %v2245_v42 = vsel %vm1427_vm6, %v2228_v31, -inf }
 0x497   :  { %v2112_v12 = vadd.f32 %v2111_v21, %v2071_v55 }
 0x499   :  { %v2153_v20 = vadd.f32 %v2152_v0, %v2112_v12 }
 0x49b   :  { %v2164_v16 = vmax.f32 %v2153_v20, 0.0 }
 0x49c   :  { %v2073_v30 = vpop.f32.mrf.mxu1  ;;  %v2155_v34 = vpop.f32.mrf.mxu0 }
 0x49d   :  { %v2229_v54 = vsel %vm3805_vm11, %v2164_v16, 0.0  ;;  %v2074_v33 = vadd.f32 %v2073_v30, %v2033_v32 }
 0x49e   :  { %v2246_v36 = vsel %vm1427_vm6, %v2229_v54, -inf }
 0x49f   :  { %v2247_v28 = vmax.f32 %v2244_v19, %v2246_v36  ;;  %v2115_v39 = vadd.f32 %v2114_v17, %v2074_v33 }
 0x4a1   :  { %v2156_v37 = vadd.f32 %v2155_v34, %v2115_v39 }
 0x4a3   :  { %v2165_v26 = vmax.f32 %v2156_v37, 0.0 }
 0x4a5   :  { %v2230_v9 = vsel %vm3822_vm13, %v2165_v26, 0.0 }
 0x4a6   :  { %v2248_v4 = vsel %vm1427_vm6, %v2230_v9, -inf }
 0x4a7   :  { %v2249_v15 = vmax.f32 %v2245_v42, %v2248_v4 }
 0x4a9   :  { %v2250_v14 = vmax.f32 %v2247_v28, %v2249_v15 }
 0x4ab   :  { %v2251_v46 = vrot.slane %v2250_v14, 4 }
 0x4ad   :  { %v2252_v1 = vmax.f32 %v2250_v14, %v2251_v46 }
 0x4af   :  { %v2253_v53 = vrot.slane %v2252_v1, 2 }
 0x4b1   :  { %v2254_v38 = vmax.f32 %v2252_v1, %v2253_v53 }
 0x4b3   :  { %v2255_v18 = vrot.slane %v2254_v38, 1 }
 0x4b5   :  { %v2256_v27 = vmax.f32 %v2254_v38, %v2255_v18 }
 0x4b7   :  { %v2272_v56 = vsel %vm2271_vm14, %v2256_v27, %v2243_v49 }
 0x4b8   :  { %2352 = vmatmul.msk.f32.vlgmr.msra.gmra.mxu3 %vm1427_vm6, %v2272_v56 }
 0x53b   :  { %v2292_v43 = vpop.f32.mrf.mxu3 }
 0x53c   :  { %v2293_v45 = vadd.f32 %v2363_v41, %v2292_v43 }
 0x53e   :  { %2295 = vst [vmem:[#allocation8] sm:$0x3] %v2293_v45 }
 0x53f   :  { %2306 = dma.vmem_to_hbm [thread:$0]  %s2302_s23, 32, %s2304_s25, [#allocation9]  }
 0x540   :  { %2388 = dma.done.wait [#allocation9], 32  }
 0x541   :  { %2389 = vsyncadd [#allocation9], 4294967264 }
 0x542   :  { %2311 = vsyncpa [#allocation9], 1 }

</bundles_post_ra>
